<compile_context>
chip_gen: v7x
topology: tpu7x:2x2x1
jax: 0.10.0
libtpu: 0.0.40
codegen_flags: <defaults>
</compile_context>

<pallas_src>
import functools

import jax
import jax.numpy as jnp
from jax.experimental import pallas as pl
from jax.experimental.pallas import tpu as pltpu

BN_EPS = 1e-5


# ---------------------------------------------------------------- kernel math
def _mm(a, w):
    """Plain 2-D matmul on the MXU with f32 accumulation."""
    return jax.lax.dot_general(
        a, w, dimension_numbers=(((1,), (0,)), ((), ())),
        preferred_element_type=jnp.float32)


def _batchnorm_rows(v, batsum, inv_cnt):
    """BatchNorm2d (weight=1, bias=0, training batch stats), one-pass mean/var.

    v: (B*R, TC) with row = b*R + r; channel r's stats run over the B rows
    sharing r and over the TC lanes.  The TC lanes are reduced first (XLU slot,
    off the MXU critical path), then a tiny (B*R, B*R) @ (B*R, 1) matmul against
    the 0/1 matrix batsum[p, q] = 1 iff p % R == q % R broadcasts the
    cross-batch sum back to every row (no reshapes, no sub-tile gathers).
    """
    s = jnp.sum(v, axis=1, keepdims=True)             # (B*R, 1) lane sums
    q = jnp.sum(v * v, axis=1, keepdims=True)         # (B*R, 1)
    mean = _mm(batsum, s) * inv_cnt
    ex2 = _mm(batsum, q) * inv_cnt
    var = jnp.maximum(ex2 - mean * mean, 0.0)         # one-pass variance
    # NOTE: torch.where(isnan(.), 0, .) is identity for finite inputs (var+eps>0).
    return (v - mean) * jax.lax.rsqrt(var + BN_EPS)


def _gnn_layer(x, edge, wx, we, endb, startb, endbt, batsum_e, batsum_v,
               b, n, tc):
    """One GNN layer on lane-dense 2-D tiles. x: (B*N, TC), edge: (B*N*N, TC)."""
    inv_cnt = 1.0 / float(b * tc)      # BN stats count = B * T * C
    inv_n = 1.0 / float(n)
    res = x

    # Fused A/B/U/V linears: one block-diagonal GEMM, 4*TC-lane-wide result.
    lin = _mm(x, wx)                                          # (B*N, 4*TC)
    vix = lin[:, 0 * tc:1 * tc]                               # A(x)
    vjx = lin[:, 1 * tc:2 * tc]                               # B(x)
    uix = lin[:, 2 * tc:3 * tc]                               # U(x)
    ujx = lin[:, 3 * tc:4 * tc]                               # V(x)

    e_lin = _mm(edge, we)                                     # E(edge), (B*N*N, TC)

    # edge update: the 'end'/'start' einsums are row broadcasts by 0/1 matrices.
    edge_upd = _mm(endb, vix) + _mm(startb, vjx) + e_lin
    edge_upd = jnp.maximum(_batchnorm_rows(edge_upd, batsum_e, inv_cnt), 0.0)
    edge_new = edge + edge_upd

    # attention: sigmoid -> softmax over j.
    #   sigmoid(z) = 0.5*tanh(z/2)+0.5  (single EUP op, no divide)
    #   sigmoid output is in (0,1) so exp needs no max-subtraction.
    eg = jnp.exp(0.5 * jnp.tanh(0.5 * edge_new) + 0.5)        # (B*N*N, TC)
    inv_den = pl.reciprocal(_mm(endbt, eg), approx=True)      # 1 / sum_j, (B*N, TC)
    att = eg * _mm(endb, inv_den)                             # softmax over j

    # node update: U(x) + (sum_j att(i,j) * V(x)[j]) / N
    agg = _mm(endbt, att * _mm(startb, ujx))                  # (B*N, TC)
    x_new = uix + agg * inv_n
    x_bn = _batchnorm_rows(x_new, batsum_v, inv_cnt)
    x_out = jnp.maximum(res + x_bn, 0.0)                      # ReLU(res + bn(x))
    return x_out, edge_new


def _gnn_kernel(b, n, tc,
                x_ref, edge_ref, endb_ref, startb_ref, endbt_ref,
                batsum_e_ref, batsum_v_ref,
                wx1_ref, we1_ref, wx2_ref, we2_ref,
                x_out_ref, edge_out_ref):
    x = x_ref[...]
    edge = edge_ref[...]
    endb = endb_ref[...]
    startb = startb_ref[...]
    endbt = endbt_ref[...]
    batsum_e = batsum_e_ref[...]
    batsum_v = batsum_v_ref[...]

    # Both layers are unrolled in one kernel body: all intermediates stay in
    # vregs/VMEM, no HBM round-trip between layers, and the LLO scheduler can
    # interleave layer-2 MXU pushes with layer-1 epilogue VPU/XLU work.
    x, edge = _gnn_layer(x, edge, wx1_ref[...], we1_ref[...], endb, startb,
                         endbt, batsum_e, batsum_v, b, n, tc)
    x, edge = _gnn_layer(x, edge, wx2_ref[...], we2_ref[...], endb, startb,
                         endbt, batsum_e, batsum_v, b, n, tc)
    x_out_ref[...] = x
    edge_out_ref[...] = edge


# ---------------------------------------------------------------- wrapper
def _block_diag_weight(w, t):
    """(out,in) Linear weight -> (t*in, t*out) block-diagonal matrix so that a
    (T,C)-flattened row vector times it equals the Linear applied at each t."""
    out_c, in_c = w.shape
    eye = jnp.eye(t, dtype=w.dtype)
    return jnp.einsum('ts,cm->tcsm', eye, w.T).reshape(t * in_c, t * out_c)


def _pack_weights(weights, t):
    """weights order: A1,B1,E1,U1,V1,A2,B2,E2,U2,V2 (each (C, C))."""
    wa1, wb1, we1, wu1, wv1, wa2, wb2, we2, wu2, wv2 = weights

    def fuse_x(wa, wb, wu, wv):
        return jnp.concatenate(
            [_block_diag_weight(w, t) for w in (wa, wb, wu, wv)], axis=1)

    wx1 = fuse_x(wa1, wb1, wu1, wv1)
    wx2 = fuse_x(wa2, wb2, wu2, wv2)
    return wx1, _block_diag_weight(we1, t), wx2, _block_diag_weight(we2, t)


def _selection_matrices(b, n):
    """Constant 0/1 matrices realizing create_e_matrix's start/end einsums and
    the cross-batch BatchNorm reductions, batch-block-diagonal over b."""
    nn_ = n * n
    e = jnp.arange(nn_)
    v = jnp.arange(n)
    end = (e[:, None] // n == v[None, :]).astype(jnp.float32)     # picks i
    start = (e[:, None] % n == v[None, :]).astype(jnp.float32)    # picks j
    eye_b = jnp.eye(b, dtype=jnp.float32)
    endb = jnp.einsum('xy,ev->xeyv', eye_b, end).reshape(b * nn_, b * n)
    startb = jnp.einsum('xy,ev->xeyv', eye_b, start).reshape(b * nn_, b * n)

    def batsum(r):
        idx = jnp.arange(b * r) % r
        return (idx[:, None] == idx[None, :]).astype(jnp.float32)

    return endb, startb, endb.T, batsum(nn_), batsum(n)


def gnn_forward(x, edge, weights, num_classes):
    b, n, t, c = x.shape
    assert n == num_classes
    tc = t * c
    nn_ = n * n

    x2 = x.reshape(b * n, tc)                  # lane-dense (8, 256)
    edge2 = edge.reshape(b * nn_, tc)          # lane-dense (32, 256)
    endb, startb, endbt, batsum_e, batsum_v = _selection_matrices(b, n)
    wx1, we1, wx2, we2 = _pack_weights(weights, t)

    def full(shape):
        return pl.BlockSpec(shape, lambda i: (0,) * len(shape))

    x_out2, edge_out2 = pl.pallas_call(
        functools.partial(_gnn_kernel, b, n, tc),
        grid=(1,),                             # whole problem fits VMEM at these sizes
        in_specs=[full((b * n, tc)), full((b * nn_, tc)),
                  full((b * nn_, b * n)), full((b * nn_, b * n)),
                  full((b * n, b * nn_)),
                  full((b * nn_, b * nn_)), full((b * n, b * n)),
                  full((tc, 4 * tc)), full((tc, tc)),
                  full((tc, 4 * tc)), full((tc, tc))],
        out_specs=(full((b * n, tc)), full((b * nn_, tc))),
        out_shape=(jax.ShapeDtypeStruct((b * n, tc), jnp.float32),
                   jax.ShapeDtypeStruct((b * nn_, tc), jnp.float32)),
        input_output_aliases={0: 0, 1: 1},     # reuse the x/edge HBM buffers
        compiler_params=pltpu.CompilerParams(
            dimension_semantics=("arbitrary",)),
    )(x2, edge2, endb, startb, endbt, batsum_e, batsum_v, wx1, we1, wx2, we2)

    # TODO(synk): for production-scale B/T/C, split the two layers into separate
    # pallas_calls with a 'parallel' grid axis over the node index i so the
    # N^2-sized edge tensors tile inside v7x's 64 MiB VMEM / both TensorCores.
    return x_out2.reshape(b, n, t, c), edge_out2.reshape(b, nn_, t, c)


# ---------------------------------------------------------------- pure-JAX reference
def _ref_batchnorm(v):
    mean = jnp.mean(v, axis=(0, 2, 3), keepdims=True)
    var = jnp.mean(jnp.square(v - mean), axis=(0, 2, 3), keepdims=True)
    return (v - mean) / jnp.sqrt(var + BN_EPS)


def _ref_layer(x, edge, wa, wb, we, wu, wv, n):
    b, _, t, c = x.shape
    linear = lambda v, w: jnp.einsum('...c,mc->...m', v, w)
    res = x
    vix, vjx, e_lin = linear(x, wa), linear(x, wb), linear(edge, we)
    upd = (vix[:, :, None, :, :] + vjx[:, None, :, :, :]).reshape(b, n * n, t, c) + e_lin
    upd = jax.nn.relu(_ref_batchnorm(upd))
    edge_new = edge + upd
    att = jax.nn.softmax(jax.nn.sigmoid(edge_new).reshape(b, n, n, t, c), axis=2)
    ujx, uix = linear(x, wv), linear(x, wu)
    agg = jnp.sum(att * ujx[:, None, :, :, :], axis=2)
    x_new = uix + agg / n
    x_out = jax.nn.relu(res + _ref_batchnorm(x_new))
    return x_out, edge_new


def gnn_reference(x, edge, weights, num_classes):
    x1, e1 = _ref_layer(x, edge, *weights[0:5], num_classes)
    x2, e2 = _ref_layer(x1, e1, *weights[5:10], num_classes)
    return x2, e2


# ---------------------------------------------------------------- main
if __name__ == "__main__":
    B, N, T, C = 2, 4, 8, 32      # batch, num_classes, temporal dim, in_channels
    E = N * N

    key = jax.random.PRNGKey(0)
    keys = jax.random.split(key, 12)
    x = jax.random.normal(keys[0], (B, N, T, C), jnp.float32)
    edge = jax.random.normal(keys[1], (B, E, T, C), jnp.float32)

    # init_weights_linear: normal(0, sqrt(2/dim_in)); order A1,B1,E1,U1,V1,A2,B2,E2,U2,V2
    scale = (2.0 / C) ** 0.5
    weights = tuple(jax.random.normal(keys[2 + i], (C, C), jnp.float32) * scale
                    for i in range(10))

    x_out, edge_out = gnn_forward(x, edge, weights, N)
    jax.block_until_ready((x_out, edge_out))

    # sanity check against the pure-JAX reference (PyTorch-exact math)
    x_ref_out, edge_ref_out = gnn_reference(x, edge, weights, N)
    assert float(jnp.max(jnp.abs(x_out - x_ref_out))) < 1e-2
    assert float(jnp.max(jnp.abs(edge_out - edge_ref_out))) < 1e-2

    print("KERNEL_OK")
</pallas_src>

<mosaic_0001>
module attributes {stable_mosaic.version = 11 : i64} {
  func.func @_gnn_kernel(%arg0: i32, %arg1: memref<8x256xf32, #tpu.memory_space<vmem>>, %arg2: memref<32x256xf32, #tpu.memory_space<vmem>>, %arg3: memref<32x8xf32, #tpu.memory_space<vmem>>, %arg4: memref<32x8xf32, #tpu.memory_space<vmem>>, %arg5: memref<8x32xf32, #tpu.memory_space<vmem>>, %arg6: memref<32x32xf32, #tpu.memory_space<vmem>>, %arg7: memref<8x8xf32, #tpu.memory_space<vmem>>, %arg8: memref<256x1024xf32, #tpu.memory_space<vmem>>, %arg9: memref<256x256xf32, #tpu.memory_space<vmem>>, %arg10: memref<256x1024xf32, #tpu.memory_space<vmem>>, %arg11: memref<256x256xf32, #tpu.memory_space<vmem>>, %arg12: memref<8x256xf32, #tpu.memory_space<vmem>>, %arg13: memref<32x256xf32, #tpu.memory_space<vmem>>) attributes {dimension_semantics = [#tpu.dimension_semantics<arbitrary>], iteration_bounds = array<i64: 1>, scalar_prefetch = 0 : i64, scratch_operands = 0 : i64, tpu.core_type = #tpu.core_type<tc>, window_params = [{pipeline_mode = #tpu.pipeline_mode<synchronous>, transform_indices = @transform_0, window_bounds = array<i64: 8, 256>}, {pipeline_mode = #tpu.pipeline_mode<synchronous>, transform_indices = @transform_1, window_bounds = array<i64: 32, 256>}, {pipeline_mode = #tpu.pipeline_mode<synchronous>, transform_indices = @transform_2, window_bounds = array<i64: 32, 8>}, {pipeline_mode = #tpu.pipeline_mode<synchronous>, transform_indices = @transform_3, window_bounds = array<i64: 32, 8>}, {pipeline_mode = #tpu.pipeline_mode<synchronous>, transform_indices = @transform_4, window_bounds = array<i64: 8, 32>}, {pipeline_mode = #tpu.pipeline_mode<synchronous>, transform_indices = @transform_5, window_bounds = array<i64: 32, 32>}, {pipeline_mode = #tpu.pipeline_mode<synchronous>, transform_indices = @transform_6, window_bounds = array<i64: 8, 8>}, {pipeline_mode = #tpu.pipeline_mode<synchronous>, transform_indices = @transform_7, window_bounds = array<i64: 256, 1024>}, {pipeline_mode = #tpu.pipeline_mode<synchronous>, transform_indices = @transform_8, window_bounds = array<i64: 256, 256>}, {pipeline_mode = #tpu.pipeline_mode<synchronous>, transform_indices = @transform_9, window_bounds = array<i64: 256, 1024>}, {pipeline_mode = #tpu.pipeline_mode<synchronous>, transform_indices = @transform_10, window_bounds = array<i64: 256, 256>}, {pipeline_mode = #tpu.pipeline_mode<synchronous>, transform_indices = @transform_11, window_bounds = array<i64: 8, 256>}, {pipeline_mode = #tpu.pipeline_mode<synchronous>, transform_indices = @transform_12, window_bounds = array<i64: 32, 256>}]} {
    %c0 = arith.constant 0 : index
    %c0_0 = arith.constant 0 : index
    %0 = vector.load %arg1[%c0, %c0_0] : memref<8x256xf32, #tpu.memory_space<vmem>>, vector<8x256xf32>
    %c0_1 = arith.constant 0 : index
    %c0_2 = arith.constant 0 : index
    %1 = vector.load %arg2[%c0_1, %c0_2] : memref<32x256xf32, #tpu.memory_space<vmem>>, vector<32x256xf32>
    %c0_3 = arith.constant 0 : index
    %c0_4 = arith.constant 0 : index
    %2 = vector.load %arg3[%c0_3, %c0_4] : memref<32x8xf32, #tpu.memory_space<vmem>>, vector<32x8xf32>
    %c0_5 = arith.constant 0 : index
    %c0_6 = arith.constant 0 : index
    %3 = vector.load %arg4[%c0_5, %c0_6] : memref<32x8xf32, #tpu.memory_space<vmem>>, vector<32x8xf32>
    %c0_7 = arith.constant 0 : index
    %c0_8 = arith.constant 0 : index
    %4 = vector.load %arg5[%c0_7, %c0_8] : memref<8x32xf32, #tpu.memory_space<vmem>>, vector<8x32xf32>
    %c0_9 = arith.constant 0 : index
    %c0_10 = arith.constant 0 : index
    %5 = vector.load %arg6[%c0_9, %c0_10] : memref<32x32xf32, #tpu.memory_space<vmem>>, vector<32x32xf32>
    %c0_11 = arith.constant 0 : index
    %c0_12 = arith.constant 0 : index
    %6 = vector.load %arg7[%c0_11, %c0_12] : memref<8x8xf32, #tpu.memory_space<vmem>>, vector<8x8xf32>
    %c0_13 = arith.constant 0 : index
    %c0_14 = arith.constant 0 : index
    %7 = vector.load %arg8[%c0_13, %c0_14] : memref<256x1024xf32, #tpu.memory_space<vmem>>, vector<256x1024xf32>
    %c0_15 = arith.constant 0 : index
    %c0_16 = arith.constant 0 : index
    %8 = vector.load %arg9[%c0_15, %c0_16] : memref<256x256xf32, #tpu.memory_space<vmem>>, vector<256x256xf32>
    %cst = arith.constant dense<0.000000e+00> : vector<8x1024xf32>
    %9 = tpu.matmul %0, %7, %cst {dimension_numbers = #tpu.dot_dimension_numbers<[1], [0], [0], [1], [0, 0, 1, 1], [], []>} : vector<8x256xf32>, vector<256x1024xf32>, vector<8x1024xf32> -> vector<8x1024xf32>
    %10 = vector.extract_strided_slice %9 {offsets = [0, 0], sizes = [8, 256], strides = [1, 1]} : vector<8x1024xf32> to vector<8x256xf32>
    %11 = vector.extract_strided_slice %9 {offsets = [0, 256], sizes = [8, 256], strides = [1, 1]} : vector<8x1024xf32> to vector<8x256xf32>
    %12 = vector.extract_strided_slice %9 {offsets = [0, 512], sizes = [8, 256], strides = [1, 1]} : vector<8x1024xf32> to vector<8x256xf32>
    %13 = vector.extract_strided_slice %9 {offsets = [0, 768], sizes = [8, 256], strides = [1, 1]} : vector<8x1024xf32> to vector<8x256xf32>
    %cst_17 = arith.constant dense<0.000000e+00> : vector<32x256xf32>
    %14 = tpu.matmul %1, %8, %cst_17 {dimension_numbers = #tpu.dot_dimension_numbers<[1], [0], [0], [1], [0, 0, 1, 1], [], []>} : vector<32x256xf32>, vector<256x256xf32>, vector<32x256xf32> -> vector<32x256xf32>
    %cst_18 = arith.constant dense<0.000000e+00> : vector<32x256xf32>
    %15 = tpu.matmul %2, %10, %cst_18 {dimension_numbers = #tpu.dot_dimension_numbers<[1], [0], [0], [1], [0, 0, 1, 1], [], []>} : vector<32x8xf32>, vector<8x256xf32>, vector<32x256xf32> -> vector<32x256xf32>
    %cst_19 = arith.constant dense<0.000000e+00> : vector<32x256xf32>
    %16 = tpu.matmul %3, %11, %cst_19 {dimension_numbers = #tpu.dot_dimension_numbers<[1], [0], [0], [1], [0, 0, 1, 1], [], []>} : vector<32x8xf32>, vector<8x256xf32>, vector<32x256xf32> -> vector<32x256xf32>
    %17 = arith.addf %15, %16 : vector<32x256xf32>
    %18 = arith.addf %17, %14 : vector<32x256xf32>
    %cst_20 = arith.constant dense<0.000000e+00> : vector<32xf32>
    %19 = vector.multi_reduction <add>, %18, %cst_20 [1] : vector<32x256xf32> to vector<32xf32>
    %20 = vector.shape_cast %19 : vector<32xf32> to vector<32x1xf32>
    %21 = arith.mulf %18, %18 : vector<32x256xf32>
    %cst_21 = arith.constant dense<0.000000e+00> : vector<32xf32>
    %22 = vector.multi_reduction <add>, %21, %cst_21 [1] : vector<32x256xf32> to vector<32xf32>
    %23 = vector.shape_cast %22 : vector<32xf32> to vector<32x1xf32>
    %cst_22 = arith.constant dense<0.000000e+00> : vector<32x1xf32>
    %24 = tpu.matmul %5, %20, %cst_22 {dimension_numbers = #tpu.dot_dimension_numbers<[1], [0], [0], [1], [0, 0, 1, 1], [], []>} : vector<32x32xf32>, vector<32x1xf32>, vector<32x1xf32> -> vector<32x1xf32>
    %cst_23 = arith.constant 0.001953125 : f32
    %25 = vector.broadcast %cst_23 : f32 to vector<32x1xf32>
    %26 = arith.mulf %24, %25 : vector<32x1xf32>
    %cst_24 = arith.constant dense<0.000000e+00> : vector<32x1xf32>
    %27 = tpu.matmul %5, %23, %cst_24 {dimension_numbers = #tpu.dot_dimension_numbers<[1], [0], [0], [1], [0, 0, 1, 1], [], []>} : vector<32x32xf32>, vector<32x1xf32>, vector<32x1xf32> -> vector<32x1xf32>
    %cst_25 = arith.constant 0.001953125 : f32
    %28 = vector.broadcast %cst_25 : f32 to vector<32x1xf32>
    %29 = arith.mulf %27, %28 : vector<32x1xf32>
    %30 = arith.mulf %26, %26 : vector<32x1xf32>
    %31 = arith.subf %29, %30 : vector<32x1xf32>
    %cst_26 = arith.constant 0.000000e+00 : f32
    %32 = vector.broadcast %cst_26 : f32 to vector<32x1xf32>
    %33 = arith.maximumf %31, %32 : vector<32x1xf32>
    %34 = vector.broadcast %26 : vector<32x1xf32> to vector<32x256xf32>
    %35 = arith.subf %18, %34 : vector<32x256xf32>
    %cst_27 = arith.constant 9.99999974E-6 : f32
    %36 = vector.broadcast %cst_27 : f32 to vector<32x1xf32>
    %37 = arith.addf %33, %36 : vector<32x1xf32>
    %38 = math.rsqrt %37 : vector<32x1xf32>
    %39 = vector.broadcast %38 : vector<32x1xf32> to vector<32x256xf32>
    %40 = arith.mulf %35, %39 : vector<32x256xf32>
    %cst_28 = arith.constant 0.000000e+00 : f32
    %41 = vector.broadcast %cst_28 : f32 to vector<32x256xf32>
    %42 = arith.maximumf %40, %41 : vector<32x256xf32>
    %43 = arith.addf %1, %42 : vector<32x256xf32>
    %cst_29 = arith.constant 5.000000e-01 : f32
    %44 = vector.broadcast %cst_29 : f32 to vector<32x256xf32>
    %45 = arith.mulf %44, %43 : vector<32x256xf32>
    %46 = math.tanh %45 : vector<32x256xf32>
    %cst_30 = arith.constant 5.000000e-01 : f32
    %47 = vector.broadcast %cst_30 : f32 to vector<32x256xf32>
    %48 = arith.mulf %47, %46 : vector<32x256xf32>
    %cst_31 = arith.constant 5.000000e-01 : f32
    %49 = vector.broadcast %cst_31 : f32 to vector<32x256xf32>
    %50 = arith.addf %48, %49 : vector<32x256xf32>
    %51 = math.exp %50 : vector<32x256xf32>
    %cst_32 = arith.constant dense<0.000000e+00> : vector<8x256xf32>
    %52 = tpu.matmul %4, %51, %cst_32 {dimension_numbers = #tpu.dot_dimension_numbers<[1], [0], [0], [1], [0, 0, 1, 1], [], []>} : vector<8x32xf32>, vector<32x256xf32>, vector<8x256xf32> -> vector<8x256xf32>
    %53 = tpu.reciprocal %52 {approx = true} : vector<8x256xf32> -> vector<8x256xf32>
    %cst_33 = arith.constant dense<0.000000e+00> : vector<32x256xf32>
    %54 = tpu.matmul %2, %53, %cst_33 {dimension_numbers = #tpu.dot_dimension_numbers<[1], [0], [0], [1], [0, 0, 1, 1], [], []>} : vector<32x8xf32>, vector<8x256xf32>, vector<32x256xf32> -> vector<32x256xf32>
    %55 = arith.mulf %51, %54 : vector<32x256xf32>
    %cst_34 = arith.constant dense<0.000000e+00> : vector<32x256xf32>
    %56 = tpu.matmul %3, %13, %cst_34 {dimension_numbers = #tpu.dot_dimension_numbers<[1], [0], [0], [1], [0, 0, 1, 1], [], []>} : vector<32x8xf32>, vector<8x256xf32>, vector<32x256xf32> -> vector<32x256xf32>
    %57 = arith.mulf %55, %56 : vector<32x256xf32>
    %cst_35 = arith.constant dense<0.000000e+00> : vector<8x256xf32>
    %58 = tpu.matmul %4, %57, %cst_35 {dimension_numbers = #tpu.dot_dimension_numbers<[1], [0], [0], [1], [0, 0, 1, 1], [], []>} : vector<8x32xf32>, vector<32x256xf32>, vector<8x256xf32> -> vector<8x256xf32>
    %cst_36 = arith.constant 2.500000e-01 : f32
    %59 = vector.broadcast %cst_36 : f32 to vector<8x256xf32>
    %60 = arith.mulf %58, %59 : vector<8x256xf32>
    %61 = arith.addf %12, %60 : vector<8x256xf32>
    %cst_37 = arith.constant dense<0.000000e+00> : vector<8xf32>
    %62 = vector.multi_reduction <add>, %61, %cst_37 [1] : vector<8x256xf32> to vector<8xf32>
    %63 = vector.shape_cast %62 : vector<8xf32> to vector<8x1xf32>
    %64 = arith.mulf %61, %61 : vector<8x256xf32>
    %cst_38 = arith.constant dense<0.000000e+00> : vector<8xf32>
    %65 = vector.multi_reduction <add>, %64, %cst_38 [1] : vector<8x256xf32> to vector<8xf32>
    %66 = vector.shape_cast %65 : vector<8xf32> to vector<8x1xf32>
    %cst_39 = arith.constant dense<0.000000e+00> : vector<8x1xf32>
    %67 = tpu.matmul %6, %63, %cst_39 {dimension_numbers = #tpu.dot_dimension_numbers<[1], [0], [0], [1], [0, 0, 1, 1], [], []>} : vector<8x8xf32>, vector<8x1xf32>, vector<8x1xf32> -> vector<8x1xf32>
    %cst_40 = arith.constant 0.001953125 : f32
    %68 = vector.broadcast %cst_40 : f32 to vector<8x1xf32>
    %69 = arith.mulf %67, %68 : vector<8x1xf32>
    %cst_41 = arith.constant dense<0.000000e+00> : vector<8x1xf32>
    %70 = tpu.matmul %6, %66, %cst_41 {dimension_numbers = #tpu.dot_dimension_numbers<[1], [0], [0], [1], [0, 0, 1, 1], [], []>} : vector<8x8xf32>, vector<8x1xf32>, vector<8x1xf32> -> vector<8x1xf32>
    %cst_42 = arith.constant 0.001953125 : f32
    %71 = vector.broadcast %cst_42 : f32 to vector<8x1xf32>
    %72 = arith.mulf %70, %71 : vector<8x1xf32>
    %73 = arith.mulf %69, %69 : vector<8x1xf32>
    %74 = arith.subf %72, %73 : vector<8x1xf32>
    %cst_43 = arith.constant 0.000000e+00 : f32
    %75 = vector.broadcast %cst_43 : f32 to vector<8x1xf32>
    %76 = arith.maximumf %74, %75 : vector<8x1xf32>
    %77 = vector.broadcast %69 : vector<8x1xf32> to vector<8x256xf32>
    %78 = arith.subf %61, %77 : vector<8x256xf32>
    %cst_44 = arith.constant 9.99999974E-6 : f32
    %79 = vector.broadcast %cst_44 : f32 to vector<8x1xf32>
    %80 = arith.addf %76, %79 : vector<8x1xf32>
    %81 = math.rsqrt %80 : vector<8x1xf32>
    %82 = vector.broadcast %81 : vector<8x1xf32> to vector<8x256xf32>
    %83 = arith.mulf %78, %82 : vector<8x256xf32>
    %84 = arith.addf %0, %83 : vector<8x256xf32>
    %cst_45 = arith.constant 0.000000e+00 : f32
    %85 = vector.broadcast %cst_45 : f32 to vector<8x256xf32>
    %86 = arith.maximumf %84, %85 : vector<8x256xf32>
    %c0_46 = arith.constant 0 : index
    %c0_47 = arith.constant 0 : index
    %87 = vector.load %arg10[%c0_46, %c0_47] : memref<256x1024xf32, #tpu.memory_space<vmem>>, vector<256x1024xf32>
    %c0_48 = arith.constant 0 : index
    %c0_49 = arith.constant 0 : index
    %88 = vector.load %arg11[%c0_48, %c0_49] : memref<256x256xf32, #tpu.memory_space<vmem>>, vector<256x256xf32>
    %cst_50 = arith.constant dense<0.000000e+00> : vector<8x1024xf32>
    %89 = tpu.matmul %86, %87, %cst_50 {dimension_numbers = #tpu.dot_dimension_numbers<[1], [0], [0], [1], [0, 0, 1, 1], [], []>} : vector<8x256xf32>, vector<256x1024xf32>, vector<8x1024xf32> -> vector<8x1024xf32>
    %90 = vector.extract_strided_slice %89 {offsets = [0, 0], sizes = [8, 256], strides = [1, 1]} : vector<8x1024xf32> to vector<8x256xf32>
    %91 = vector.extract_strided_slice %89 {offsets = [0, 256], sizes = [8, 256], strides = [1, 1]} : vector<8x1024xf32> to vector<8x256xf32>
    %92 = vector.extract_strided_slice %89 {offsets = [0, 512], sizes = [8, 256], strides = [1, 1]} : vector<8x1024xf32> to vector<8x256xf32>
    %93 = vector.extract_strided_slice %89 {offsets = [0, 768], sizes = [8, 256], strides = [1, 1]} : vector<8x1024xf32> to vector<8x256xf32>
    %cst_51 = arith.constant dense<0.000000e+00> : vector<32x256xf32>
    %94 = tpu.matmul %43, %88, %cst_51 {dimension_numbers = #tpu.dot_dimension_numbers<[1], [0], [0], [1], [0, 0, 1, 1], [], []>} : vector<32x256xf32>, vector<256x256xf32>, vector<32x256xf32> -> vector<32x256xf32>
    %cst_52 = arith.constant dense<0.000000e+00> : vector<32x256xf32>
    %95 = tpu.matmul %2, %90, %cst_52 {dimension_numbers = #tpu.dot_dimension_numbers<[1], [0], [0], [1], [0, 0, 1, 1], [], []>} : vector<32x8xf32>, vector<8x256xf32>, vector<32x256xf32> -> vector<32x256xf32>
    %cst_53 = arith.constant dense<0.000000e+00> : vector<32x256xf32>
    %96 = tpu.matmul %3, %91, %cst_53 {dimension_numbers = #tpu.dot_dimension_numbers<[1], [0], [0], [1], [0, 0, 1, 1], [], []>} : vector<32x8xf32>, vector<8x256xf32>, vector<32x256xf32> -> vector<32x256xf32>
    %97 = arith.addf %95, %96 : vector<32x256xf32>
    %98 = arith.addf %97, %94 : vector<32x256xf32>
    %cst_54 = arith.constant dense<0.000000e+00> : vector<32xf32>
    %99 = vector.multi_reduction <add>, %98, %cst_54 [1] : vector<32x256xf32> to vector<32xf32>
    %100 = vector.shape_cast %99 : vector<32xf32> to vector<32x1xf32>
    %101 = arith.mulf %98, %98 : vector<32x256xf32>
    %cst_55 = arith.constant dense<0.000000e+00> : vector<32xf32>
    %102 = vector.multi_reduction <add>, %101, %cst_55 [1] : vector<32x256xf32> to vector<32xf32>
    %103 = vector.shape_cast %102 : vector<32xf32> to vector<32x1xf32>
    %cst_56 = arith.constant dense<0.000000e+00> : vector<32x1xf32>
    %104 = tpu.matmul %5, %100, %cst_56 {dimension_numbers = #tpu.dot_dimension_numbers<[1], [0], [0], [1], [0, 0, 1, 1], [], []>} : vector<32x32xf32>, vector<32x1xf32>, vector<32x1xf32> -> vector<32x1xf32>
    %cst_57 = arith.constant 0.001953125 : f32
    %105 = vector.broadcast %cst_57 : f32 to vector<32x1xf32>
    %106 = arith.mulf %104, %105 : vector<32x1xf32>
    %cst_58 = arith.constant dense<0.000000e+00> : vector<32x1xf32>
    %107 = tpu.matmul %5, %103, %cst_58 {dimension_numbers = #tpu.dot_dimension_numbers<[1], [0], [0], [1], [0, 0, 1, 1], [], []>} : vector<32x32xf32>, vector<32x1xf32>, vector<32x1xf32> -> vector<32x1xf32>
    %cst_59 = arith.constant 0.001953125 : f32
    %108 = vector.broadcast %cst_59 : f32 to vector<32x1xf32>
    %109 = arith.mulf %107, %108 : vector<32x1xf32>
    %110 = arith.mulf %106, %106 : vector<32x1xf32>
    %111 = arith.subf %109, %110 : vector<32x1xf32>
    %cst_60 = arith.constant 0.000000e+00 : f32
    %112 = vector.broadcast %cst_60 : f32 to vector<32x1xf32>
    %113 = arith.maximumf %111, %112 : vector<32x1xf32>
    %114 = vector.broadcast %106 : vector<32x1xf32> to vector<32x256xf32>
    %115 = arith.subf %98, %114 : vector<32x256xf32>
    %cst_61 = arith.constant 9.99999974E-6 : f32
    %116 = vector.broadcast %cst_61 : f32 to vector<32x1xf32>
    %117 = arith.addf %113, %116 : vector<32x1xf32>
    %118 = math.rsqrt %117 : vector<32x1xf32>
    %119 = vector.broadcast %118 : vector<32x1xf32> to vector<32x256xf32>
    %120 = arith.mulf %115, %119 : vector<32x256xf32>
    %cst_62 = arith.constant 0.000000e+00 : f32
    %121 = vector.broadcast %cst_62 : f32 to vector<32x256xf32>
    %122 = arith.maximumf %120, %121 : vector<32x256xf32>
    %123 = arith.addf %43, %122 : vector<32x256xf32>
    %cst_63 = arith.constant 5.000000e-01 : f32
    %124 = vector.broadcast %cst_63 : f32 to vector<32x256xf32>
    %125 = arith.mulf %124, %123 : vector<32x256xf32>
    %126 = math.tanh %125 : vector<32x256xf32>
    %cst_64 = arith.constant 5.000000e-01 : f32
    %127 = vector.broadcast %cst_64 : f32 to vector<32x256xf32>
    %128 = arith.mulf %127, %126 : vector<32x256xf32>
    %cst_65 = arith.constant 5.000000e-01 : f32
    %129 = vector.broadcast %cst_65 : f32 to vector<32x256xf32>
    %130 = arith.addf %128, %129 : vector<32x256xf32>
    %131 = math.exp %130 : vector<32x256xf32>
    %cst_66 = arith.constant dense<0.000000e+00> : vector<8x256xf32>
    %132 = tpu.matmul %4, %131, %cst_66 {dimension_numbers = #tpu.dot_dimension_numbers<[1], [0], [0], [1], [0, 0, 1, 1], [], []>} : vector<8x32xf32>, vector<32x256xf32>, vector<8x256xf32> -> vector<8x256xf32>
    %133 = tpu.reciprocal %132 {approx = true} : vector<8x256xf32> -> vector<8x256xf32>
    %cst_67 = arith.constant dense<0.000000e+00> : vector<32x256xf32>
    %134 = tpu.matmul %2, %133, %cst_67 {dimension_numbers = #tpu.dot_dimension_numbers<[1], [0], [0], [1], [0, 0, 1, 1], [], []>} : vector<32x8xf32>, vector<8x256xf32>, vector<32x256xf32> -> vector<32x256xf32>
    %135 = arith.mulf %131, %134 : vector<32x256xf32>
    %cst_68 = arith.constant dense<0.000000e+00> : vector<32x256xf32>
    %136 = tpu.matmul %3, %93, %cst_68 {dimension_numbers = #tpu.dot_dimension_numbers<[1], [0], [0], [1], [0, 0, 1, 1], [], []>} : vector<32x8xf32>, vector<8x256xf32>, vector<32x256xf32> -> vector<32x256xf32>
    %137 = arith.mulf %135, %136 : vector<32x256xf32>
    %cst_69 = arith.constant dense<0.000000e+00> : vector<8x256xf32>
    %138 = tpu.matmul %4, %137, %cst_69 {dimension_numbers = #tpu.dot_dimension_numbers<[1], [0], [0], [1], [0, 0, 1, 1], [], []>} : vector<8x32xf32>, vector<32x256xf32>, vector<8x256xf32> -> vector<8x256xf32>
    %cst_70 = arith.constant 2.500000e-01 : f32
    %139 = vector.broadcast %cst_70 : f32 to vector<8x256xf32>
    %140 = arith.mulf %138, %139 : vector<8x256xf32>
    %141 = arith.addf %92, %140 : vector<8x256xf32>
    %cst_71 = arith.constant dense<0.000000e+00> : vector<8xf32>
    %142 = vector.multi_reduction <add>, %141, %cst_71 [1] : vector<8x256xf32> to vector<8xf32>
    %143 = vector.shape_cast %142 : vector<8xf32> to vector<8x1xf32>
    %144 = arith.mulf %141, %141 : vector<8x256xf32>
    %cst_72 = arith.constant dense<0.000000e+00> : vector<8xf32>
    %145 = vector.multi_reduction <add>, %144, %cst_72 [1] : vector<8x256xf32> to vector<8xf32>
    %146 = vector.shape_cast %145 : vector<8xf32> to vector<8x1xf32>
    %cst_73 = arith.constant dense<0.000000e+00> : vector<8x1xf32>
    %147 = tpu.matmul %6, %143, %cst_73 {dimension_numbers = #tpu.dot_dimension_numbers<[1], [0], [0], [1], [0, 0, 1, 1], [], []>} : vector<8x8xf32>, vector<8x1xf32>, vector<8x1xf32> -> vector<8x1xf32>
    %cst_74 = arith.constant 0.001953125 : f32
    %148 = vector.broadcast %cst_74 : f32 to vector<8x1xf32>
    %149 = arith.mulf %147, %148 : vector<8x1xf32>
    %cst_75 = arith.constant dense<0.000000e+00> : vector<8x1xf32>
    %150 = tpu.matmul %6, %146, %cst_75 {dimension_numbers = #tpu.dot_dimension_numbers<[1], [0], [0], [1], [0, 0, 1, 1], [], []>} : vector<8x8xf32>, vector<8x1xf32>, vector<8x1xf32> -> vector<8x1xf32>
    %cst_76 = arith.constant 0.001953125 : f32
    %151 = vector.broadcast %cst_76 : f32 to vector<8x1xf32>
    %152 = arith.mulf %150, %151 : vector<8x1xf32>
    %153 = arith.mulf %149, %149 : vector<8x1xf32>
    %154 = arith.subf %152, %153 : vector<8x1xf32>
    %cst_77 = arith.constant 0.000000e+00 : f32
    %155 = vector.broadcast %cst_77 : f32 to vector<8x1xf32>
    %156 = arith.maximumf %154, %155 : vector<8x1xf32>
    %157 = vector.broadcast %149 : vector<8x1xf32> to vector<8x256xf32>
    %158 = arith.subf %141, %157 : vector<8x256xf32>
    %cst_78 = arith.constant 9.99999974E-6 : f32
    %159 = vector.broadcast %cst_78 : f32 to vector<8x1xf32>
    %160 = arith.addf %156, %159 : vector<8x1xf32>
    %161 = math.rsqrt %160 : vector<8x1xf32>
    %162 = vector.broadcast %161 : vector<8x1xf32> to vector<8x256xf32>
    %163 = arith.mulf %158, %162 : vector<8x256xf32>
    %164 = arith.addf %86, %163 : vector<8x256xf32>
    %cst_79 = arith.constant 0.000000e+00 : f32
    %165 = vector.broadcast %cst_79 : f32 to vector<8x256xf32>
    %166 = arith.maximumf %164, %165 : vector<8x256xf32>
    %c0_80 = arith.constant 0 : index
    %c0_81 = arith.constant 0 : index
    %167 = vector.load %arg12[%c0_80, %c0_81] : memref<8x256xf32, #tpu.memory_space<vmem>>, vector<8x256xf32>
    tpu.vector_store %arg12[%c0_80, %c0_81], %166 {strides = array<i32>} : memref<8x256xf32, #tpu.memory_space<vmem>>, vector<8x256xf32>,
    %c0_82 = arith.constant 0 : index
    %c0_83 = arith.constant 0 : index
    %168 = vector.load %arg13[%c0_82, %c0_83] : memref<32x256xf32, #tpu.memory_space<vmem>>, vector<32x256xf32>
    tpu.vector_store %arg13[%c0_82, %c0_83], %123 {strides = array<i32>} : memref<32x256xf32, #tpu.memory_space<vmem>>, vector<32x256xf32>,
    return
  }
  func.func @transform_0(%arg0: i32) -> (i32, i32) {
    %c0_i32 = arith.constant 0 : i32
    %c0_i32_0 = arith.constant 0 : i32
    %c0_i32_1 = arith.constant 0 : i32
    return %c0_i32, %c0_i32_0 : i32, i32
  }
  func.func @transform_1(%arg0: i32) -> (i32, i32) {
    %c0_i32 = arith.constant 0 : i32
    %c0_i32_0 = arith.constant 0 : i32
    %c0_i32_1 = arith.constant 0 : i32
    return %c0_i32, %c0_i32_0 : i32, i32
  }
  func.func @transform_2(%arg0: i32) -> (i32, i32) {
    %c0_i32 = arith.constant 0 : i32
    %c0_i32_0 = arith.constant 0 : i32
    %c0_i32_1 = arith.constant 0 : i32
    return %c0_i32, %c0_i32_0 : i32, i32
  }
  func.func @transform_3(%arg0: i32) -> (i32, i32) {
    %c0_i32 = arith.constant 0 : i32
    %c0_i32_0 = arith.constant 0 : i32
    %c0_i32_1 = arith.constant 0 : i32
    return %c0_i32, %c0_i32_0 : i32, i32
  }
  func.func @transform_4(%arg0: i32) -> (i32, i32) {
    %c0_i32 = arith.constant 0 : i32
    %c0_i32_0 = arith.constant 0 : i32
    %c0_i32_1 = arith.constant 0 : i32
    return %c0_i32, %c0_i32_0 : i32, i32
  }
  func.func @transform_5(%arg0: i32) -> (i32, i32) {
    %c0_i32 = arith.constant 0 : i32
    %c0_i32_0 = arith.constant 0 : i32
    %c0_i32_1 = arith.constant 0 : i32
    return %c0_i32, %c0_i32_0 : i32, i32
  }
  func.func @transform_6(%arg0: i32) -> (i32, i32) {
    %c0_i32 = arith.constant 0 : i32
    %c0_i32_0 = arith.constant 0 : i32
    %c0_i32_1 = arith.constant 0 : i32
    return %c0_i32, %c0_i32_0 : i32, i32
  }
  func.func @transform_7(%arg0: i32) -> (i32, i32) {
    %c0_i32 = arith.constant 0 : i32
    %c0_i32_0 = arith.constant 0 : i32
    %c0_i32_1 = arith.constant 0 : i32
    return %c0_i32, %c0_i32_0 : i32, i32
  }
  func.func @transform_8(%arg0: i32) -> (i32, i32) {
    %c0_i32 = arith.constant 0 : i32
    %c0_i32_0 = arith.constant 0 : i32
    %c0_i32_1 = arith.constant 0 : i32
    return %c0_i32, %c0_i32_0 : i32, i32
  }
  func.func @transform_9(%arg0: i32) -> (i32, i32) {
    %c0_i32 = arith.constant 0 : i32
    %c0_i32_0 = arith.constant 0 : i32
    %c0_i32_1 = arith.constant 0 : i32
    return %c0_i32, %c0_i32_0 : i32, i32
  }
  func.func @transform_10(%arg0: i32) -> (i32, i32) {
    %c0_i32 = arith.constant 0 : i32
    %c0_i32_0 = arith.constant 0 : i32
    %c0_i32_1 = arith.constant 0 : i32
    return %c0_i32, %c0_i32_0 : i32, i32
  }
  func.func @transform_11(%arg0: i32) -> (i32, i32) {
    %c0_i32 = arith.constant 0 : i32
    %c0_i32_0 = arith.constant 0 : i32
    %c0_i32_1 = arith.constant 0 : i32
    return %c0_i32, %c0_i32_0 : i32, i32
  }
  func.func @transform_12(%arg0: i32) -> (i32, i32) {
    %c0_i32 = arith.constant 0 : i32
    %c0_i32_0 = arith.constant 0 : i32
    %c0_i32_1 = arith.constant 0 : i32
    return %c0_i32, %c0_i32_0 : i32, i32
  }
}

</mosaic_0001>

<bundles_post_ra>
// kernel: tpu_custom_call.1
= control target key start
LH: loop header
LB: loop body
LE: loop exit
PB: predicated region body
PF: predicated region fallthrough
CT: control target
= control target key end

     0   :  { %18 = vsyncpa [#allocation3], 0  ;;  %s5650_s0 = inlined_call_operand.hbm [shape: f32[8,256], index: 0, kind: input, shape index: {}, may-alias: {0,11}]   ;;  %s5651_s1 = inlined_call_operand.hbm [shape: f32[32,256], index: 1, kind: input, shape index: {}, may-alias: {1,12}]   ;;  %s5652_s2 = inlined_call_operand.vmem [shape: f32[32,8], index: 2, kind: input, shape index: {}]   ;;  %s5653_s3 = inlined_call_operand.vmem [shape: f32[32,8], index: 3, kind: input, shape index: {}]   ;;  %s5654_s4 = inlined_call_operand.vmem [shape: f32[8,32], index: 4, kind: input, shape index: {}]   ;;  %s5655_s5 = inlined_call_operand.vmem [shape: f32[32,32], index: 5, kind: input, shape index: {}]   ;;  %s5656_s6 = inlined_call_operand.vmem [shape: f32[8,8], index: 6, kind: input, shape index: {}]   ;;  %s5657_s7 = inlined_call_operand.hbm [shape: f32[256,1024], index: 7, kind: input, shape index: {}]   ;;  %s5658_s8 = inlined_call_operand.hbm [shape: f32[256,256], index: 8, kind: input, shape index: {}]   ;;  %s5659_s9 = inlined_call_operand.hbm [shape: f32[256,1024], index: 9, kind: input, shape index: {}]   ;;  %s5660_s10 = inlined_call_operand.hbm [shape: f32[256,256], index: 10, kind: input, shape index: {}]   ;;  %s5661_s11 = inlined_call_operand.hbm [shape: f32[8,256], index: 11, kind: output, shape index: {0}, may-alias: {0,11}]   ;;  %s5662_s12 = inlined_call_operand.hbm [shape: f32[32,256], index: 12, kind: output, shape index: {1}, may-alias: {1,12}]  }
   0x1   :  { %19 = vsyncpa [#allocation6], 0 }
   0x2   :  { %20 = vsyncpa [#allocation9], 0 }
   0x3   :  { %21 = vsyncpa [#allocation12], 0 }
   0x4   :  { %22 = vsyncpa [#allocation4], 0 }
   0x5   :  { %23 = vsyncpa [#allocation15], 0  ;;  %s4945_s21 = smov [#allocation5]   ;;  %s4757_s25 = scalar_lea.hbm %s5651_s1, 1024 }
   0x6   :  { %s39_s22 = sshll.u32 %s4945_s21, 4  ;;  %p4758_p0 = scmp.ne.s32.totalorder %s5651_s1, %s4757_s25  ;;  %s40_s22 = int_to_ptr.vmem [resolvable:$true] %s39_s22 }
   0x7   :  { %p4761_p1 = scmp.lt.u32.totalorder %s4757_s25, %s5651_s1 }
   0x9   :  { %p4763_p2 = pnand %p4761_p1, %p4758_p0 }
   0xb   :  { %4766 = shalt.err (!%p4763_p2)
}
   0xc   :  { %s4767_s30 = scalar_lea.vmem %s40_s22, 1024  ;;  %p4772_p4 = scmp.lt.s32.totalorder %s40_s22, %s40_s22 }
   0xd   :  { %p4768_p3 = scmp.ne.s32.totalorder %s40_s22, %s4767_s30  ;;  %p4773_p5 = scmp.lt.s32.totalorder %s4767_s30, %s4767_s30 }
   0xf   :  { %p4774_p6 = por %p4773_p5, %p4772_p4 }
  0x11   :  { %p4775_p7 = pnand %p4774_p6, %p4768_p3 }
  0x13   :  { %4778 = shalt.err (!%p4775_p7)
}
  0x14   :  { %s4946_s13 = smov 256   ;;  %s4947_s14 = smov 16  }
  0x15   :  { %45 = dma.hbm_to_vmem [thread:$0]  %s5651_s1, 1024, %s40_s22, [#allocation6], %s4946_s13, %s4946_s13, %s4947_s14  }
  0x16   :  { %s4948_s17 = smov [#allocation8]   ;;  %s4949_s19 = smov [#allocation2]  }
  0x17   :  { %s73_s18 = sshll.u32 %s4948_s17, 4  ;;  %s30_s20 = sshll.u32 %s4949_s19, 4  ;;  %s74_s18 = int_to_ptr.vmem [resolvable:$true] %s73_s18  ;;  %s31_s20 = int_to_ptr.vmem [resolvable:$true] %s30_s20 }
  0x18   :  { %s4779_s24 = scalar_lea.hbm %s5658_s8, 8192 }
  0x19   :  { %p4780_p8 = scmp.ne.s32.totalorder %s5658_s8, %s4779_s24  ;;  %p4783_p9 = scmp.lt.u32.totalorder %s4779_s24, %s5658_s8 }
  0x1b   :  { %p4785_p10 = pnand %p4783_p9, %p4780_p8 }
  0x1d   :  { %4788 = shalt.err (!%p4785_p10)
}
  0x1e   :  { %s4789_s1 = scalar_lea.vmem %s74_s18, 8192  ;;  %p4794_p12 = scmp.lt.s32.totalorder %s74_s18, %s74_s18 }
  0x1f   :  { %p4790_p11 = scmp.ne.s32.totalorder %s74_s18, %s4789_s1  ;;  %p4795_p13 = scmp.lt.s32.totalorder %s4789_s1, %s4789_s1 }
  0x21   :  { %p4796_p0 = por %p4795_p13, %p4794_p12 }
  0x23   :  { %p4797_p1 = pnand %p4796_p0, %p4790_p11 }
  0x25   :  { %4800 = shalt.err (!%p4797_p1)
}
  0x26   :  { %79 = dma.hbm_to_vmem [thread:$0]  %s5658_s8, 8192, %s74_s18, [#allocation9], %s4946_s13, %s4946_s13, %s4947_s14  }
  0x27   :  { %s4801_s16 = scalar_lea.hbm %s5650_s0, 256 }
  0x28   :  { %p4802_p2 = scmp.ne.s32.totalorder %s5650_s0, %s4801_s16  ;;  %p4805_p3 = scmp.lt.u32.totalorder %s4801_s16, %s5650_s0 }
  0x2a   :  { %p4807_p4 = pnand %p4805_p3, %p4802_p2 }
  0x2c   :  { %4810 = shalt.err (!%p4807_p4)
}
  0x2d   :  { %s4811_s24 = scalar_lea.vmem %s31_s20, 256  ;;  %p4816_p6 = scmp.lt.s32.totalorder %s31_s20, %s31_s20 }
  0x2e   :  { %p4812_p5 = scmp.ne.s32.totalorder %s31_s20, %s4811_s24  ;;  %p4817_p7 = scmp.lt.s32.totalorder %s4811_s24, %s4811_s24 }
  0x30   :  { %p4818_p8 = por %p4817_p7, %p4816_p6 }
  0x32   :  { %p4819_p9 = pnand %p4818_p8, %p4812_p5 }
  0x34   :  { %4822 = shalt.err (!%p4819_p9)
}
  0x35   :  { %33 = dma.hbm_to_vmem [thread:$0]  %s5650_s0, 256, %s31_s20, [#allocation3]  }
  0x36   :  { %s4950_s25 = smov [#allocation7]   ;;  %s4823_s1 = scalar_lea.hbm %s5657_s7, 32768 }
  0x37   :  { %s61_s26 = sshll.u32 %s4950_s25, 4  ;;  %p4824_p10 = scmp.ne.s32.totalorder %s5657_s7, %s4823_s1  ;;  %s62_s26 = int_to_ptr.vmem [resolvable:$true] %s61_s26 }
  0x38   :  { %p4827_p11 = scmp.lt.u32.totalorder %s4823_s1, %s5657_s7 }
  0x3a   :  { %p4829_p12 = pnand %p4827_p11, %p4824_p10 }
  0x3c   :  { %4832 = shalt.err (!%p4829_p12)
}
  0x3d   :  { %s4833_s16 = scalar_lea.vmem %s62_s26, 32768  ;;  %p4838_p0 = scmp.lt.s32.totalorder %s62_s26, %s62_s26 }
  0x3e   :  { %p4834_p13 = scmp.ne.s32.totalorder %s62_s26, %s4833_s16  ;;  %p4839_p1 = scmp.lt.s32.totalorder %s4833_s16, %s4833_s16 }
  0x40   :  { %p4840_p2 = por %p4839_p1, %p4838_p0 }
  0x42   :  { %p4841_p3 = pnand %p4840_p2, %p4834_p13 }
  0x44   :  { %4844 = shalt.err (!%p4841_p3)
}
  0x45   :  { %s4951_s0 = smov 1024   ;;  %s4952_s20 = smov 64  }
  0x46   :  { %67 = dma.hbm_to_vmem [thread:$0]  %s5657_s7, 32768, %s62_s26, [#allocation6], %s4951_s0, %s4951_s0, %s4952_s20  }
  0x47   :  { %s4953_s21 = smov [#allocation10]   ;;  %s4954_s24 = smov [#allocation11]  }
  0x48   :  { %s85_s23 = sshll.u32 %s4953_s21, 4  ;;  %s97_s8 = sshll.u32 %s4954_s24, 4  ;;  %s86_s23 = int_to_ptr.vmem [resolvable:$true] %s85_s23  ;;  %s5079_s8 = int_to_ptr.vmem [resolvable:$true] %s97_s8 }
  0x49   :  { %s4845_s27 = scalar_lea.hbm %s5659_s9, 32768 }
  0x4a   :  { %p4846_p4 = scmp.ne.s32.totalorder %s5659_s9, %s4845_s27  ;;  %p4849_p5 = scmp.lt.u32.totalorder %s4845_s27, %s5659_s9 }
  0x4c   :  { %p4851_p6 = pnand %p4849_p5, %p4846_p4 }
  0x4e   :  { %4854 = shalt.err (!%p4851_p6)
}
  0x4f   :  { %s4855_s7 = scalar_lea.vmem %s86_s23, 32768  ;;  %p4860_p8 = scmp.lt.s32.totalorder %s86_s23, %s86_s23 }
  0x50   :  { %p4856_p7 = scmp.ne.s32.totalorder %s86_s23, %s4855_s7  ;;  %p4861_p9 = scmp.lt.s32.totalorder %s4855_s7, %s4855_s7 }
  0x52   :  { %p4862_p10 = por %p4861_p9, %p4860_p8 }
  0x54   :  { %p4863_p11 = pnand %p4862_p10, %p4856_p7 }
  0x56   :  { %4866 = shalt.err (!%p4863_p11)
}
  0x57   :  { %91 = dma.hbm_to_vmem [thread:$0]  %s5659_s9, 32768, %s86_s23, [#allocation9], %s4951_s0, %s4951_s0, %s4952_s20  }
  0x58   :  { %s4867_s17 = scalar_lea.hbm %s5660_s10, 8192 }
  0x59   :  { %p4868_p12 = scmp.ne.s32.totalorder %s5660_s10, %s4867_s17  ;;  %p4871_p13 = scmp.lt.u32.totalorder %s4867_s17, %s5660_s10 }
  0x5b   :  { %p4873_p0 = pnand %p4871_p13, %p4868_p12 }
  0x5d   :  { %4876 = shalt.err (!%p4873_p0)
}
  0x5e   :  { %s4877_s25 = scalar_lea.vmem %s5079_s8, 8192  ;;  %p4882_p2 = scmp.lt.s32.totalorder %s5079_s8, %s5079_s8 }
  0x5f   :  { %p4878_p1 = scmp.ne.s32.totalorder %s5079_s8, %s4877_s25  ;;  %p4883_p3 = scmp.lt.s32.totalorder %s4877_s25, %s4877_s25 }
  0x61   :  { %p4884_p4 = por %p4883_p3, %p4882_p2 }
  0x63   :  { %p4885_p5 = pnand %p4884_p4, %p4878_p1 }
  0x65   :  { %4888 = shalt.err (!%p4885_p5)
}
  0x66   :  { %103 = dma.hbm_to_vmem [thread:$0]  %s5660_s10, 8192, %s5079_s8, [#allocation12], %s4946_s13, %s4946_s13, %s4947_s14  }
  0x67   :  { %4933 = dma.done.wait [#allocation3], 256  }
  0x68   :  { %4934 = vsyncadd [#allocation3], 4294967040 }
  0x69   :  { %4935 = dma.done.wait [#allocation6], 33792  }
  0x6a   :  { %4936 = vsyncadd [#allocation6], 4294933504 }
  0x6b   :  { %4937 = dma.done.wait [#allocation9], 40960  }
  0x6c   :  { %4938 = vsyncadd [#allocation9], 4294926336 }
  0x6d   :  { %4939 = dma.done.wait [#allocation12], 8192  }
  0x6e   :  { %4940 = vsyncadd [#allocation12], 4294959104  ;;  %v149_v0 = vld [vmem:[#allocation7 + $0x18] sm:$0xff]  ;;  %v148_v2 = vld [vmem:[#allocation7 + $0x10] sm:$0xff]  ;;  %vm839_vm0 = vcmask 64512   ;;  %vm1082_vm1 = vcmask 261120  }
  0x6f   :  { %v157_v1 = vld [vmem:[#allocation7 + $0x58] sm:$0xff]  ;;  %v156_v4 = vld [vmem:[#allocation7 + $0x50] sm:$0xff]  ;;  %v147_v18 = vld [vmem:[#allocation7 + $0x8] sm:$0xff]  ;;  %vm4957_vm2 = vmmov 0  }
  0x70   :  { %v3958_v3 = vpack.c.bf16 %v157_v1, %v149_v0  ;;  %v165_v5 = vld [vmem:[#allocation7 + $0x98] sm:$0xff]  ;;  %v3960_v7 = vpack.c.bf16 %v156_v4, %v148_v2  ;;  %v164_v9 = vld [vmem:[#allocation7 + $0x90] sm:$0xff]  ;;  %v155_v19 = vld [vmem:[#allocation7 + $0x48] sm:$0xff] }
  0x71   :  { %v173_v6 = vld [vmem:[#allocation7 + $0xd8] sm:$0xff]  ;;  %v172_v10 = vld [vmem:[#allocation7 + $0xd0] sm:$0xff]  ;;  %v3894_v21 = vpack.c.bf16 %v155_v19, %v147_v18  ;;  %v146_v22 = vld [vmem:[#allocation7] sm:$0xff] }
  0x72   :  { %v3962_v8 = vpack.c.bf16 %v173_v6, %v165_v5  ;;  %v181_v11 = vld [vmem:[#allocation7 + $0x118] sm:$0xff]  ;;  %3959 = vmatprep.subr.bf16.mxu1 %v3958_v3  ;;  %v3964_v13 = vpack.c.bf16 %v172_v10, %v164_v9  ;;  %v180_v14 = vld [vmem:[#allocation7 + $0x110] sm:$0xff]  ;;  %v154_v23 = vld [vmem:[#allocation7 + $0x40] sm:$0xff] }
  0x73   :  { %v189_v12 = vld [vmem:[#allocation7 + $0x158] sm:$0xff]  ;;  %3961 = vmatpush1.bf16.msra.mxu1 %v3960_v7  ;;  %v188_v15 = vld [vmem:[#allocation7 + $0x150] sm:$0xff]  ;;  %v3896_v24 = vpack.c.bf16 %v154_v23, %v146_v22  ;;  %3895 = vmatprep.subr.bf16.mxu0 %v3894_v21  ;;  %v163_v26 = vld [vmem:[#allocation7 + $0x88] sm:$0xff] }
  0x74   :  { %3963 = vmatprep.subr.bf16.mxu1 %v3962_v8  ;;  %v3966_v16 = vpack.c.bf16 %v189_v12, %v181_v11  ;;  %v197_v17 = vld [vmem:[#allocation7 + $0x198] sm:$0xff]  ;;  %v3968_v25 = vpack.c.bf16 %v188_v15, %v180_v14  ;;  %v171_v27 = vld [vmem:[#allocation7 + $0xc8] sm:$0xff]  ;;  %v162_v28 = vld [vmem:[#allocation7 + $0x80] sm:$0xff] }
  0x75   :  { %v205_v20 = vld [vmem:[#allocation7 + $0x1d8] sm:$0xff]  ;;  %v196_v30 = vld [vmem:[#allocation7 + $0x190] sm:$0xff]  ;;  %3897 = vmatpush1.bf16.msra.mxu0 %v3896_v24  ;;  %v3898_v32 = vpack.c.bf16 %v171_v27, %v163_v26  ;;  %v170_v33 = vld [vmem:[#allocation7 + $0xc0] sm:$0xff] }
  0x76   :  { %v3970_v29 = vpack.c.bf16 %v205_v20, %v197_v17  ;;  %v204_v31 = vld [vmem:[#allocation7 + $0x1d0] sm:$0xff]  ;;  %v213_v34 = vld [vmem:[#allocation7 + $0x218] sm:$0xff]  ;;  %v3900_v36 = vpack.c.bf16 %v170_v33, %v162_v28  ;;  %v179_v37 = vld [vmem:[#allocation7 + $0x108] sm:$0xff] }
  0x77   :  { %3965 = vmatpush1.bf16.msra.mxu1 %v3964_v13  ;;  %v221_v35 = vld [vmem:[#allocation7 + $0x258] sm:$0xff]  ;;  %3899 = vmatprep.subr.bf16.mxu0 %v3898_v32  ;;  %v187_v38 = vld [vmem:[#allocation7 + $0x148] sm:$0xff]  ;;  %v178_v39 = vld [vmem:[#allocation7 + $0x100] sm:$0xff]  ;;  %v3972_v41 = vpack.c.bf16 %v204_v31, %v196_v30 }
  0x78   :  { %3967 = vmatprep.subr.bf16.mxu1 %v3966_v16  ;;  %v186_v40 = vld [vmem:[#allocation7 + $0x140] sm:$0xff]  ;;  %v212_v42 = vld [vmem:[#allocation7 + $0x210] sm:$0xff]  ;;  %v3902_v44 = vpack.c.bf16 %v187_v38, %v179_v37  ;;  %v3974_v45 = vpack.c.bf16 %v221_v35, %v213_v34  ;;  %v229_v46 = vld [vmem:[#allocation7 + $0x298] sm:$0xff] }
  0x79   :  { %v220_v43 = vld [vmem:[#allocation7 + $0x250] sm:$0xff]  ;;  %3901 = vmatpush1.bf16.msra.mxu0 %v3900_v36  ;;  %v3904_v47 = vpack.c.bf16 %v186_v40, %v178_v39  ;;  %v195_v48 = vld [vmem:[#allocation7 + $0x188] sm:$0xff]  ;;  %v237_v50 = vld [vmem:[#allocation7 + $0x2d8] sm:$0xff] }
  0x7a   :  { %v203_v49 = vld [vmem:[#allocation7 + $0x1c8] sm:$0xff]  ;;  %3903 = vmatprep.subr.bf16.mxu0 %v3902_v44  ;;  %v194_v52 = vld [vmem:[#allocation7 + $0x180] sm:$0xff]  ;;  %v3976_v54 = vpack.c.bf16 %v220_v43, %v212_v42  ;;  %v3978_v57 = vpack.c.bf16 %v237_v50, %v229_v46  ;;  %v228_v58 = vld [vmem:[#allocation7 + $0x290] sm:$0xff] }
  0x7b   :  { %3969 = vmatpush1.bf16.msra.mxu1 %v3968_v25  ;;  %v3906_v51 = vpack.c.bf16 %v203_v49, %v195_v48  ;;  %v202_v53 = vld [vmem:[#allocation7 + $0x1c0] sm:$0xff]  ;;  %v211_v55 = vld [vmem:[#allocation7 + $0x208] sm:$0xff]  ;;  %v236_v59 = vld [vmem:[#allocation7 + $0x2d0] sm:$0xff] }
  0x7c   :  { %3971 = vmatprep.subr.bf16.mxu1 %v3970_v29  ;;  %v219_v56 = vld [vmem:[#allocation7 + $0x248] sm:$0xff]  ;;  %v245_v60 = vld [vmem:[#allocation7 + $0x318] sm:$0xff]  ;;  %v3908_v61 = vpack.c.bf16 %v202_v53, %v194_v52  ;;  %v210_v0 = vld [vmem:[#allocation7 + $0x200] sm:$0xff]  ;;  %v3980_v4 = vpack.c.bf16 %v236_v59, %v228_v58 }
  0x7d   :  { %3905 = vmatpush1.bf16.msra.mxu0 %v3904_v47  ;;  %v253_v62 = vld [vmem:[#allocation7 + $0x358] sm:$0xff]  ;;  %v3910_v63 = vpack.c.bf16 %v219_v56, %v211_v55  ;;  %v218_v1 = vld [vmem:[#allocation7 + $0x240] sm:$0xff]  ;;  %v227_v2 = vld [vmem:[#allocation7 + $0x288] sm:$0xff] }
  0x7e   :  { %3907 = vmatprep.subr.bf16.mxu0 %v3906_v51  ;;  %v235_v3 = vld [vmem:[#allocation7 + $0x2c8] sm:$0xff]  ;;  %v3982_v5 = vpack.c.bf16 %v253_v62, %v245_v60  ;;  %v244_v6 = vld [vmem:[#allocation7 + $0x310] sm:$0xff]  ;;  %v261_v8 = vld [vmem:[#allocation7 + $0x398] sm:$0xff]  ;;  %v3912_v9 = vpack.c.bf16 %v218_v1, %v210_v0 }
  0x7f   :  { %3973 = vmatpush1.bf16.msra.mxu1 %v3972_v41  ;;  %v252_v7 = vld [vmem:[#allocation7 + $0x350] sm:$0xff]  ;;  %v269_v10 = vld [vmem:[#allocation7 + $0x3d8] sm:$0xff]  ;;  %v3914_v11 = vpack.c.bf16 %v235_v3, %v227_v2  ;;  %v226_v12 = vld [vmem:[#allocation7 + $0x280] sm:$0xff] }
  0x80   :  { %3975 = vmatprep.subr.bf16.mxu1 %v3974_v45  ;;  %v234_v13 = vld [vmem:[#allocation7 + $0x2c0] sm:$0xff]  ;;  %v243_v14 = vld [vmem:[#allocation7 + $0x308] sm:$0xff]  ;;  %v3984_v16 = vpack.c.bf16 %v252_v7, %v244_v6  ;;  %v3986_v17 = vpack.c.bf16 %v269_v10, %v261_v8  ;;  %v260_v18 = vld [vmem:[#allocation7 + $0x390] sm:$0xff] }
  0x81   :  { %3909 = vmatpush1.bf16.msra.mxu0 %v3908_v61  ;;  %v251_v15 = vld [vmem:[#allocation7 + $0x348] sm:$0xff]  ;;  %v268_v19 = vld [vmem:[#allocation7 + $0x3d0] sm:$0xff]  ;;  %v277_v20 = vld [vmem:[#allocation7 + $0x418] sm:$0xff]  ;;  %v3916_v21 = vpack.c.bf16 %v234_v13, %v226_v12 }
  0x82   :  { %3911 = vmatprep.subr.bf16.mxu0 %v3910_v63  ;;  %v285_v22 = vld [vmem:[#allocation7 + $0x458] sm:$0xff]  ;;  %v3918_v23 = vpack.c.bf16 %v251_v15, %v243_v14  ;;  %v242_v24 = vld [vmem:[#allocation7 + $0x300] sm:$0xff]  ;;  %v259_v26 = vld [vmem:[#allocation7 + $0x388] sm:$0xff]  ;;  %v3988_v28 = vpack.c.bf16 %v268_v19, %v260_v18 }
  0x83   :  { %3977 = vmatpush1.bf16.msra.mxu1 %v3976_v54  ;;  %v250_v25 = vld [vmem:[#allocation7 + $0x340] sm:$0xff]  ;;  %v267_v27 = vld [vmem:[#allocation7 + $0x3c8] sm:$0xff]  ;;  %v3990_v29 = vpack.c.bf16 %v285_v22, %v277_v20  ;;  %v276_v30 = vld [vmem:[#allocation7 + $0x410] sm:$0xff] }
  0x84   :  { %3979 = vmatprep.subr.bf16.mxu1 %v3978_v57  ;;  %v284_v31 = vld [vmem:[#allocation7 + $0x450] sm:$0xff]  ;;  %v293_v32 = vld [vmem:[#allocation7 + $0x498] sm:$0xff]  ;;  %v3920_v33 = vpack.c.bf16 %v250_v25, %v242_v24  ;;  %v3922_v35 = vpack.c.bf16 %v267_v27, %v259_v26  ;;  %v258_v36 = vld [vmem:[#allocation7 + $0x380] sm:$0xff] }
  0x85   :  { %3913 = vmatpush1.bf16.msra.mxu0 %v3912_v9  ;;  %v301_v34 = vld [vmem:[#allocation7 + $0x4d8] sm:$0xff]  ;;  %v266_v37 = vld [vmem:[#allocation7 + $0x3c0] sm:$0xff]  ;;  %v275_v38 = vld [vmem:[#allocation7 + $0x408] sm:$0xff]  ;;  %v3992_v40 = vpack.c.bf16 %v284_v31, %v276_v30 }
  0x86   :  { %3915 = vmatprep.subr.bf16.mxu0 %v3914_v11  ;;  %v283_v39 = vld [vmem:[#allocation7 + $0x448] sm:$0xff]  ;;  %v3994_v41 = vpack.c.bf16 %v301_v34, %v293_v32  ;;  %v292_v42 = vld [vmem:[#allocation7 + $0x490] sm:$0xff]  ;;  %v309_v44 = vld [vmem:[#allocation7 + $0x518] sm:$0xff]  ;;  %v3924_v45 = vpack.c.bf16 %v266_v37, %v258_v36 }
  0x87   :  { %3981 = vmatpush1.bf16.msra.mxu1 %v3980_v4  ;;  %v300_v43 = vld [vmem:[#allocation7 + $0x4d0] sm:$0xff]  ;;  %v317_v46 = vld [vmem:[#allocation7 + $0x558] sm:$0xff]  ;;  %v3926_v47 = vpack.c.bf16 %v283_v39, %v275_v38  ;;  %v274_v48 = vld [vmem:[#allocation7 + $0x400] sm:$0xff] }
  0x88   :  { %3983 = vmatprep.subr.bf16.mxu1 %v3982_v5  ;;  %v282_v49 = vld [vmem:[#allocation7 + $0x440] sm:$0xff]  ;;  %v291_v50 = vld [vmem:[#allocation7 + $0x488] sm:$0xff]  ;;  %v3996_v52 = vpack.c.bf16 %v300_v43, %v292_v42  ;;  %v308_v53 = vld [vmem:[#allocation7 + $0x510] sm:$0xff]  ;;  %v3998_v54 = vpack.c.bf16 %v317_v46, %v309_v44 }
  0x89   :  { %3917 = vmatpush1.bf16.msra.mxu0 %v3916_v21  ;;  %v299_v51 = vld [vmem:[#allocation7 + $0x4c8] sm:$0xff]  ;;  %v316_v55 = vld [vmem:[#allocation7 + $0x550] sm:$0xff]  ;;  %v325_v56 = vld [vmem:[#allocation7 + $0x598] sm:$0xff]  ;;  %v3928_v58 = vpack.c.bf16 %v282_v49, %v274_v48 }
  0x8a   :  { %3919 = vmatprep.subr.bf16.mxu0 %v3918_v23  ;;  %v333_v57 = vld [vmem:[#allocation7 + $0x5d8] sm:$0xff]  ;;  %v3930_v59 = vpack.c.bf16 %v299_v51, %v291_v50  ;;  %v290_v60 = vld [vmem:[#allocation7 + $0x480] sm:$0xff]  ;;  %v307_v63 = vld [vmem:[#allocation7 + $0x508] sm:$0xff]  ;;  %v4000_v1 = vpack.c.bf16 %v316_v55, %v308_v53 }
  0x8b   :  { %3985 = vmatpush1.bf16.msra.mxu1 %v3984_v16  ;;  %v298_v61 = vld [vmem:[#allocation7 + $0x4c0] sm:$0xff]  ;;  %v5113_v62 = vld [vmem:[#allocation2 + $0x8] sm:$0xff]  ;;  %v315_v0 = vld [vmem:[#allocation7 + $0x548] sm:$0xff]  ;;  %v4002_v2 = vpack.c.bf16 %v333_v57, %v325_v56 }
  0x8c   :  { %3987 = vmatprep.subr.bf16.mxu1 %v3986_v17  ;;  %601 = vmatprep.mubr.f32.mxu1 %v5113_v62  ;;  %v324_v3 = vld [vmem:[#allocation7 + $0x590] sm:$0xff]  ;;  %v341_v5 = vld [vmem:[#allocation7 + $0x618] sm:$0xff]  ;;  %v3932_v6 = vpack.c.bf16 %v298_v61, %v290_v60  ;;  %v3934_v8 = vpack.c.bf16 %v315_v0, %v307_v63  ;;  %v306_v9 = vld [vmem:[#allocation7 + $0x500] sm:$0xff] }
  0x8d   :  { %3921 = vmatpush1.bf16.msra.mxu0 %v3920_v33  ;;  %530 = vmatprep.mubr.f32.mxu0 %v5113_v62  ;;  %v332_v4 = vld [vmem:[#allocation7 + $0x5d0] sm:$0xff]  ;;  %v349_v7 = vld [vmem:[#allocation7 + $0x658] sm:$0xff]  ;;  %v314_v10 = vld [vmem:[#allocation7 + $0x540] sm:$0xff] }
  0x8e   :  { %3923 = vmatprep.subr.bf16.mxu0 %v3922_v35  ;;  %v323_v11 = vld [vmem:[#allocation7 + $0x588] sm:$0xff]  ;;  %v4004_v13 = vpack.c.bf16 %v332_v4, %v324_v3  ;;  %v4006_v14 = vpack.c.bf16 %v349_v7, %v341_v5  ;;  %v340_v15 = vld [vmem:[#allocation7 + $0x610] sm:$0xff]  ;;  %v357_v17 = vld [vmem:[#allocation7 + $0x698] sm:$0xff]  ;;  %v3936_v18 = vpack.c.bf16 %v314_v10, %v306_v9 }
  0x8f   :  { %3989 = vmatpush1.bf16.msra.mxu1 %v3988_v28  ;;  %v331_v12 = vld [vmem:[#allocation7 + $0x5c8] sm:$0xff]  ;;  %v348_v16 = vld [vmem:[#allocation7 + $0x650] sm:$0xff]  ;;  %v365_v19 = vld [vmem:[#allocation7 + $0x6d8] sm:$0xff] }
  0x90   :  { %3991 = vmatprep.subr.bf16.mxu1 %v3990_v29  ;;  %v3938_v20 = vpack.c.bf16 %v331_v12, %v323_v11  ;;  %v322_v21 = vld [vmem:[#allocation7 + $0x580] sm:$0xff]  ;;  %v339_v23 = vld [vmem:[#allocation7 + $0x608] sm:$0xff]  ;;  %v4008_v25 = vpack.c.bf16 %v348_v16, %v340_v15  ;;  %v4010_v26 = vpack.c.bf16 %v365_v19, %v357_v17  ;;  %v356_v27 = vld [vmem:[#allocation7 + $0x690] sm:$0xff] }
  0x91   :  { %3925 = vmatpush1.bf16.msra.mxu0 %v3924_v45  ;;  %v330_v22 = vld [vmem:[#allocation7 + $0x5c0] sm:$0xff]  ;;  %v347_v24 = vld [vmem:[#allocation7 + $0x648] sm:$0xff]  ;;  %v364_v28 = vld [vmem:[#allocation7 + $0x6d0] sm:$0xff] }
  0x92   :  { %3927 = vmatprep.subr.bf16.mxu0 %v3926_v47  ;;  %v373_v29 = vld [vmem:[#allocation7 + $0x718] sm:$0xff]  ;;  %v3940_v30 = vpack.c.bf16 %v330_v22, %v322_v21  ;;  %v3942_v32 = vpack.c.bf16 %v347_v24, %v339_v23  ;;  %v338_v33 = vld [vmem:[#allocation7 + $0x600] sm:$0xff]  ;;  %v355_v35 = vld [vmem:[#allocation7 + $0x688] sm:$0xff]  ;;  %v4012_v37 = vpack.c.bf16 %v364_v28, %v356_v27 }
  0x93   :  { %3993 = vmatpush1.bf16.msra.mxu1 %v3992_v40  ;;  %v381_v31 = vld [vmem:[#allocation7 + $0x758] sm:$0xff]  ;;  %v346_v34 = vld [vmem:[#allocation7 + $0x640] sm:$0xff]  ;;  %v363_v36 = vld [vmem:[#allocation7 + $0x6c8] sm:$0xff] }
  0x94   :  { %3995 = vmatprep.subr.bf16.mxu1 %v3994_v41  ;;  %v4014_v38 = vpack.c.bf16 %v381_v31, %v373_v29  ;;  %v372_v39 = vld [vmem:[#allocation7 + $0x710] sm:$0xff]  ;;  %v389_v41 = vld [vmem:[#allocation7 + $0x798] sm:$0xff]  ;;  %v3944_v42 = vpack.c.bf16 %v346_v34, %v338_v33  ;;  %v3946_v44 = vpack.c.bf16 %v363_v36, %v355_v35  ;;  %v354_v45 = vld [vmem:[#allocation7 + $0x680] sm:$0xff] }
  0x95   :  { %3929 = vmatpush1.bf16.msra.mxu0 %v3928_v58  ;;  %v380_v40 = vld [vmem:[#allocation7 + $0x750] sm:$0xff]  ;;  %v397_v43 = vld [vmem:[#allocation7 + $0x7d8] sm:$0xff]  ;;  %v362_v46 = vld [vmem:[#allocation7 + $0x6c0] sm:$0xff] }
  0x96   :  { %3931 = vmatprep.subr.bf16.mxu0 %v3930_v59  ;;  %v371_v47 = vld [vmem:[#allocation7 + $0x708] sm:$0xff]  ;;  %v4016_v49 = vpack.c.bf16 %v380_v40, %v372_v39  ;;  %v4018_v50 = vpack.c.bf16 %v397_v43, %v389_v41  ;;  %v388_v51 = vld [vmem:[#allocation7 + $0x790] sm:$0xff]  ;;  %v3948_v53 = vpack.c.bf16 %v362_v46, %v354_v45  ;;  %v370_v55 = vld [vmem:[#allocation7 + $0x700] sm:$0xff] }
  0x97   :  { %3997 = vmatpush1.bf16.msra.mxu1 %v3996_v52  ;;  %v379_v48 = vld [vmem:[#allocation7 + $0x748] sm:$0xff]  ;;  %v396_v52 = vld [vmem:[#allocation7 + $0x7d0] sm:$0xff]  ;;  %v378_v56 = vld [vmem:[#allocation7 + $0x740] sm:$0xff] }
  0x98   :  { %3999 = vmatprep.subr.bf16.mxu1 %v3998_v54  ;;  %v3950_v54 = vpack.c.bf16 %v379_v48, %v371_v47  ;;  %v387_v57 = vld [vmem:[#allocation7 + $0x788] sm:$0xff]  ;;  %v4020_v59 = vpack.c.bf16 %v396_v52, %v388_v51  ;;  %v3952_v60 = vpack.c.bf16 %v378_v56, %v370_v55  ;;  %v386_v63 = vld [vmem:[#allocation7 + $0x780] sm:$0xff]  ;;  %v5117_v3 = vld [vmem:[#allocation2] sm:$0xff] }
  0x99   :  { %3933 = vmatpush1.bf16.msra.mxu0 %v3932_v6  ;;  %v395_v58 = vld [vmem:[#allocation7 + $0x7c8] sm:$0xff]  ;;  %v394_v0 = vld [vmem:[#allocation7 + $0x7c0] sm:$0xff] }
  0x9a   :  { %3935 = vmatprep.subr.bf16.mxu0 %v3934_v8  ;;  %v3954_v61 = vpack.c.bf16 %v395_v58, %v387_v57  ;;  %v3956_v4 = vpack.c.bf16 %v394_v0, %v386_v63  ;;  %v150_v6 = vld [vmem:[#allocation7 + $0x20] sm:$0xff]  ;;  %v167_v8 = vld [vmem:[#allocation7 + $0xa8] sm:$0xff] }
  0x9b   :  { %4001 = vmatpush1.bf16.msra.mxu1 %v4000_v1  ;;  %v151_v1 = vld [vmem:[#allocation7 + $0x28] sm:$0xff]  ;;  %v158_v7 = vld [vmem:[#allocation7 + $0x60] sm:$0xff] }
  0x9c   :  { %4003 = vmatprep.subr.bf16.mxu1 %v4002_v2  ;;  %v159_v2 = vld [vmem:[#allocation7 + $0x68] sm:$0xff]  ;;  %v4024_v10 = vpack.c.bf16 %v158_v7, %v150_v6  ;;  %v166_v12 = vld [vmem:[#allocation7 + $0xa0] sm:$0xff] }
  0x9d   :  { %3937 = vmatpush1.bf16.msra.mxu0 %v3936_v18  ;;  %v4022_v5 = vpack.c.bf16 %v159_v2, %v151_v1  ;;  %v175_v9 = vld [vmem:[#allocation7 + $0xe8] sm:$0xff]  ;;  %v182_v18 = vld [vmem:[#allocation7 + $0x120] sm:$0xff] }
  0x9e   :  { %3939 = vmatprep.subr.bf16.mxu0 %v3938_v20  ;;  %v4026_v11 = vpack.c.bf16 %v175_v9, %v167_v8  ;;  %v191_v15 = vld [vmem:[#allocation7 + $0x168] sm:$0xff]  ;;  %v190_v19 = vld [vmem:[#allocation7 + $0x160] sm:$0xff] }
  0x9f   :  { %4005 = vmatpush1.bf16.msra.mxu1 %v4004_v13  ;;  %v174_v13 = vld [vmem:[#allocation7 + $0xe0] sm:$0xff]  ;;  %v199_v20 = vld [vmem:[#allocation7 + $0x1a8] sm:$0xff]  ;;  %v4032_v22 = vpack.c.bf16 %v190_v19, %v182_v18 }
  0xa0   :  { %4007 = vmatprep.subr.bf16.mxu1 %v4006_v14  ;;  %v183_v14 = vld [vmem:[#allocation7 + $0x128] sm:$0xff]  ;;  %v4028_v16 = vpack.c.bf16 %v174_v13, %v166_v12  ;;  %v198_v24 = vld [vmem:[#allocation7 + $0x1a0] sm:$0xff] }
  0xa1   :  { %3941 = vmatpush1.bf16.msra.mxu0 %v3940_v30  ;;  %v4030_v17 = vpack.c.bf16 %v191_v15, %v183_v14  ;;  %v207_v21 = vld [vmem:[#allocation7 + $0x1e8] sm:$0xff]  ;;  %v214_v30 = vld [vmem:[#allocation7 + $0x220] sm:$0xff] }
  0xa2   :  { %3943 = vmatprep.subr.bf16.mxu0 %v3942_v32  ;;  %v4034_v23 = vpack.c.bf16 %v207_v21, %v199_v20  ;;  %v223_v27 = vld [vmem:[#allocation7 + $0x268] sm:$0xff]  ;;  %v230_v35 = vld [vmem:[#allocation7 + $0x2a0] sm:$0xff] }
  0xa3   :  { %4009 = vmatpush1.bf16.msra.mxu1 %v4008_v25  ;;  %v206_v25 = vld [vmem:[#allocation7 + $0x1e0] sm:$0xff]  ;;  %v231_v31 = vld [vmem:[#allocation7 + $0x2a8] sm:$0xff] }
  0xa4   :  { %4011 = vmatprep.subr.bf16.mxu1 %v4010_v26  ;;  %v215_v26 = vld [vmem:[#allocation7 + $0x228] sm:$0xff]  ;;  %v4036_v28 = vpack.c.bf16 %v206_v25, %v198_v24  ;;  %v238_v36 = vld [vmem:[#allocation7 + $0x2e0] sm:$0xff] }
  0xa5   :  { %3945 = vmatpush1.bf16.msra.mxu0 %v3944_v42  ;;  %v4038_v29 = vpack.c.bf16 %v223_v27, %v215_v26  ;;  %v239_v32 = vld [vmem:[#allocation7 + $0x2e8] sm:$0xff]  ;;  %v4044_v39 = vpack.c.bf16 %v238_v36, %v230_v35  ;;  %v246_v41 = vld [vmem:[#allocation7 + $0x320] sm:$0xff]  ;;  %v405_v35 = vld [vmem:[#allocation8 + $0x18] sm:$0xff] }
  0xa6   :  { %3947 = vmatprep.subr.bf16.mxu0 %v3946_v44  ;;  %v4042_v34 = vpack.c.bf16 %v239_v32, %v231_v31  ;;  %v254_v42 = vld [vmem:[#allocation7 + $0x360] sm:$0xff]  ;;  %v263_v43 = vld [vmem:[#allocation7 + $0x3a8] sm:$0xff] }
  0xa7   :  { %4013 = vmatpush1.bf16.msra.mxu1 %v4012_v37  ;;  %v247_v37 = vld [vmem:[#allocation7 + $0x328] sm:$0xff]  ;;  %v4048_v45 = vpack.c.bf16 %v254_v42, %v246_v41  ;;  %v262_v47 = vld [vmem:[#allocation7 + $0x3a0] sm:$0xff]  ;;  %v409_v41 = vld [vmem:[#allocation8 + $0x38] sm:$0xff] }
  0xa8   :  { %4015 = vmatprep.subr.bf16.mxu1 %v4014_v38  ;;  %v255_v38 = vld [vmem:[#allocation7 + $0x368] sm:$0xff]  ;;  %v270_v48 = vld [vmem:[#allocation7 + $0x3e0] sm:$0xff] }
  0xa9   :  { %3949 = vmatpush1.bf16.msra.mxu0 %v3948_v53  ;;  %v4046_v40 = vpack.c.bf16 %v255_v38, %v247_v37  ;;  %v271_v44 = vld [vmem:[#allocation7 + $0x3e8] sm:$0xff]  ;;  %v4052_v51 = vpack.c.bf16 %v270_v48, %v262_v47  ;;  %v278_v53 = vld [vmem:[#allocation7 + $0x420] sm:$0xff]  ;;  %v413_v48 = vld [vmem:[#allocation8 + $0x58] sm:$0xff] }
  0xaa   :  { %3951 = vmatprep.subr.bf16.mxu0 %v3950_v54  ;;  %v4050_v46 = vpack.c.bf16 %v271_v44, %v263_v43  ;;  %v286_v54 = vld [vmem:[#allocation7 + $0x460] sm:$0xff]  ;;  %v295_v55 = vld [vmem:[#allocation7 + $0x4a8] sm:$0xff] }
  0xab   :  { %4017 = vmatpush1.bf16.msra.mxu1 %v4016_v49  ;;  %v279_v49 = vld [vmem:[#allocation7 + $0x428] sm:$0xff]  ;;  %v4056_v57 = vpack.c.bf16 %v286_v54, %v278_v53  ;;  %v310_v2 = vld [vmem:[#allocation7 + $0x520] sm:$0xff]  ;;  %v417_v54 = vld [vmem:[#allocation8 + $0x78] sm:$0xff] }
  0xac   :  { %4019 = vmatprep.subr.bf16.mxu1 %v4018_v50  ;;  %v287_v50 = vld [vmem:[#allocation7 + $0x468] sm:$0xff]  ;;  %v326_v9 = vld [vmem:[#allocation7 + $0x5a0] sm:$0xff] }
  0xad   :  { %3953 = vmatpush1.bf16.msra.mxu0 %v3952_v60  ;;  %v4054_v52 = vpack.c.bf16 %v287_v50, %v279_v49  ;;  %v303_v56 = vld [vmem:[#allocation7 + $0x4e8] sm:$0xff]  ;;  %v302_v60 = vld [vmem:[#allocation7 + $0x4e0] sm:$0xff] }
  0xae   :  { %3955 = vmatprep.subr.bf16.mxu0 %v3954_v61  ;;  %v4058_v58 = vpack.c.bf16 %v303_v56, %v295_v55  ;;  %v311_v61 = vld [vmem:[#allocation7 + $0x528] sm:$0xff]  ;;  %v342_v15 = vld [vmem:[#allocation7 + $0x620] sm:$0xff] }
  0xaf   :  { %4021 = vmatpush1.bf16.msra.mxu1 %v4020_v59  ;;  %v294_v59 = vld [vmem:[#allocation7 + $0x4a0] sm:$0xff]  ;;  %v319_v63 = vld [vmem:[#allocation7 + $0x568] sm:$0xff] }
  0xb0   :  { %v4060_v0 = vpack.c.bf16 %v302_v60, %v294_v59  ;;  %v4062_v1 = vpack.c.bf16 %v319_v63, %v311_v61  ;;  %v335_v6 = vld [vmem:[#allocation7 + $0x5e8] sm:$0xff]  ;;  %v358_v21 = vld [vmem:[#allocation7 + $0x6a0] sm:$0xff]  ;;  %v421_v60 = vld [vmem:[#allocation8 + $0x98] sm:$0xff] }
  0xb1   :  { %3957 = vmatpush1.bf16.msra.mxu0 %v3956_v4  ;;  %v318_v4 = vld [vmem:[#allocation7 + $0x560] sm:$0xff]  ;;  %v351_v12 = vld [vmem:[#allocation7 + $0x668] sm:$0xff] }
  0xb2   :  { %602 = vmatmul.mubr.f32.vlgmr.msra.gmra.mrb[0].mxu1 %v5117_v3  ;;  %4023 = vmatprep.subr.bf16.mxu0 %v4022_v5  ;;  %v327_v5 = vld [vmem:[#allocation7 + $0x5a8] sm:$0xff]  ;;  %v4064_v7 = vpack.c.bf16 %v318_v4, %v310_v2  ;;  %v374_v27 = vld [vmem:[#allocation7 + $0x720] sm:$0xff]  ;;  %v425_v4 = vld [vmem:[#allocation8 + $0xb8] sm:$0xff] }
  0xb3   :  { %743 = vmatprep.mubr.f32.mxu1 %v5113_v62  ;;  %v4066_v8 = vpack.c.bf16 %v335_v6, %v327_v5  ;;  %v367_v18 = vld [vmem:[#allocation7 + $0x6e8] sm:$0xff]  ;;  %v390_v32 = vld [vmem:[#allocation7 + $0x7a0] sm:$0xff] }
  0xb4   :  { %531 = vmatmul.mubr.f32.vlgmr.msra.gmra.mrb[0].mxu0 %v5117_v3  ;;  %v383_v24 = vld [vmem:[#allocation7 + $0x768] sm:$0xff]  ;;  %v402_v38 = vld [vmem:[#allocation8] sm:$0xff] }
  0xb5   :  { %4025 = vmatpush1.bf16.msra.mxu0 %v4024_v10  ;;  %672 = vmatprep.mubr.f32.mxu0 %v5113_v62  ;;  %v222_v62 = vld [vmem:[#allocation7 + $0x260] sm:$0xff]  ;;  %v411_v47 = vld [vmem:[#allocation8 + $0x48] sm:$0xff] }
  0xb6   :  { %4027 = vmatprep.subr.bf16.mxu0 %v4026_v11  ;;  %v4040_v33 = vpack.c.bf16 %v222_v62, %v214_v30  ;;  %v334_v10 = vld [vmem:[#allocation7 + $0x5e0] sm:$0xff]  ;;  %v343_v11 = vld [vmem:[#allocation7 + $0x628] sm:$0xff]  ;;  %v4158_v50 = vpack.c.bf16 %v413_v48, %v411_v47 }
  0xb7   :  { %v4068_v13 = vpack.c.bf16 %v334_v10, %v326_v9  ;;  %v4070_v14 = vpack.c.bf16 %v351_v12, %v343_v11  ;;  %v399_v30 = vld [vmem:[#allocation7 + $0x7e8] sm:$0xff]  ;;  %v406_v44 = vld [vmem:[#allocation8 + $0x20] sm:$0xff]  ;;  %v429_v10 = vld [vmem:[#allocation8 + $0xd8] sm:$0xff] }
  0xb8   :  { %v415_v53 = vld [vmem:[#allocation8 + $0x68] sm:$0xff] }
  0xb9   :  { %4029 = vmatpush1.bf16.msra.mxu0 %v4028_v16  ;;  %v350_v16 = vld [vmem:[#allocation7 + $0x660] sm:$0xff]  ;;  %v4162_v56 = vpack.c.bf16 %v417_v54, %v415_v53  ;;  %v419_v59 = vld [vmem:[#allocation8 + $0x88] sm:$0xff] }
  0xba   :  { %4031 = vmatprep.subr.bf16.mxu0 %v4030_v17  ;;  %v359_v17 = vld [vmem:[#allocation7 + $0x6a8] sm:$0xff]  ;;  %v4072_v19 = vpack.c.bf16 %v350_v16, %v342_v15  ;;  %v4166_v63 = vpack.c.bf16 %v421_v60, %v419_v59  ;;  %v433_v16 = vld [vmem:[#allocation8 + $0xf8] sm:$0xff] }
  0xbb   :  { %v4074_v20 = vpack.c.bf16 %v367_v18, %v359_v17  ;;  %v423_v2 = vld [vmem:[#allocation8 + $0xa8] sm:$0xff] }
  0xbc   :  { %v4170_v6 = vpack.c.bf16 %v425_v4, %v423_v2  ;;  %v427_v9 = vld [vmem:[#allocation8 + $0xc8] sm:$0xff] }
  0xbd   :  { %4033 = vmatpush1.bf16.msra.mxu0 %v4032_v22  ;;  %v366_v22 = vld [vmem:[#allocation7 + $0x6e0] sm:$0xff]  ;;  %v4174_v12 = vpack.c.bf16 %v429_v10, %v427_v9  ;;  %v431_v15 = vld [vmem:[#allocation8 + $0xe8] sm:$0xff]  ;;  %v5129_v9 = vld [vmem:[#allocation5 + $0x18] sm:$0xff] }
  0xbe   :  { %4035 = vmatprep.subr.bf16.mxu0 %v4034_v23  ;;  %v375_v23 = vld [vmem:[#allocation7 + $0x728] sm:$0xff]  ;;  %v4076_v25 = vpack.c.bf16 %v366_v22, %v358_v21  ;;  %v4178_v18 = vpack.c.bf16 %v433_v16, %v431_v15  ;;  %v437_v22 = vld [vmem:[#allocation8 + $0x118] sm:$0xff]  ;;  %v5133_v10 = vld [vmem:[#allocation5 + $0x10] sm:$0xff]  ;;  %v4955_v15 = vmov 0.0  }
  0xbf   :  { %v4078_v26 = vpack.c.bf16 %v383_v24, %v375_v23  ;;  %v435_v21 = vld [vmem:[#allocation8 + $0x108] sm:$0xff] }
  0xc0   :  { %v4182_v24 = vpack.c.bf16 %v437_v22, %v435_v21  ;;  %v5168_v22 = vld [vmem:[%s5653_s3 + $0x10] sm:$0xff] }
  0xc1   :  { %4037 = vmatpush1.bf16.msra.mxu0 %v4036_v28  ;;  %v382_v28 = vld [vmem:[#allocation7 + $0x760] sm:$0xff] }
  0xc2   :  { %4039 = vmatprep.subr.bf16.mxu0 %v4038_v29  ;;  %v391_v29 = vld [vmem:[#allocation7 + $0x7a8] sm:$0xff]  ;;  %v4080_v62 = vpack.c.bf16 %v382_v28, %v374_v27  ;;  %v441_v28 = vld [vmem:[#allocation8 + $0x138] sm:$0xff] }
  0xc3   :  { %v4082_v31 = vpack.c.bf16 %v399_v30, %v391_v29  ;;  %v439_v27 = vld [vmem:[#allocation8 + $0x128] sm:$0xff] }
  0xc4   :  { %v4186_v30 = vpack.c.bf16 %v441_v28, %v439_v27  ;;  %v5208_v27 = vld [vmem:[%s5652_s2 + $0x18] sm:$0xff] }
  0xc5   :  { %4041 = vmatpush1.bf16.msra.mxu0 %v4040_v33  ;;  %v398_v33 = vld [vmem:[#allocation7 + $0x7e0] sm:$0xff] }
  0xc6   :  { %4043 = vmatprep.subr.bf16.mxu0 %v4042_v34  ;;  %v403_v34 = vld [vmem:[#allocation8 + $0x8] sm:$0xff]  ;;  %v4084_v36 = vpack.c.bf16 %v398_v33, %v390_v32  ;;  %v445_v33 = vld [vmem:[#allocation8 + $0x158] sm:$0xff] }
  0xc7   :  { %v4150_v37 = vpack.c.bf16 %v405_v35, %v403_v34  ;;  %v443_v32 = vld [vmem:[#allocation8 + $0x148] sm:$0xff] }
  0xc8   :  { %v4190_v35 = vpack.c.bf16 %v445_v33, %v443_v32  ;;  %v160_v33 = vld [vmem:[#allocation7 + $0x70] sm:$0xff] }
  0xc9   :  { %4045 = vmatpush1.bf16.msra.mxu0 %v4044_v39  ;;  %v404_v39 = vld [vmem:[#allocation8 + $0x10] sm:$0xff] }
  0xca   :  { %4047 = vmatprep.subr.bf16.mxu0 %v4046_v40  ;;  %v407_v40 = vld [vmem:[#allocation8 + $0x28] sm:$0xff]  ;;  %v4152_v42 = vpack.c.bf16 %v404_v39, %v402_v38  ;;  %v449_v39 = vld [vmem:[#allocation8 + $0x178] sm:$0xff] }
  0xcb   :  { %v4154_v43 = vpack.c.bf16 %v409_v41, %v407_v40  ;;  %v447_v38 = vld [vmem:[#allocation8 + $0x168] sm:$0xff] }
  0xcc   :  { %v4194_v41 = vpack.c.bf16 %v449_v39, %v447_v38  ;;  %v168_v38 = vld [vmem:[#allocation7 + $0xb0] sm:$0xff] }
  0xcd   :  { %4049 = vmatpush1.bf16.msra.mxu0 %v4048_v45  ;;  %v408_v45 = vld [vmem:[#allocation8 + $0x30] sm:$0xff] }
  0xce   :  { %4051 = vmatprep.subr.bf16.mxu0 %v4050_v46  ;;  %v5123_v46 = vld [vmem:[#allocation5 + $0x8] sm:$0xff]  ;;  %v4156_v49 = vpack.c.bf16 %v408_v45, %v406_v44  ;;  %v453_v45 = vld [vmem:[#allocation8 + $0x198] sm:$0xff]  ;;  %v176_v39 = vld [vmem:[#allocation7 + $0xf0] sm:$0xff] }
  0xcf   :  { %v451_v44 = vld [vmem:[#allocation8 + $0x188] sm:$0xff] }
  0xd0   :  { %v4198_v48 = vpack.c.bf16 %v453_v45, %v451_v44  ;;  %v184_v44 = vld [vmem:[#allocation7 + $0x130] sm:$0xff] }
  0xd1   :  { %4053 = vmatpush1.bf16.msra.mxu0 %v4052_v51  ;;  %v410_v51 = vld [vmem:[#allocation8 + $0x40] sm:$0xff]  ;;  %v192_v45 = vld [vmem:[#allocation7 + $0x170] sm:$0xff] }
  0xd2   :  { %4055 = vmatprep.subr.bf16.mxu0 %v4054_v52  ;;  %v412_v52 = vld [vmem:[#allocation8 + $0x50] sm:$0xff] }
  0xd3   :  { %v4160_v55 = vpack.c.bf16 %v412_v52, %v410_v51  ;;  %v455_v51 = vld [vmem:[#allocation8 + $0x1a8] sm:$0xff]  ;;  %v457_v52 = vld [vmem:[#allocation8 + $0x1b8] sm:$0xff] }
  0xd4   :  { %v4202_v54 = vpack.c.bf16 %v457_v52, %v455_v51  ;;  %v200_v51 = vld [vmem:[#allocation7 + $0x1b0] sm:$0xff] }
  0xd5   :  { %4057 = vmatpush1.bf16.msra.mxu0 %v4056_v57  ;;  %v414_v57 = vld [vmem:[#allocation8 + $0x60] sm:$0xff]  ;;  %v208_v52 = vld [vmem:[#allocation7 + $0x1f0] sm:$0xff] }
  0xd6   :  { %4059 = vmatprep.subr.bf16.mxu0 %v4058_v58  ;;  %v416_v58 = vld [vmem:[#allocation8 + $0x70] sm:$0xff] }
  0xd7   :  { %v4164_v61 = vpack.c.bf16 %v416_v58, %v414_v57  ;;  %v459_v57 = vld [vmem:[#allocation8 + $0x1c8] sm:$0xff]  ;;  %v461_v58 = vld [vmem:[#allocation8 + $0x1d8] sm:$0xff] }
  0xd8   :  { %v4206_v60 = vpack.c.bf16 %v461_v58, %v459_v57  ;;  %v216_v57 = vld [vmem:[#allocation7 + $0x230] sm:$0xff] }
  0xd9   :  { %4061 = vmatpush1.bf16.msra.mxu0 %v4060_v0  ;;  %v418_v0 = vld [vmem:[#allocation8 + $0x80] sm:$0xff]  ;;  %v224_v58 = vld [vmem:[#allocation7 + $0x270] sm:$0xff] }
  0xda   :  { %4063 = vmatprep.subr.bf16.mxu0 %v4062_v1  ;;  %v420_v1 = vld [vmem:[#allocation8 + $0x90] sm:$0xff] }
  0xdb   :  { %v4168_v5 = vpack.c.bf16 %v420_v1, %v418_v0  ;;  %v463_v0 = vld [vmem:[#allocation8 + $0x1e8] sm:$0xff]  ;;  %v465_v1 = vld [vmem:[#allocation8 + $0x1f8] sm:$0xff] }
  0xdc   :  { %v4210_v4 = vpack.c.bf16 %v465_v1, %v463_v0  ;;  %v232_v0 = vld [vmem:[#allocation7 + $0x2b0] sm:$0xff] }
  0xdd   :  { %4065 = vmatpush1.bf16.msra.mxu0 %v4064_v7  ;;  %v422_v7 = vld [vmem:[#allocation8 + $0xa0] sm:$0xff]  ;;  %v240_v1 = vld [vmem:[#allocation7 + $0x2f0] sm:$0xff] }
  0xde   :  { %4067 = vmatprep.subr.bf16.mxu0 %v4066_v8  ;;  %v424_v8 = vld [vmem:[#allocation8 + $0xb0] sm:$0xff] }
  0xdf   :  { %v4172_v11 = vpack.c.bf16 %v424_v8, %v422_v7  ;;  %v5127_v8 = vld [vmem:[#allocation5] sm:$0xff] }
  0xe1   :  { %4069 = vmatpush1.bf16.msra.mxu0 %v4068_v13  ;;  %v426_v13 = vld [vmem:[#allocation8 + $0xc0] sm:$0xff] }
  0xe2   :  { %4071 = vmatprep.subr.bf16.mxu0 %v4070_v14  ;;  %v428_v14 = vld [vmem:[#allocation8 + $0xd0] sm:$0xff] }
  0xe3   :  { %v4176_v17 = vpack.c.bf16 %v428_v14, %v426_v13  ;;  %v5141_v13 = vld [vmem:[#allocation5 + $0x38] sm:$0xff]  ;;  %v5145_v14 = vld [vmem:[#allocation5 + $0x30] sm:$0xff] }
  0xe5   :  { %4073 = vmatpush1.bf16.msra.mxu0 %v4072_v19  ;;  %v430_v19 = vld [vmem:[#allocation8 + $0xe0] sm:$0xff] }
  0xe6   :  { %4075 = vmatprep.subr.bf16.mxu0 %v4074_v20  ;;  %v432_v20 = vld [vmem:[#allocation8 + $0xf0] sm:$0xff] }
  0xe7   :  { %v4180_v23 = vpack.c.bf16 %v432_v20, %v430_v19  ;;  %v5160_v19 = vld [vmem:[%s5653_s3 + $0x8] sm:$0xff] }
  0xe9   :  { %4077 = vmatpush1.bf16.msra.mxu0 %v4076_v25  ;;  %v434_v25 = vld [vmem:[#allocation8 + $0x100] sm:$0xff] }
  0xea   :  { %4079 = vmatprep.subr.bf16.mxu0 %v4078_v26  ;;  %v436_v26 = vld [vmem:[#allocation8 + $0x110] sm:$0xff] }
  0xeb   :  { %v4184_v29 = vpack.c.bf16 %v436_v26, %v434_v25  ;;  %v5192_v25 = vld [vmem:[%s5652_s2 + $0x8] sm:$0xff]  ;;  %v5200_v26 = vld [vmem:[%s5652_s2 + $0x10] sm:$0xff] }
  0xed   :  { %4081 = vmatpush1.bf16.msra.mxu0 %v4080_v62  ;;  %v438_v62 = vld [vmem:[#allocation8 + $0x120] sm:$0xff] }
  0xee   :  { %4083 = vmatprep.subr.bf16.mxu0 %v4082_v31  ;;  %v440_v31 = vld [vmem:[#allocation8 + $0x130] sm:$0xff] }
  0xef   :  { %v4188_v34 = vpack.c.bf16 %v440_v31, %v438_v62  ;;  %v161_v62 = vld [vmem:[#allocation7 + $0x78] sm:$0xff]  ;;  %v152_v31 = vld [vmem:[#allocation7 + $0x30] sm:$0xff] }
  0xf1   :  { %4085 = vmatpush1.bf16.msra.mxu0 %v4084_v36  ;;  %v442_v36 = vld [vmem:[#allocation8 + $0x140] sm:$0xff] }
  0xf2   :  { %4151 = vmatprep.subr.bf16.mxu0 %v4150_v37  ;;  %v444_v37 = vld [vmem:[#allocation8 + $0x150] sm:$0xff] }
  0xf3   :  { %v4192_v40 = vpack.c.bf16 %v444_v37, %v442_v36  ;;  %v4088_v36 = vpack.c.bf16 %v160_v33, %v152_v31  ;;  %v272_v31 = vld [vmem:[#allocation7 + $0x3f0] sm:$0xff]  ;;  %v289_v33 = vld [vmem:[#allocation7 + $0x478] sm:$0xff] }
  0xf4   :  { %673 = vmatmul.mubr.f32.vlgmr.msra.gmra.mrb[2].mxu0 %v5117_v3 }
  0xf5   :  { %4153 = vmatpush1.bf16.msra.mxu0 %v4152_v42  ;;  %814 = vmatprep.mubr.f32.mxu0 %v5123_v46  ;;  %v446_v42 = vld [vmem:[#allocation8 + $0x160] sm:$0xff] }
  0xf6   :  { %4155 = vmatprep.subr.bf16.mxu0 %v4154_v43  ;;  %v448_v43 = vld [vmem:[#allocation8 + $0x170] sm:$0xff] }
  0xf7   :  { %v4196_v47 = vpack.c.bf16 %v448_v43, %v446_v42  ;;  %v4092_v42 = vpack.c.bf16 %v176_v39, %v168_v38  ;;  %v297_v38 = vld [vmem:[#allocation7 + $0x4b8] sm:$0xff] }
  0xf8   :  { %v305_v39 = vld [vmem:[#allocation7 + $0x4f8] sm:$0xff] }
  0xf9   :  { %4157 = vmatpush1.bf16.msra.mxu0 %v4156_v49  ;;  %v450_v49 = vld [vmem:[#allocation8 + $0x180] sm:$0xff] }
  0xfa   :  { %4159 = vmatprep.subr.bf16.mxu0 %v4158_v50  ;;  %v452_v50 = vld [vmem:[#allocation8 + $0x190] sm:$0xff] }
  0xfb   :  { %v4200_v53 = vpack.c.bf16 %v452_v50, %v450_v49  ;;  %v4096_v49 = vpack.c.bf16 %v192_v45, %v184_v44  ;;  %v313_v44 = vld [vmem:[#allocation7 + $0x538] sm:$0xff] }
  0xfc   :  { %v321_v45 = vld [vmem:[#allocation7 + $0x578] sm:$0xff] }
  0xfd   :  { %4161 = vmatpush1.bf16.msra.mxu0 %v4160_v55  ;;  %v454_v55 = vld [vmem:[#allocation8 + $0x1a0] sm:$0xff] }
  0xfe   :  { %4163 = vmatprep.subr.bf16.mxu0 %v4162_v56  ;;  %v456_v56 = vld [vmem:[#allocation8 + $0x1b0] sm:$0xff] }
  0xff   :  { %v4204_v59 = vpack.c.bf16 %v456_v56, %v454_v55  ;;  %v4100_v55 = vpack.c.bf16 %v208_v52, %v200_v51  ;;  %v329_v51 = vld [vmem:[#allocation7 + $0x5b8] sm:$0xff] }
 0x100   :  { %v337_v52 = vld [vmem:[#allocation7 + $0x5f8] sm:$0xff] }
 0x101   :  { %4165 = vmatpush1.bf16.msra.mxu0 %v4164_v61  ;;  %v458_v61 = vld [vmem:[#allocation8 + $0x1c0] sm:$0xff] }
 0x102   :  { %4167 = vmatprep.subr.bf16.mxu0 %v4166_v63  ;;  %v460_v63 = vld [vmem:[#allocation8 + $0x1d0] sm:$0xff] }
 0x103   :  { %v4208_v2 = vpack.c.bf16 %v460_v63, %v458_v61  ;;  %v4104_v61 = vpack.c.bf16 %v224_v58, %v216_v57  ;;  %v345_v57 = vld [vmem:[#allocation7 + $0x638] sm:$0xff] }
 0x104   :  { %v353_v58 = vld [vmem:[#allocation7 + $0x678] sm:$0xff] }
 0x105   :  { %4169 = vmatpush1.bf16.msra.mxu0 %v4168_v5  ;;  %v462_v5 = vld [vmem:[#allocation8 + $0x1e0] sm:$0xff] }
 0x106   :  { %4171 = vmatprep.subr.bf16.mxu0 %v4170_v6  ;;  %v464_v6 = vld [vmem:[#allocation8 + $0x1f0] sm:$0xff] }
 0x107   :  { %v4212_v7 = vpack.c.bf16 %v464_v6, %v462_v5  ;;  %v4108_v5 = vpack.c.bf16 %v240_v1, %v232_v0  ;;  %v361_v0 = vld [vmem:[#allocation7 + $0x6b8] sm:$0xff] }
 0x108   :  { %v369_v1 = vld [vmem:[#allocation7 + $0x6f8] sm:$0xff] }
 0x109   :  { %4173 = vmatpush1.bf16.msra.mxu0 %v4172_v11  ;;  %v5135_v11 = vld [vmem:[#allocation5 + $0x28] sm:$0xff] }
 0x10a   :  { %4175 = vmatprep.subr.bf16.mxu0 %v4174_v12  ;;  %v5139_v12 = vld [vmem:[#allocation5 + $0x20] sm:$0xff] }
 0x10d   :  { %4177 = vmatpush1.bf16.msra.mxu0 %v4176_v17 }
 0x10e   :  { %4179 = vmatprep.subr.bf16.mxu0 %v4178_v18  ;;  %v5152_v18 = vld [vmem:[%s5653_s3] sm:$0xff] }
 0x111   :  { %4181 = vmatpush1.bf16.msra.mxu0 %v4180_v23  ;;  %v5176_v23 = vld [vmem:[%s5653_s3 + $0x18] sm:$0xff] }
 0x112   :  { %4183 = vmatprep.subr.bf16.mxu0 %v4182_v24  ;;  %v5184_v24 = vld [vmem:[%s5652_s2] sm:$0xff] }
 0x115   :  { %4185 = vmatpush1.bf16.msra.mxu0 %v4184_v29 }
 0x116   :  { %4187 = vmatprep.subr.bf16.mxu0 %v4186_v30  ;;  %v153_v30 = vld [vmem:[#allocation7 + $0x38] sm:$0xff] }
 0x117   :  { %v4086_v32 = vpack.c.bf16 %v161_v62, %v153_v30  ;;  %v264_v62 = vld [vmem:[#allocation7 + $0x3b0] sm:$0xff] }
 0x119   :  { %4189 = vmatpush1.bf16.msra.mxu0 %v4188_v34  ;;  %v169_v34 = vld [vmem:[#allocation7 + $0xb8] sm:$0xff]  ;;  %4087 = vmatprep.subr.bf16.mxu1 %v4086_v32 }
 0x11a   :  { %4191 = vmatprep.subr.bf16.mxu0 %v4190_v35  ;;  %v177_v35 = vld [vmem:[#allocation7 + $0xf8] sm:$0xff]  ;;  %4089 = vmatpush1.bf16.msra.mxu1 %v4088_v36  ;;  %v280_v36 = vld [vmem:[#allocation7 + $0x430] sm:$0xff] }
 0x11b   :  { %v4090_v37 = vpack.c.bf16 %v177_v35, %v169_v34  ;;  %v281_v32 = vld [vmem:[#allocation7 + $0x438] sm:$0xff]  ;;  %v4116_v34 = vpack.c.bf16 %v272_v31, %v264_v62 }
 0x11c   :  { %v4118_v35 = vpack.c.bf16 %v289_v33, %v281_v32 }
 0x11d   :  { %4193 = vmatpush1.bf16.msra.mxu0 %v4192_v40  ;;  %v185_v40 = vld [vmem:[#allocation7 + $0x138] sm:$0xff]  ;;  %4091 = vmatprep.subr.bf16.mxu1 %v4090_v37  ;;  %v288_v37 = vld [vmem:[#allocation7 + $0x470] sm:$0xff] }
 0x11e   :  { %4195 = vmatprep.subr.bf16.mxu0 %v4194_v41  ;;  %v193_v41 = vld [vmem:[#allocation7 + $0x178] sm:$0xff]  ;;  %4093 = vmatpush1.bf16.msra.mxu1 %v4092_v42  ;;  %v296_v42 = vld [vmem:[#allocation7 + $0x4b0] sm:$0xff] }
 0x11f   :  { %v4094_v43 = vpack.c.bf16 %v193_v41, %v185_v40  ;;  %v4120_v40 = vpack.c.bf16 %v288_v37, %v280_v36  ;;  %v4122_v41 = vpack.c.bf16 %v305_v39, %v297_v38 }
 0x121   :  { %4197 = vmatpush1.bf16.msra.mxu0 %v4196_v47  ;;  %v201_v47 = vld [vmem:[#allocation7 + $0x1b8] sm:$0xff]  ;;  %4095 = vmatprep.subr.bf16.mxu1 %v4094_v43  ;;  %v304_v43 = vld [vmem:[#allocation7 + $0x4f0] sm:$0xff] }
 0x122   :  { %4199 = vmatprep.subr.bf16.mxu0 %v4198_v48  ;;  %v209_v48 = vld [vmem:[#allocation7 + $0x1f8] sm:$0xff]  ;;  %4097 = vmatpush1.bf16.msra.mxu1 %v4096_v49  ;;  %v312_v49 = vld [vmem:[#allocation7 + $0x530] sm:$0xff] }
 0x123   :  { %v4098_v50 = vpack.c.bf16 %v209_v48, %v201_v47  ;;  %v4124_v47 = vpack.c.bf16 %v304_v43, %v296_v42  ;;  %v4126_v48 = vpack.c.bf16 %v321_v45, %v313_v44 }
 0x125   :  { %4201 = vmatpush1.bf16.msra.mxu0 %v4200_v53  ;;  %v217_v53 = vld [vmem:[#allocation7 + $0x238] sm:$0xff]  ;;  %4099 = vmatprep.subr.bf16.mxu1 %v4098_v50  ;;  %v320_v50 = vld [vmem:[#allocation7 + $0x570] sm:$0xff] }
 0x126   :  { %4203 = vmatprep.subr.bf16.mxu0 %v4202_v54  ;;  %v225_v54 = vld [vmem:[#allocation7 + $0x278] sm:$0xff]  ;;  %4101 = vmatpush1.bf16.msra.mxu1 %v4100_v55  ;;  %v328_v55 = vld [vmem:[#allocation7 + $0x5b0] sm:$0xff] }
 0x127   :  { %v4102_v56 = vpack.c.bf16 %v225_v54, %v217_v53  ;;  %v4128_v53 = vpack.c.bf16 %v320_v50, %v312_v49  ;;  %v4130_v54 = vpack.c.bf16 %v337_v52, %v329_v51 }
 0x129   :  { %4205 = vmatpush1.bf16.msra.mxu0 %v4204_v59  ;;  %v233_v59 = vld [vmem:[#allocation7 + $0x2b8] sm:$0xff]  ;;  %4103 = vmatprep.subr.bf16.mxu1 %v4102_v56  ;;  %v336_v56 = vld [vmem:[#allocation7 + $0x5f0] sm:$0xff] }
 0x12a   :  { %4207 = vmatprep.subr.bf16.mxu0 %v4206_v60  ;;  %v241_v60 = vld [vmem:[#allocation7 + $0x2f8] sm:$0xff]  ;;  %4105 = vmatpush1.bf16.msra.mxu1 %v4104_v61  ;;  %v344_v61 = vld [vmem:[#allocation7 + $0x630] sm:$0xff] }
 0x12b   :  { %v4106_v63 = vpack.c.bf16 %v241_v60, %v233_v59  ;;  %v4132_v59 = vpack.c.bf16 %v336_v56, %v328_v55  ;;  %v4134_v60 = vpack.c.bf16 %v353_v58, %v345_v57  ;;  %v393_v56 = vld [vmem:[#allocation7 + $0x7b8] sm:$0xff]  ;;  %v392_v58 = vld [vmem:[#allocation7 + $0x7b0] sm:$0xff] }
 0x12c   :  { %v401_v57 = vld [vmem:[#allocation7 + $0x7f8] sm:$0xff] }
 0x12d   :  { %4209 = vmatpush1.bf16.msra.mxu0 %v4208_v2  ;;  %v249_v2 = vld [vmem:[#allocation7 + $0x338] sm:$0xff]  ;;  %4107 = vmatprep.subr.bf16.mxu1 %v4106_v63  ;;  %v352_v63 = vld [vmem:[#allocation7 + $0x670] sm:$0xff] }
 0x12e   :  { %4211 = vmatprep.subr.bf16.mxu0 %v4210_v4  ;;  %v257_v4 = vld [vmem:[#allocation7 + $0x378] sm:$0xff]  ;;  %4109 = vmatpush1.bf16.msra.mxu1 %v4108_v5  ;;  %v360_v5 = vld [vmem:[#allocation7 + $0x6b0] sm:$0xff] }
 0x12f   :  { %v4110_v6 = vpack.c.bf16 %v257_v4, %v249_v2  ;;  %v4136_v2 = vpack.c.bf16 %v352_v63, %v344_v61  ;;  %v4138_v4 = vpack.c.bf16 %v369_v1, %v361_v0  ;;  %v141_v63 = vld [vmem:[%s5655_s5] sm:$0xff] }
 0x131   :  { %4213 = vmatpush1.bf16.msra.mxu0 %v4212_v7  ;;  %v248_v7 = vld [vmem:[#allocation7 + $0x330] sm:$0xff]  ;;  %4111 = vmatprep.subr.bf16.mxu1 %v4110_v6 }
 0x132   :  { %v368_v6 = vld [vmem:[#allocation7 + $0x6f0] sm:$0xff] }
 0x134   :  { %815 = vmatmul.mubr.f32.vlgmr.msra.gmra.mrb[4].mxu0 %v5127_v8 }
 0x135   :  { %820 = vmatprep.mubr.f32.mxu0 %v5129_v9 }
 0x138   :  { %821 = vmatmul.mubr.f32.gmra.mrb[6].mxu0 %v5133_v10 }
 0x139   :  { %826 = vmatprep.mubr.f32.mxu0 %v5135_v11 }
 0x13c   :  { %827 = vmatmul.mubr.f32.gmra.mrb[8].mxu0 %v5139_v12 }
 0x13d   :  { %832 = vmatprep.mubr.f32.mxu0 %v5141_v13 }
 0x140   :  { %833 = vmatmul.mubr.f32.gmra.mrb[10].mxu0 %v5145_v14 }
 0x141   :  { %916 = vmatprep.mubr.f32.mxu0 %v4955_v15 }
 0x185   :  { %v603_v16 = vpop.f32.mrb[0].mxu1 }
 0x186   :  { %v605_v17 = vpop.f32.mrb[1].mxu1 }
 0x187   :  { %852 = vmatprep.subr.mxu0 %v605_v17  ;;  %v532_v20 = vpop.f32.mrb[0].mxu0  ;;  %v265_v17 = vld [vmem:[#allocation7 + $0x3b8] sm:$0xff] }
 0x188   :  { %853 = vmatpush1.msra.mxu0 %v603_v16  ;;  %v534_v21 = vpop.f32.mrb[1].mxu0  ;;  %v256_v16 = vld [vmem:[#allocation7 + $0x370] sm:$0xff] }
 0x189   :  { %3722 = vmatmul.mubr.msk.f32.vlgmr.msra.gmra.mrb[4].mxu0 %vm839_vm0, %v5152_v18  ;;  %953 = vmatprep.subr.mxu0 %v534_v21  ;;  %v4112_v21 = vpack.c.bf16 %v256_v16, %v248_v7  ;;  %v377_v7 = vld [vmem:[#allocation7 + $0x738] sm:$0xff] }
 0x18a   :  { %922 = vmatprep.mubr.f32.mxu0 %v4955_v15  ;;  %954 = vmatpush1.msra.mxu0 %v532_v20  ;;  %v273_v20 = vld [vmem:[#allocation7 + $0x3f8] sm:$0xff] }
 0x18b   :  { %v4114_v30 = vpack.c.bf16 %v273_v20, %v265_v17  ;;  %4113 = vmatpush1.bf16.msra.mxu1 %v4112_v21  ;;  %v385_v16 = vld [vmem:[#allocation7 + $0x778] sm:$0xff]  ;;  %v4140_v17 = vpack.c.bf16 %v368_v6, %v360_v5  ;;  %v376_v21 = vld [vmem:[#allocation7 + $0x730] sm:$0xff] }
 0x18c   :  { %v4142_v20 = vpack.c.bf16 %v385_v16, %v377_v7 }
 0x18d   :  { %3723 = vmatmul.mubr.msk.f32.gmra.mrb[6].mxu0 %vm839_vm0, %v5160_v19  ;;  %4115 = vmatprep.subr.bf16.mxu1 %v4114_v30  ;;  %v384_v30 = vld [vmem:[#allocation7 + $0x770] sm:$0xff] }
 0x18e   :  { %928 = vmatprep.mubr.f32.mxu0 %v4955_v15  ;;  %v4144_v62 = vpack.c.bf16 %v384_v30, %v376_v21 }
 0x18f   :  { %4117 = vmatpush1.bf16.msra.mxu1 %v4116_v34 }
 0x190   :  { %4119 = vmatprep.subr.bf16.mxu1 %v4118_v35 }
 0x191   :  { %3724 = vmatmul.mubr.msk.f32.gmra.mrb[8].mxu0 %vm839_vm0, %v5168_v22 }
 0x192   :  { %934 = vmatprep.mubr.f32.mxu0 %v4955_v15 }
 0x193   :  { %4121 = vmatpush1.bf16.msra.mxu1 %v4120_v40 }
 0x194   :  { %4123 = vmatprep.subr.bf16.mxu1 %v4122_v41 }
 0x195   :  { %3725 = vmatmul.mubr.msk.f32.gmra.mrb[10].mxu0 %vm839_vm0, %v5176_v23 }
 0x196   :  { %1017 = vmatprep.mubr.f32.mxu0 %v4955_v15 }
 0x197   :  { %4125 = vmatpush1.bf16.msra.mxu1 %v4124_v47 }
 0x198   :  { %4127 = vmatprep.subr.bf16.mxu1 %v4126_v48 }
 0x199   :  { %3726 = vmatmul.mubr.msk.f32.vlgmr.msra.gmra.mrb[4].mxu0 %vm839_vm0, %v5184_v24 }
 0x19a   :  { %1023 = vmatprep.mubr.f32.mxu0 %v4955_v15 }
 0x19b   :  { %4129 = vmatpush1.bf16.msra.mxu1 %v4128_v53 }
 0x19c   :  { %4131 = vmatprep.subr.bf16.mxu1 %v4130_v54 }
 0x19d   :  { %3727 = vmatmul.mubr.msk.f32.gmra.mrb[6].mxu0 %vm839_vm0, %v5192_v25 }
 0x19e   :  { %1029 = vmatprep.mubr.f32.mxu0 %v4955_v15 }
 0x19f   :  { %4133 = vmatpush1.bf16.msra.mxu1 %v4132_v59  ;;  %v4146_v59 = vpack.c.bf16 %v401_v57, %v393_v56 }
 0x1a0   :  { %4135 = vmatprep.subr.bf16.mxu1 %v4134_v60  ;;  %v400_v60 = vld [vmem:[#allocation7 + $0x7f0] sm:$0xff] }
 0x1a1   :  { %3728 = vmatmul.mubr.msk.f32.gmra.mrb[8].mxu0 %vm839_vm0, %v5200_v26  ;;  %v4148_v61 = vpack.c.bf16 %v400_v60, %v392_v58 }
 0x1a2   :  { %1035 = vmatprep.mubr.f32.mxu0 %v4955_v15 }
 0x1a3   :  { %4137 = vmatpush1.bf16.msra.mxu1 %v4136_v2 }
 0x1a4   :  { %4139 = vmatprep.subr.bf16.mxu1 %v4138_v4 }
 0x1a5   :  { %3729 = vmatmul.mubr.msk.f32.gmra.mrb[10].mxu0 %vm839_vm0, %v5208_v27 }
 0x1a7   :  { %4141 = vmatpush1.bf16.msra.mxu1 %v4140_v17 }
 0x1a8   :  { %4143 = vmatprep.subr.bf16.mxu1 %v4142_v20  ;;  %v143_v20 = vld [vmem:[%s5655_s5 + $0x10] sm:$0xff] }
 0x1ab   :  { %4145 = vmatpush1.bf16.msra.mxu1 %v4144_v62  ;;  %v144_v62 = vld [vmem:[%s5655_s5 + $0x18] sm:$0xff] }
 0x1ac   :  { %4147 = vmatprep.subr.bf16.mxu1 %v4146_v59 }
 0x1af   :  { %4149 = vmatpush1.bf16.msra.mxu1 %v4148_v61 }
 0x1b2   :  { %744 = vmatmul.mubr.f32.vlgmr.msra.gmra.mrb[2].mxu1 %v5117_v3  ;;  %v142_v3 = vld [vmem:[%s5655_s5 + $0x8] sm:$0xff] }
 0x1b3   :  { %3826 = vmatprep.mubr.msk.f32.mxu1 %vm1082_vm1, %v141_v63 }
 0x1c7   :  { %v5212_v28 = vpop.f32.mrb[2].mxu0 }
 0x1c8   :  { %v5214_v29 = vpop.f32.mrb[3].mxu0 }
 0x26c   :  { %v5216_v31 = vpop.f32.mrb[4].mxu0 }
 0x26d   :  { %v5218_v32 = vpop.f32.mrb[5].mxu0  ;;  %v1062_v33 = vmul.f32 %v5216_v31, %v5216_v31 }
 0x26e   :  { %v1050_v34 = vadd.f32 %v5218_v32, %v5216_v31  ;;  %v1063_v35 = vmul.f32 %v5218_v32, %v5218_v32 }
 0x270   :  { %1051 = vadd.xlane.f32.xlu0 %v1050_v34  ;;  %v5226_v36 = vpop.f32.mrb[6].mxu0  ;;  %v1070_v37 = vadd.f32 %v1063_v35, %v1062_v33 }
 0x271   :  { %v5228_v38 = vpop.f32.mrb[7].mxu0  ;;  %v1064_v39 = vmul.f32 %v5226_v36, %v5226_v36 }
 0x272   :  { %v1053_v40 = vadd.f32 %v5228_v38, %v5226_v36  ;;  %v1065_v41 = vmul.f32 %v5228_v38, %v5228_v38 }
 0x274   :  { %1054 = vadd.xlane.f32.xlu0 %v1053_v40  ;;  %v5236_v42 = vpop.f32.mrb[8].mxu0  ;;  %v1073_v43 = vadd.f32 %v1065_v41, %v1064_v39 }
 0x275   :  { %v5238_v44 = vpop.f32.mrb[9].mxu0  ;;  %v1066_v45 = vmul.f32 %v5236_v42, %v5236_v42 }
 0x276   :  { %v1056_v47 = vadd.f32 %v5238_v44, %v5236_v42  ;;  %v1067_v48 = vmul.f32 %v5238_v44, %v5238_v44 }
 0x278   :  { %1071 = vadd.xlane.f32.xlu0 %v1070_v37  ;;  %1057 = vadd.xlane.f32.xlu1 %v1056_v47  ;;  %v5246_v49 = vpop.f32.mrb[10].mxu0  ;;  %v1076_v50 = vadd.f32 %v1067_v48, %v1066_v45  ;;  %v4956_v37 = vmov 0  }
 0x279   :  { %v5248_v51 = vpop.f32.mrb[11].mxu0  ;;  %v1068_v52 = vmul.f32 %v5246_v49, %v5246_v49  ;;  %4648 = vset.pattern.permute.xlu1 %v4956_v37  ;;  %4647 = vset.pattern.permute.xlu0 %v4956_v37 }
 0x27a   :  { %v1059_v53 = vadd.f32 %v5248_v51, %v5246_v49  ;;  %v1069_v54 = vmul.f32 %v5248_v51, %v5248_v51 }
 0x27c   :  { %1077 = vadd.xlane.f32.xlu0 %v1076_v50  ;;  %1060 = vadd.xlane.f32.xlu1 %v1059_v53  ;;  %v1079_v55 = vadd.f32 %v1069_v54, %v1068_v52 }
 0x280   :  { %1074 = vadd.xlane.f32.xlu1 %v1073_v43 }
 0x284   :  { %1080 = vadd.xlane.f32.xlu1 %v1079_v55 }
 0x285   :  { %v5278_v34 = vpop.f32.mrb[2].mxu1 }
 0x286   :  { %v5280_v35 = vpop.f32.mrb[3].mxu1 }
 0x2fd   :  { %v1052_v0 = vpop.xlane.xlu0 %1051 }
 0x301   :  { %v1055_v1 = vpop.xlane.xlu0 %1054 }
 0x302   :  { %v4214_v2 = vpack.c.bf16 %v1055_v1, %v1052_v0 }
 0x304   :  { %4215 = vmatprep.subr.bf16.mxu1 %v4214_v2 }
 0x305   :  { %4217 = vmatpush3.bf16.msra.mxu1 %v4214_v2  ;;  %v1058_v4 = vpop.xlane.xlu1 %1057  ;;  %v1072_v7 = vpop.xlane.xlu0 %1071 }
 0x309   :  { %v1061_v5 = vpop.xlane.xlu1 %1060  ;;  %v1078_v21 = vpop.xlane.xlu0 %1077 }
 0x30a   :  { %v4218_v6 = vpack.c.bf16 %v1061_v5, %v1058_v4 }
 0x30c   :  { %4219 = vmatprep.subr.bf16.mxu1 %v4218_v6 }
 0x30d   :  { %4221 = vmatpush3.bf16.msra.mxu1 %v4218_v6  ;;  %v1075_v16 = vpop.xlane.xlu1 %1074 }
 0x30e   :  { %v4222_v17 = vpack.c.bf16 %v1075_v16, %v1072_v7 }
 0x310   :  { %3827 = vmatmul.mubr.msk.f32.vlgmr.msra.gmra.mrb[4].mxu1 %vm1082_vm1, %v142_v3  ;;  %4223 = vmatprep.subr.bf16.mxu1 %v4222_v17 }
 0x311   :  { %4225 = vmatpush3.bf16.msra.mxu1 %v4222_v17  ;;  %v1081_v30 = vpop.xlane.xlu1 %1080  ;;  %3829 = vmatprep.mubr.msk.f32.mxu1 %vm1082_vm1, %v143_v20 }
 0x312   :  { %v4226_v33 = vpack.c.bf16 %v1081_v30, %v1078_v21 }
 0x314   :  { %3830 = vmatmul.mubr.msk.f32.gmra.mrb[6].mxu1 %vm1082_vm1, %v144_v62  ;;  %4227 = vmatprep.subr.bf16.mxu1 %v4226_v33 }
 0x315   :  { %4229 = vmatpush3.bf16.msra.mxu1 %v4226_v33  ;;  %3840 = vmatprep.mubr.msk.f32.mxu1 %vm1082_vm1, %v141_v63 }
 0x318   :  { %3841 = vmatmul.mubr.msk.f32.vlgmr.msra.gmra.mrb[8].mxu1 %vm1082_vm1, %v142_v3 }
 0x319   :  { %3843 = vmatprep.mubr.msk.f32.mxu1 %vm1082_vm1, %v143_v20 }
 0x31c   :  { %3844 = vmatmul.mubr.msk.f32.gmra.mrb[10].mxu1 %vm1082_vm1, %v144_v62 }
 0x31d   :  { %1480 = vmatprep.mubr.f32.mxu1 %v4955_v15 }
 0x3e3   :  { %v3828_v39 = vpop.f32.mrb[4].mxu1 }
 0x3e4   :  { %v1181_v40 = vmul.f32 0.001953125, %v3828_v39  ;;  %v1161_v41 = vpop.f32.mrb[5].mxu1 }
 0x3e5   :  { %v1180_v43 = vmul.f32 0.001953125, %v1161_v41 }
 0x3e6   :  { %1292 = vperm.xlu1 %4648, %v1181_v40   ;;  %v1274_v52 = vmul.f32 %v1181_v40, %v1181_v40 }
 0x3e7   :  { %1287 = vperm.xlu0 %4647, %v1180_v43   ;;  %v3831_v45 = vpop.f32.mrb[6].mxu1  ;;  %v1273_v56 = vmul.f32 %v1180_v43, %v1180_v43 }
 0x3e8   :  { %v1183_v47 = vmul.f32 0.001953125, %v3831_v45  ;;  %v1171_v48 = vpop.f32.mrb[7].mxu1 }
 0x3e9   :  { %v1182_v53 = vmul.f32 0.001953125, %v1171_v48 }
 0x3ea   :  { %1302 = vperm.xlu1 %4648, %v1183_v47   ;;  %v1276_v61 = vmul.f32 %v1183_v47, %v1183_v47 }
 0x3eb   :  { %v3842_v50 = vpop.f32.mrb[8].mxu1  ;;  %v1275_v2 = vmul.f32 %v1182_v53, %v1182_v53 }
 0x3ec   :  { %v1270_v54 = vmul.f32 0.001953125, %v3842_v50  ;;  %v1250_v55 = vpop.f32.mrb[9].mxu1 }
 0x3ed   :  { %v1269_v57 = vmul.f32 0.001953125, %v1250_v55 }
 0x3ee   :  { %v1278_v58 = vsub.f32 %v1270_v54, %v1274_v52  ;;  %1297 = vperm.xlu1 %4648, %v1182_v53  }
 0x3ef   :  { %v1277_v59 = vsub.f32 %v1269_v57, %v1273_v56  ;;  %v3845_v60 = vpop.f32.mrb[10].mxu1 }
 0x3f0   :  { %v1282_v63 = vmax.f32 %v1278_v58, 0.0  ;;  %v1272_v0 = vmul.f32 0.001953125, %v3845_v60  ;;  %v1260_v1 = vpop.f32.mrb[11].mxu1 }
 0x3f1   :  { %v1281_v4 = vmax.f32 %v1277_v59, 0.0  ;;  %v1271_v5 = vmul.f32 0.001953125, %v1260_v1 }
 0x3f2   :  { %v1314_v6 = vadd.f32 1e-05, %v1282_v63  ;;  %v1280_v7 = vsub.f32 %v1272_v0, %v1276_v61 }
 0x3f3   :  { %v1279_v16 = vsub.f32 %v1271_v5, %v1275_v2  ;;  %v1313_v3 = vadd.f32 1e-05, %v1281_v4 }
 0x3f4   :  { %4649 = vrsqrt.f32 %v1314_v6  ;;  %v1284_v20 = vmax.f32 %v1280_v7, 0.0 }
 0x3f5   :  { %v1283_v17 = vmax.f32 %v1279_v16, 0.0  ;;  %4651 = vrsqrt.f32 %v1313_v3 }
 0x3f6   :  { %v1316_v30 = vadd.f32 1e-05, %v1284_v20 }
 0x3f7   :  { %v1315_v21 = vadd.f32 1e-05, %v1283_v17 }
 0x3f9   :  { %4653 = vrsqrt.f32 %v1315_v21 }
 0x3fa   :  { %4655 = vrsqrt.f32 %v1316_v30 }
 0x3fe   :  { %v4650_v62 = vpop.eup %4649 }
 0x3ff   :  { %1328 = vperm.xlu1 %4648, %v4650_v62   ;;  %v4652_v33 = vpop.eup %4651 }
 0x403   :  { %1323 = vperm.xlu1 %4648, %v4652_v33   ;;  %v4654_v37 = vpop.eup %4653 }
 0x404   :  { %v4656_v39 = vpop.eup %4655 }
 0x407   :  { %1333 = vperm.xlu1 %4648, %v4654_v37  }
 0x40b   :  { %1338 = vperm.xlu1 %4648, %v4656_v39  }
 0x465   :  { %v1293_v40 = vpop.permute.xlu1 %1292 }
 0x466   :  { %v1307_v45 = vsub.f32 %v5226_v36, %v1293_v40  ;;  %v1308_v47 = vsub.f32 %v5228_v38, %v1293_v40  ;;  %v1288_v48 = vpop.permute.xlu0 %1287 }
 0x467   :  { %v1305_v54 = vsub.f32 %v5216_v31, %v1288_v48  ;;  %v1306_v55 = vsub.f32 %v5218_v32, %v1288_v48 }
 0x469   :  { %v1303_v41 = vpop.permute.xlu1 %1302 }
 0x46a   :  { %v1311_v5 = vsub.f32 %v5246_v49, %v1303_v41  ;;  %v1312_v6 = vsub.f32 %v5248_v51, %v1303_v41 }
 0x46d   :  { %v1298_v43 = vpop.permute.xlu1 %1297 }
 0x46e   :  { %v1309_v38 = vsub.f32 %v5236_v42, %v1298_v43  ;;  %v1310_v32 = vsub.f32 %v5238_v44, %v1298_v43 }
 0x47e   :  { %v1329_v50 = vpop.permute.xlu1 %1328 }
 0x47f   :  { %v1343_v52 = vmul.f32 %v1329_v50, %v1307_v45  ;;  %v1344_v53 = vmul.f32 %v1329_v50, %v1308_v47 }
 0x481   :  { %v1351_v56 = vmax.f32 %v1343_v52, 0.0  ;;  %v1352_v57 = vmax.f32 %v1344_v53, 0.0 }
 0x482   :  { %v1324_v58 = vpop.permute.xlu1 %1323 }
 0x483   :  { %v5287_v59 = vadd.f32 %v1351_v56, %v5133_v10  ;;  %v5290_v60 = vadd.f32 %v1352_v57, %v5129_v9  ;;  %v1341_v36 = vmul.f32 %v1324_v58, %v1305_v54  ;;  %v1342_v61 = vmul.f32 %v1324_v58, %v1306_v55 }
 0x485   :  { %v1367_v63 = vmul.f32 0.5, %v5287_v59  ;;  %v1368_v0 = vmul.f32 0.5, %v5290_v60  ;;  %v1349_v31 = vmax.f32 %v1341_v36, 0.0  ;;  %v1350_v1 = vmax.f32 %v1342_v61, 0.0 }
 0x486   :  { %v1334_v2 = vpop.permute.xlu1 %1333 }
 0x487   :  { %4657 = vtanh.f32 %v1367_v63  ;;  %v5297_v10 = vadd.f32 %v1349_v31, %v5127_v8  ;;  %v5300_v9 = vadd.f32 %v1350_v1, %v5123_v46  ;;  %v1345_v4 = vmul.f32 %v1334_v2, %v1309_v38 }
 0x488   :  { %4659 = vtanh.f32 %v1368_v0  ;;  %v1346_v42 = vmul.f32 %v1334_v2, %v1310_v32 }
 0x489   :  { %v1365_v7 = vmul.f32 0.5, %v5297_v10  ;;  %v1366_v16 = vmul.f32 0.5, %v5300_v9  ;;  %v1353_v44 = vmax.f32 %v1345_v4, 0.0 }
 0x48a   :  { %v1354_v3 = vmax.f32 %v1346_v42, 0.0  ;;  %v1339_v17 = vpop.permute.xlu1 %1338 }
 0x48b   :  { %4661 = vtanh.f32 %v1365_v7  ;;  %v5307_v8 = vadd.f32 %v1353_v44, %v5139_v12  ;;  %v1347_v46 = vmul.f32 %v1339_v17, %v1311_v5  ;;  %v1348_v20 = vmul.f32 %v1339_v17, %v1312_v6 }
 0x48c   :  { %4663 = vtanh.f32 %v1366_v16  ;;  %v5310_v49 = vadd.f32 %v1354_v3, %v5135_v11 }
 0x48d   :  { %v1369_v21 = vmul.f32 0.5, %v5307_v8  ;;  %v1355_v51 = vmax.f32 %v1347_v46, 0.0  ;;  %v1356_v30 = vmax.f32 %v1348_v20, 0.0 }
 0x48e   :  { %v1370_v62 = vmul.f32 0.5, %v5310_v49 }
 0x48f   :  { %4665 = vtanh.f32 %v1369_v21  ;;  %v5315_v33 = vadd.f32 %v1355_v51, %v5145_v14  ;;  %v5318_v37 = vadd.f32 %v1356_v30, %v5141_v13 }
 0x490   :  { %4667 = vtanh.f32 %v1370_v62 }
 0x491   :  { %v4658_v12 = vpop.eup %4657  ;;  %v1371_v39 = vmul.f32 0.5, %v5315_v33  ;;  %v1372_v11 = vmul.f32 0.5, %v5318_v37 }
 0x492   :  { %v4660_v40 = vpop.eup %4659  ;;  %v1383_v41 = vmul.f32 0.5, %v4658_v12 }
 0x493   :  { %v1384_v43 = vmul.f32 0.5, %v4660_v40  ;;  %4669 = vtanh.f32 %v1371_v39  ;;  %v5331_v40 = vld [vmem:[%s5654_s4] sm:$0xff] }
 0x494   :  { %v1391_v45 = vadd.f32 0.5, %v1383_v41  ;;  %4671 = vtanh.f32 %v1372_v11 }
 0x495   :  { %v4662_v47 = vpop.eup %4661  ;;  %v1392_v48 = vadd.f32 0.5, %v1384_v43 }
 0x496   :  { %v4664_v50 = vpop.eup %4663  ;;  %v1401_v14 = vmul.f32 1.442695, %v1391_v45  ;;  %v1381_v52 = vmul.f32 0.5, %v4662_v47 }
 0x497   :  { %v1403_v53 = vmul.f32 1.442695, %v1392_v48  ;;  %v1382_v13 = vmul.f32 0.5, %v4664_v50 }
 0x498   :  { %v1389_v54 = vadd.f32 0.5, %v1381_v52  ;;  %4673 = vpow2.f32 %v1401_v14 }
 0x499   :  { %v4666_v55 = vpop.eup %4665  ;;  %v1390_v56 = vadd.f32 0.5, %v1382_v13  ;;  %4675 = vpow2.f32 %v1403_v53 }
 0x49a   :  { %v4668_v57 = vpop.eup %4667  ;;  %v1397_v58 = vmul.f32 1.442695, %v1389_v54  ;;  %v1385_v36 = vmul.f32 0.5, %v4666_v55 }
 0x49b   :  { %v1399_v61 = vmul.f32 1.442695, %v1390_v56  ;;  %v1386_v38 = vmul.f32 0.5, %v4668_v57 }
 0x49c   :  { %4677 = vpow2.f32 %v1397_v58  ;;  %v1393_v63 = vadd.f32 0.5, %v1385_v36 }
 0x49d   :  { %v4670_v0 = vpop.eup %4669  ;;  %4679 = vpow2.f32 %v1399_v61  ;;  %v1394_v31 = vadd.f32 0.5, %v1386_v38 }
 0x49e   :  { %v4672_v1 = vpop.eup %4671  ;;  %v1405_v32 = vmul.f32 1.442695, %v1393_v63  ;;  %v1387_v2 = vmul.f32 0.5, %v4670_v0 }
 0x49f   :  { %v1407_v4 = vmul.f32 1.442695, %v1394_v31  ;;  %v1388_v5 = vmul.f32 0.5, %v4672_v1 }
 0x4a0   :  { %v1395_v42 = vadd.f32 0.5, %v1387_v2  ;;  %4681 = vpow2.f32 %v1405_v32 }
 0x4a1   :  { %v1396_v6 = vadd.f32 0.5, %v1388_v5  ;;  %4683 = vpow2.f32 %v1407_v4 }
 0x4a2   :  { %v1409_v7 = vmul.f32 1.442695, %v1395_v42  ;;  %v4674_v44 = vpop.eup %4673 }
 0x4a3   :  { %v1411_v16 = vmul.f32 1.442695, %v1396_v6  ;;  %v4676_v3 = vpop.eup %4675 }
 0x4a4   :  { %4685 = vpow2.f32 %v1409_v7 }
 0x4a5   :  { %4687 = vpow2.f32 %v1411_v16 }
 0x4a6   :  { %v4678_v17 = vpop.eup %4677 }
 0x4a7   :  { %v4680_v46 = vpop.eup %4679  ;;  %v4232_v20 = vpack.c.bf16 %v4674_v44, %v4678_v17 }
 0x4a8   :  { %v4230_v21 = vpack.c.bf16 %v4676_v3, %v4680_v46 }
 0x4aa   :  { %4231 = vmatprep.subr.bf16.mxu1 %v4230_v21  ;;  %v4682_v51 = vpop.eup %4681 }
 0x4ab   :  { %4233 = vmatpush1.bf16.msra.mxu1 %v4232_v20  ;;  %v4684_v30 = vpop.eup %4683 }
 0x4ae   :  { %v5322_v62 = vpop.eup %4685 }
 0x4af   :  { %v5324_v12 = vpop.eup %4687  ;;  %v4236_v39 = vpack.c.bf16 %v5322_v62, %v4682_v51 }
 0x4b0   :  { %v4234_v11 = vpack.c.bf16 %v5324_v12, %v4684_v30 }
 0x4b2   :  { %4235 = vmatprep.subr.bf16.mxu1 %v4234_v11  ;;  %v1935_v11 = vld [vmem:[#allocation10 + $0x8] sm:$0xff] }
 0x4b3   :  { %4237 = vmatpush1.bf16.msra.mxu1 %v4236_v39 }
 0x4b6   :  { %3738 = vmatmul.mubr.msk.f32.vlgmr.msra.gmra.mrb[12].mxu1 %vm1082_vm1, %v5331_v40 }
 0x4b7   :  { %1553 = vmatprep.mubr.f32.mxu1 %v4955_v15 }
 0x589   :  { %v1482_v41 = vpop.f32.mrb[12].mxu1 }
 0x58a   :  { %v1484_v43 = vpop.f32.mrb[13].mxu1 }
 0x58b   :  { %4689 = vrcp.f32 %v1484_v43 }
 0x58c   :  { %4691 = vrcp.f32 %v1482_v41  ;;  %v1937_v41 = vld [vmem:[#allocation10 + $0x18] sm:$0xff] }
 0x595   :  { %v4690_v45 = vpop.eup %4689 }
 0x596   :  { %v4692_v47 = vpop.eup %4691  ;;  %1489 = vmatprep.subr.mxu1 %v4690_v45  ;;  %v1945_v45 = vld [vmem:[#allocation10 + $0x58] sm:$0xff] }
 0x597   :  { %1490 = vmatpush1.msra.mxu1 %v4692_v47  ;;  %v1934_v47 = vld [vmem:[#allocation10] sm:$0xff] }
 0x598   :  { %3739 = vmatmul.mubr.msk.f32.vlgmr.msra.gmra.mrb[14].mxu1 %vm839_vm0, %v5184_v24  ;;  %1586 = vmatprep.subr.mxu1 %v5280_v35 }
 0x599   :  { %1587 = vmatpush1.msra.mxu1 %v5278_v34  ;;  %1559 = vmatprep.mubr.f32.mxu1 %v4955_v15 }
 0x59c   :  { %3740 = vmatmul.mubr.msk.f32.gmra.mrb[16].mxu1 %vm839_vm0, %v5192_v25 }
 0x59d   :  { %1565 = vmatprep.mubr.f32.mxu1 %v4955_v15 }
 0x5a0   :  { %3741 = vmatmul.mubr.msk.f32.gmra.mrb[18].mxu1 %vm839_vm0, %v5200_v26 }
 0x5a1   :  { %1571 = vmatprep.mubr.f32.mxu1 %v4955_v15 }
 0x5a4   :  { %3742 = vmatmul.mubr.msk.f32.gmra.mrb[20].mxu1 %vm839_vm0, %v5208_v27 }
 0x5a5   :  { %1650 = vmatprep.mubr.f32.mxu1 %v4955_v15 }
 0x5a8   :  { %3743 = vmatmul.mubr.msk.f32.vlgmr.msra.gmra.mrb[22].mxu1 %vm839_vm0, %v5152_v18 }
 0x5a9   :  { %1656 = vmatprep.mubr.f32.mxu1 %v4955_v15 }
 0x5ac   :  { %3744 = vmatmul.mubr.msk.f32.gmra.mrb[24].mxu1 %vm839_vm0, %v5160_v19 }
 0x5ad   :  { %1662 = vmatprep.mubr.f32.mxu1 %v4955_v15 }
 0x5b0   :  { %3745 = vmatmul.mubr.msk.f32.gmra.mrb[26].mxu1 %vm839_vm0, %v5168_v22 }
 0x5b1   :  { %1668 = vmatprep.mubr.f32.mxu1 %v4955_v15 }
 0x5b4   :  { %3746 = vmatmul.mubr.msk.f32.gmra.mrb[28].mxu1 %vm839_vm0, %v5176_v23 }
 0x5b5   :  { %1747 = vmatprep.mubr.f32.mxu1 %v4955_v15 }
 0x66b   :  { %v1555_v24 = vpop.f32.mrb[14].mxu1 }
 0x66c   :  { %v1557_v25 = vpop.f32.mrb[15].mxu1  ;;  %v1578_v48 = vmul.f32 %v4678_v17, %v1555_v24  ;;  %v1942_v24 = vld [vmem:[#allocation10 + $0x40] sm:$0xff] }
 0x66d   :  { %v1579_v50 = vmul.f32 %v4680_v46, %v1557_v25  ;;  %v4310_v25 = vpack.c.bf16 %v1945_v45, %v1937_v41  ;;  %v2000_v41 = vld [vmem:[#allocation10 + $0x210] sm:$0xff] }
 0x66e   :  { %v2008_v45 = vld [vmem:[#allocation10 + $0x250] sm:$0xff] }
 0x66f   :  { %v1561_v18 = vpop.f32.mrb[16].mxu1  ;;  %4311 = vmatprep.subr.bf16.mxu0 %v4310_v25  ;;  %v2017_v25 = vld [vmem:[#allocation10 + $0x298] sm:$0xff] }
 0x670   :  { %v1563_v26 = vpop.f32.mrb[17].mxu1  ;;  %v1580_v13 = vmul.f32 %v4674_v44, %v1561_v18  ;;  %v4248_v18 = vpack.c.bf16 %v1942_v24, %v1934_v47  ;;  %v2015_v47 = vld [vmem:[#allocation10 + $0x288] sm:$0xff] }
 0x671   :  { %v1581_v54 = vmul.f32 %v4676_v3, %v1563_v26  ;;  %v1936_v26 = vld [vmem:[#allocation10 + $0x10] sm:$0xff]  ;;  %v2023_v24 = vld [vmem:[#allocation10 + $0x2c8] sm:$0xff] }
 0x673   :  { %v1567_v27 = vpop.f32.mrb[18].mxu1 }
 0x674   :  { %v1569_v34 = vpop.f32.mrb[19].mxu1  ;;  %v1582_v58 = vmul.f32 %v4682_v51, %v1567_v27  ;;  %v1944_v27 = vld [vmem:[#allocation10 + $0x50] sm:$0xff] }
 0x675   :  { %v1583_v61 = vmul.f32 %v4684_v30, %v1569_v34  ;;  %v1951_v34 = vld [vmem:[#allocation10 + $0x88] sm:$0xff] }
 0x677   :  { %v1573_v35 = vpop.f32.mrb[20].mxu1 }
 0x678   :  { %v1575_v19 = vpop.f32.mrb[21].mxu1  ;;  %v1584_v32 = vmul.f32 %v5322_v62, %v1573_v35  ;;  %v4312_v35 = vpack.c.bf16 %v1944_v27, %v1936_v26  ;;  %v4328_v27 = vpack.c.bf16 %v2008_v45, %v2000_v41  ;;  %v2081_v41 = vld [vmem:[#allocation10 + $0x498] sm:$0xff] }
 0x679   :  { %v1585_v2 = vmul.f32 %v5324_v12, %v1575_v19  ;;  %v1959_v19 = vld [vmem:[#allocation10 + $0xc8] sm:$0xff] }
 0x67a   :  { %4313 = vmatpush1.bf16.msra.mxu0 %v4312_v35  ;;  %v2014_v35 = vld [vmem:[#allocation10 + $0x280] sm:$0xff] }
 0x67b   :  { %v1652_v14 = vpop.f32.mrb[22].mxu1 }
 0x67c   :  { %v1675_v52 = vmul.f32 %v1652_v14, %v1578_v48  ;;  %v1654_v22 = vpop.f32.mrb[23].mxu1  ;;  %v1953_v48 = vld [vmem:[#allocation10 + $0x98] sm:$0xff]  ;;  %v4250_v14 = vpack.c.bf16 %v1959_v19, %v1951_v34  ;;  %v4266_v34 = vpack.c.bf16 %v2023_v24, %v2015_v47  ;;  %v2022_v19 = vld [vmem:[#allocation10 + $0x2c0] sm:$0xff] }
 0x67d   :  { %v1676_v53 = vmul.f32 %v1654_v22, %v1579_v50  ;;  %v1961_v50 = vld [vmem:[#allocation10 + $0xd8] sm:$0xff]  ;;  %v1950_v22 = vld [vmem:[#allocation10 + $0x80] sm:$0xff] }
 0x67f   :  { %v1658_v55 = vpop.f32.mrb[24].mxu1 }
 0x680   :  { %v1677_v23 = vmul.f32 %v1658_v55, %v1580_v13  ;;  %v1660_v56 = vpop.f32.mrb[25].mxu1  ;;  %v1952_v13 = vld [vmem:[#allocation10 + $0x90] sm:$0xff] }
 0x681   :  { %v1678_v57 = vmul.f32 %v1660_v56, %v1581_v54  ;;  %v1960_v55 = vld [vmem:[#allocation10 + $0xd0] sm:$0xff]  ;;  %v1975_v56 = vld [vmem:[#allocation10 + $0x148] sm:$0xff] }
 0x682   :  { %v4240_v36 = vpack.c.bf16 %v1677_v23, %v1675_v52  ;;  %v4314_v52 = vpack.c.bf16 %v1961_v50, %v1953_v48  ;;  %v1967_v23 = vld [vmem:[#allocation10 + $0x108] sm:$0xff]  ;;  %v2016_v48 = vld [vmem:[#allocation10 + $0x290] sm:$0xff] }
 0x683   :  { %v4238_v38 = vpack.c.bf16 %v1678_v57, %v1676_v53  ;;  %v1664_v63 = vpop.f32.mrb[26].mxu1  ;;  %v1958_v53 = vld [vmem:[#allocation10 + $0xc0] sm:$0xff]  ;;  %v4316_v57 = vpack.c.bf16 %v1960_v55, %v1952_v13  ;;  %v2041_v13 = vld [vmem:[#allocation10 + $0x358] sm:$0xff] }
 0x684   :  { %v1679_v0 = vmul.f32 %v1664_v63, %v1582_v58  ;;  %v1666_v31 = vpop.f32.mrb[27].mxu1  ;;  %v4252_v54 = vpack.c.bf16 %v1958_v53, %v1950_v22  ;;  %4315 = vmatprep.subr.bf16.mxu0 %v4314_v52  ;;  %v4254_v58 = vpack.c.bf16 %v1975_v56, %v1967_v23  ;;  %v2031_v52 = vld [vmem:[#allocation10 + $0x308] sm:$0xff]  ;;  %v2033_v53 = vld [vmem:[#allocation10 + $0x318] sm:$0xff]  ;;  %v2030_v56 = vld [vmem:[#allocation10 + $0x300] sm:$0xff] }
 0x685   :  { %v1680_v1 = vmul.f32 %v1666_v31, %v1583_v61  ;;  %4239 = vmatprep.subr.bf16.mxu1 %v4238_v38  ;;  %v1977_v61 = vld [vmem:[#allocation10 + $0x158] sm:$0xff]  ;;  %v1966_v38 = vld [vmem:[#allocation10 + $0x100] sm:$0xff]  ;;  %v1968_v31 = vld [vmem:[#allocation10 + $0x110] sm:$0xff]  ;;  %4317 = vmatpush1.bf16.msra.mxu0 %v4316_v57 }
 0x686   :  { %4241 = vmatpush1.bf16.msra.mxu1 %v4240_v36  ;;  %v1969_v36 = vld [vmem:[#allocation10 + $0x118] sm:$0xff]  ;;  %v2039_v22 = vld [vmem:[#allocation10 + $0x348] sm:$0xff]  ;;  %v2038_v57 = vld [vmem:[#allocation10 + $0x340] sm:$0xff] }
 0x687   :  { %v1670_v4 = vpop.f32.mrb[28].mxu1  ;;  %v4318_v63 = vpack.c.bf16 %v1977_v61, %v1969_v36  ;;  %v4270_v23 = vpack.c.bf16 %v2039_v22, %v2031_v52  ;;  %v4334_v36 = vpack.c.bf16 %v2041_v13, %v2033_v53  ;;  %v2040_v61 = vld [vmem:[#allocation10 + $0x350] sm:$0xff]  ;;  %v2095_v52 = vld [vmem:[#allocation10 + $0x508] sm:$0xff]  ;;  %v2097_v53 = vld [vmem:[#allocation10 + $0x518] sm:$0xff] }
 0x688   :  { %v1681_v5 = vmul.f32 %v1670_v4, %v1584_v32  ;;  %v1672_v42 = vpop.f32.mrb[29].mxu1  ;;  %v1991_v4 = vld [vmem:[#allocation10 + $0x1c8] sm:$0xff] }
 0x689   :  { %v1682_v6 = vmul.f32 %v1672_v42, %v1585_v2  ;;  %v1983_v2 = vld [vmem:[#allocation10 + $0x188] sm:$0xff]  ;;  %4319 = vmatprep.subr.bf16.mxu0 %v4318_v63 }
 0x68a   :  { %v4244_v7 = vpack.c.bf16 %v1681_v5, %v1679_v0  ;;  %v1974_v0 = vld [vmem:[#allocation10 + $0x140] sm:$0xff]  ;;  %v1985_v5 = vld [vmem:[#allocation10 + $0x198] sm:$0xff]  ;;  %v2055_v63 = vld [vmem:[#allocation10 + $0x3c8] sm:$0xff] }
 0x68b   :  { %v4242_v16 = vpack.c.bf16 %v1682_v6, %v1680_v1  ;;  %v1976_v1 = vld [vmem:[#allocation10 + $0x150] sm:$0xff]  ;;  %v4256_v32 = vpack.c.bf16 %v1974_v0, %v1966_v38  ;;  %v4258_v6 = vpack.c.bf16 %v1991_v4, %v1983_v2  ;;  %v2047_v38 = vld [vmem:[#allocation10 + $0x388] sm:$0xff]  ;;  %v2049_v0 = vld [vmem:[#allocation10 + $0x398] sm:$0xff] }
 0x68c   :  { %v4320_v42 = vpack.c.bf16 %v1976_v1, %v1968_v31  ;;  %v2057_v31 = vld [vmem:[#allocation10 + $0x3d8] sm:$0xff]  ;;  %v4272_v1 = vpack.c.bf16 %v2038_v57, %v2030_v56  ;;  %v4274_v2 = vpack.c.bf16 %v2055_v63, %v2047_v38  ;;  %v2046_v4 = vld [vmem:[#allocation10 + $0x380] sm:$0xff]  ;;  %v2103_v22 = vld [vmem:[#allocation10 + $0x548] sm:$0xff] }
 0x68d   :  { %4243 = vmatprep.subr.bf16.mxu1 %v4242_v16  ;;  %v1982_v16 = vld [vmem:[#allocation10 + $0x180] sm:$0xff]  ;;  %v2096_v63 = vld [vmem:[#allocation10 + $0x510] sm:$0xff] }
 0x68e   :  { %4245 = vmatpush1.bf16.msra.mxu1 %v4244_v7  ;;  %v1993_v7 = vld [vmem:[#allocation10 + $0x1d8] sm:$0xff]  ;;  %4321 = vmatpush1.bf16.msra.mxu0 %v4320_v42  ;;  %v2048_v42 = vld [vmem:[#allocation10 + $0x390] sm:$0xff]  ;;  %v2102_v56 = vld [vmem:[#allocation10 + $0x540] sm:$0xff] }
 0x68f   :  { %3846 = vmatprep.subr.mxu1 %v4955_v15 }
 0x691   :  { %3747 = vmatmul.mubr.msk.f32.vlgmr.msra.gmra.mrb[30].mxu1 %vm1082_vm1, %v5331_v40  ;;  %v1943_v40 = vld [vmem:[#allocation10 + $0x48] sm:$0xff] }
 0x692   :  { %3848 = vmatprep.mubr.msk.f32.mxu1 %vm4957_vm2, %v4955_v15  ;;  %v4246_v43 = vpack.c.bf16 %v1943_v40, %v1935_v11  ;;  %v1998_v11 = vld [vmem:[#allocation10 + $0x200] sm:$0xff] }
 0x693   :  { %v2006_v40 = vld [vmem:[#allocation10 + $0x240] sm:$0xff] }
 0x694   :  { %v4264_v26 = vpack.c.bf16 %v2006_v40, %v1998_v11  ;;  %v2079_v11 = vld [vmem:[#allocation10 + $0x488] sm:$0xff] }
 0x695   :  { %v2087_v40 = vld [vmem:[#allocation10 + $0x4c8] sm:$0xff] }
 0x696   :  { %v4282_v24 = vpack.c.bf16 %v2087_v40, %v2079_v11  ;;  %v2134_v40 = vld [vmem:[#allocation10 + $0x640] sm:$0xff] }
 0x764   :  { %v1749_v44 = vpop.f32.mrb[30].mxu1 }
 0x765   :  { %v1754_v3 = vmul.f32 0.25, %v1749_v44  ;;  %v1751_v17 = vpop.f32.mrb[31].mxu1  ;;  %v1990_v44 = vld [vmem:[#allocation10 + $0x1c0] sm:$0xff] }
 0x766   :  { %v1755_v46 = vmul.f32 0.25, %v1751_v17  ;;  %v1984_v17 = vld [vmem:[#allocation10 + $0x190] sm:$0xff] }
 0x767   :  { %v5368_v20 = vadd.f32 %v1754_v3, %v5212_v28  ;;  %v145_v28 = vld [vmem:[%s5656_s6] sm:$0xff]  ;;  %v4322_v3 = vpack.c.bf16 %v1993_v7, %v1985_v5  ;;  %v2054_v5 = vld [vmem:[#allocation10 + $0x3c0] sm:$0xff] }
 0x768   :  { %v5371_v21 = vadd.f32 %v1755_v46, %v5214_v29  ;;  %v1992_v46 = vld [vmem:[#allocation10 + $0x1d0] sm:$0xff] }
 0x769   :  { %v1761_v51 = vmul.f32 %v5368_v20, %v5368_v20  ;;  %4323 = vmatprep.subr.bf16.mxu0 %v4322_v3  ;;  %v2056_v7 = vld [vmem:[#allocation10 + $0x3d0] sm:$0xff]  ;;  %v2065_v3 = vld [vmem:[#allocation10 + $0x418] sm:$0xff] }
 0x76a   :  { %v1758_v30 = vadd.f32 %v5371_v21, %v5368_v20  ;;  %v1762_v62 = vmul.f32 %v5371_v21, %v5371_v21 }
 0x76c   :  { %1759 = vadd.xlane.f32.xlu1 %v1758_v30  ;;  %v1763_v12 = vadd.f32 %v1762_v62, %v1761_v51  ;;  %v1999_v51 = vld [vmem:[#allocation10 + $0x208] sm:$0xff]  ;;  %v2001_v62 = vld [vmem:[#allocation10 + $0x218] sm:$0xff] }
 0x76d   :  { %v2007_v30 = vld [vmem:[#allocation10 + $0x248] sm:$0xff] }
 0x76e   :  { %1764 = vadd.xlane.f32.xlu0 %v1763_v12  ;;  %v2009_v12 = vld [vmem:[#allocation10 + $0x258] sm:$0xff] }
 0x7f9   :  { %v1760_v29 = vpop.xlane.xlu1 %1759 }
 0x7fa   :  { %3847 = vmatpush3.msra.mxu1 %v1760_v29  ;;  %v4324_v29 = vpack.c.bf16 %v1992_v46, %v1984_v17  ;;  %v2073_v17 = vld [vmem:[#allocation10 + $0x458] sm:$0xff]  ;;  %v4276_v46 = vpack.c.bf16 %v2054_v5, %v2046_v4 }
 0x7fb   :  { %v1765_v39 = vpop.xlane.xlu0 %1764  ;;  %3849 = vmatmul.mubr.msk.f32.vlgmr.msra.gmra.mrb[32].mxu1 %vm839_vm0, %v145_v28  ;;  %3851 = vmatprep.subr.mxu1 %v4955_v15  ;;  %v2121_v4 = vld [vmem:[#allocation10 + $0x5d8] sm:$0xff] }
 0x7fc   :  { %3852 = vmatpush3.msra.mxu1 %v1765_v39  ;;  %3853 = vmatprep.mubr.msk.f32.mxu1 %vm4957_vm2, %v4955_v15  ;;  %v4262_v39 = vpack.c.bf16 %v2007_v30, %v1999_v51  ;;  %v4340_v51 = vpack.c.bf16 %v2056_v7, %v2048_v42  ;;  %v2110_v7 = vld [vmem:[#allocation10 + $0x580] sm:$0xff] }
 0x7fd   :  { %4247 = vmatprep.subr.bf16.mxu1 %v4246_v43  ;;  %v4326_v43 = vpack.c.bf16 %v2009_v12, %v2001_v62  ;;  %4325 = vmatpush1.bf16.msra.mxu0 %v4324_v29  ;;  %v2062_v62 = vld [vmem:[#allocation10 + $0x400] sm:$0xff]  ;;  %v4342_v29 = vpack.c.bf16 %v2073_v17, %v2065_v3  ;;  %v2120_v17 = vld [vmem:[#allocation10 + $0x5d0] sm:$0xff] }
 0x7fe   :  { %v2070_v12 = vld [vmem:[#allocation10 + $0x440] sm:$0xff] }
 0x7ff   :  { %3854 = vmatmul.mubr.msk.f32.vlgmr.msra.gmra.mrb[34].mxu1 %vm839_vm0, %v145_v28  ;;  %v4260_v28 = vpack.c.bf16 %v1990_v44, %v1982_v16  ;;  %4327 = vmatprep.subr.bf16.mxu0 %v4326_v43  ;;  %v2063_v16 = vld [vmem:[#allocation10 + $0x408] sm:$0xff]  ;;  %v2089_v43 = vld [vmem:[#allocation10 + $0x4d8] sm:$0xff]  ;;  %v4280_v45 = vpack.c.bf16 %v2070_v12, %v2062_v62 }
 0x800   :  { %4249 = vmatpush1.bf16.msra.mxu1 %v4248_v18  ;;  %v2025_v18 = vld [vmem:[#allocation10 + $0x2d8] sm:$0xff]  ;;  %v2071_v44 = vld [vmem:[#allocation10 + $0x448] sm:$0xff] }
 0x801   :  { %4251 = vmatprep.subr.bf16.mxu1 %v4250_v14  ;;  %v4330_v50 = vpack.c.bf16 %v2025_v18, %v2017_v25  ;;  %v2024_v14 = vld [vmem:[#allocation10 + $0x2d0] sm:$0xff]  ;;  %4329 = vmatpush1.bf16.msra.mxu0 %v4328_v27  ;;  %v4278_v30 = vpack.c.bf16 %v2071_v44, %v2063_v16  ;;  %v4346_v25 = vpack.c.bf16 %v2089_v43, %v2081_v41  ;;  %v2086_v27 = vld [vmem:[#allocation10 + $0x4c0] sm:$0xff] }
 0x802   :  { %v4332_v55 = vpack.c.bf16 %v2024_v14, %v2016_v48  ;;  %v2118_v16 = vld [vmem:[#allocation10 + $0x5c0] sm:$0xff]  ;;  %v2112_v44 = vld [vmem:[#allocation10 + $0x590] sm:$0xff] }
 0x803   :  { %4331 = vmatprep.subr.bf16.mxu0 %v4330_v50  ;;  %v2088_v50 = vld [vmem:[#allocation10 + $0x4d0] sm:$0xff]  ;;  %v4292_v3 = vpack.c.bf16 %v2118_v16, %v2110_v7  ;;  %v4356_v62 = vpack.c.bf16 %v2120_v17, %v2112_v44  ;;  %v1939_v17 = vld [vmem:[#allocation10 + $0x28] sm:$0xff] }
 0x804   :  { %4253 = vmatpush1.bf16.msra.mxu1 %v4252_v54  ;;  %v4268_v54 = vpack.c.bf16 %v2022_v19, %v2014_v35  ;;  %v2128_v41 = vld [vmem:[#allocation10 + $0x610] sm:$0xff] }
 0x805   :  { %4255 = vmatprep.subr.bf16.mxu1 %v4254_v58  ;;  %v2032_v58 = vld [vmem:[#allocation10 + $0x310] sm:$0xff]  ;;  %4333 = vmatpush1.bf16.msra.mxu0 %v4332_v55  ;;  %v2105_v55 = vld [vmem:[#allocation10 + $0x558] sm:$0xff] }
 0x806   :  { %4335 = vmatprep.subr.bf16.mxu0 %v4334_v36  ;;  %v2136_v43 = vld [vmem:[#allocation10 + $0x650] sm:$0xff] }
 0x807   :  { %v2176_v16 = vld [vmem:[#allocation10 + $0x790] sm:$0xff] }
 0x808   :  { %4257 = vmatpush1.bf16.msra.mxu1 %v4256_v32  ;;  %v4336_v32 = vpack.c.bf16 %v2040_v61, %v2032_v58  ;;  %v4350_v61 = vpack.c.bf16 %v2105_v55, %v2097_v53  ;;  %v2161_v53 = vld [vmem:[#allocation10 + $0x718] sm:$0xff]  ;;  %v2184_v44 = vld [vmem:[#allocation10 + $0x7d0] sm:$0xff] }
 0x809   :  { %4259 = vmatprep.subr.bf16.mxu1 %v4258_v6  ;;  %v4338_v6 = vpack.c.bf16 %v2057_v31, %v2049_v0  ;;  %v2104_v0 = vld [vmem:[#allocation10 + $0x550] sm:$0xff]  ;;  %v2111_v31 = vld [vmem:[#allocation10 + $0x588] sm:$0xff] }
 0x80a   :  { %4337 = vmatpush1.bf16.msra.mxu0 %v4336_v32  ;;  %v2119_v32 = vld [vmem:[#allocation10 + $0x5c8] sm:$0xff] }
 0x80b   :  { %4339 = vmatprep.subr.bf16.mxu0 %v4338_v6  ;;  %v4290_v42 = vpack.c.bf16 %v2119_v32, %v2111_v31  ;;  %v2175_v31 = vld [vmem:[#allocation10 + $0x788] sm:$0xff]  ;;  %v2177_v32 = vld [vmem:[#allocation10 + $0x798] sm:$0xff] }
 0x80c   :  { %4261 = vmatpush1.bf16.msra.mxu1 %v4260_v28  ;;  %v2064_v28 = vld [vmem:[#allocation10 + $0x410] sm:$0xff] }
 0x80d   :  { %4263 = vmatprep.subr.bf16.mxu1 %v4262_v39  ;;  %v2072_v39 = vld [vmem:[#allocation10 + $0x450] sm:$0xff] }
 0x80e   :  { %4341 = vmatpush1.bf16.msra.mxu0 %v4340_v51  ;;  %v4344_v47 = vpack.c.bf16 %v2072_v39, %v2064_v28  ;;  %v2135_v51 = vld [vmem:[#allocation10 + $0x648] sm:$0xff]  ;;  %v2129_v28 = vld [vmem:[#allocation10 + $0x618] sm:$0xff]  ;;  %v2126_v39 = vld [vmem:[#allocation10 + $0x600] sm:$0xff] }
 0x80f   :  { %4343 = vmatprep.subr.bf16.mxu0 %v4342_v29  ;;  %v2137_v29 = vld [vmem:[#allocation10 + $0x658] sm:$0xff] }
 0x810   :  { %4265 = vmatpush1.bf16.msra.mxu1 %v4264_v26  ;;  %v2078_v26 = vld [vmem:[#allocation10 + $0x480] sm:$0xff]  ;;  %v4358_v11 = vpack.c.bf16 %v2137_v29, %v2129_v28 }
 0x811   :  { %4267 = vmatprep.subr.bf16.mxu1 %v4266_v34  ;;  %v2080_v34 = vld [vmem:[#allocation10 + $0x490] sm:$0xff]  ;;  %v4284_v48 = vpack.c.bf16 %v2086_v27, %v2078_v26  ;;  %v4360_v26 = vpack.c.bf16 %v2136_v43, %v2128_v41  ;;  %v1938_v43 = vld [vmem:[#allocation10 + $0x20] sm:$0xff] }
 0x812   :  { %4345 = vmatpush1.bf16.msra.mxu0 %v4344_v47  ;;  %v4348_v14 = vpack.c.bf16 %v2088_v50, %v2080_v34  ;;  %v4296_v47 = vpack.c.bf16 %v2134_v40, %v2126_v39  ;;  %v2153_v34 = vld [vmem:[#allocation10 + $0x6d8] sm:$0xff]  ;;  %v2144_v50 = vld [vmem:[#allocation10 + $0x690] sm:$0xff] }
 0x813   :  { %4347 = vmatprep.subr.bf16.mxu0 %v4346_v25  ;;  %v2151_v25 = vld [vmem:[#allocation10 + $0x6c8] sm:$0xff] }
 0x814   :  { %4269 = vmatpush1.bf16.msra.mxu1 %v4268_v54  ;;  %v4286_v54 = vpack.c.bf16 %v2103_v22, %v2095_v52  ;;  %v2159_v52 = vld [vmem:[#allocation10 + $0x708] sm:$0xff] }
 0x815   :  { %4271 = vmatprep.subr.bf16.mxu1 %v4270_v23  ;;  %v2094_v23 = vld [vmem:[#allocation10 + $0x500] sm:$0xff]  ;;  %v2167_v22 = vld [vmem:[#allocation10 + $0x748] sm:$0xff] }
 0x816   :  { %4349 = vmatpush1.bf16.msra.mxu0 %v4348_v14  ;;  %v4288_v38 = vpack.c.bf16 %v2102_v56, %v2094_v23  ;;  %v2152_v14 = vld [vmem:[#allocation10 + $0x6d0] sm:$0xff]  ;;  %v4302_v23 = vpack.c.bf16 %v2167_v22, %v2159_v52  ;;  %v2158_v56 = vld [vmem:[#allocation10 + $0x700] sm:$0xff] }
 0x817   :  { %4351 = vmatprep.subr.bf16.mxu0 %v4350_v61  ;;  %v4364_v55 = vpack.c.bf16 %v2152_v14, %v2144_v50  ;;  %v2168_v61 = vld [vmem:[#allocation10 + $0x750] sm:$0xff]  ;;  %v1954_v52 = vld [vmem:[#allocation10 + $0xa0] sm:$0xff] }
 0x818   :  { %4273 = vmatpush1.bf16.msra.mxu1 %v4272_v1  ;;  %v4352_v1 = vpack.c.bf16 %v2104_v0, %v2096_v63  ;;  %v1962_v22 = vld [vmem:[#allocation10 + $0xe0] sm:$0xff] }
 0x819   :  { %4275 = vmatprep.subr.bf16.mxu1 %v4274_v2  ;;  %v2113_v2 = vld [vmem:[#allocation10 + $0x598] sm:$0xff] }
 0x81a   :  { %v4354_v6 = vpack.c.bf16 %v2121_v4, %v2113_v2  ;;  %4353 = vmatpush1.bf16.msra.mxu0 %v4352_v1  ;;  %v2183_v1 = vld [vmem:[#allocation10 + $0x7c8] sm:$0xff]  ;;  %v2185_v4 = vld [vmem:[#allocation10 + $0x7d8] sm:$0xff] }
 0x81b   :  { %v4306_v2 = vpack.c.bf16 %v2183_v1, %v2175_v31  ;;  %v1972_v1 = vld [vmem:[#allocation10 + $0x130] sm:$0xff] }
 0x81c   :  { %4277 = vmatpush1.bf16.msra.mxu1 %v4276_v46  ;;  %v2127_v46 = vld [vmem:[#allocation10 + $0x608] sm:$0xff]  ;;  %4355 = vmatprep.subr.bf16.mxu0 %v4354_v6  ;;  %v4370_v6 = vpack.c.bf16 %v2185_v4, %v2177_v32  ;;  %v1980_v32 = vld [vmem:[#allocation10 + $0x170] sm:$0xff] }
 0x81d   :  { %4279 = vmatprep.subr.bf16.mxu1 %v4278_v30  ;;  %v4294_v12 = vpack.c.bf16 %v2135_v51, %v2127_v46  ;;  %v1947_v46 = vld [vmem:[#allocation10 + $0x68] sm:$0xff]  ;;  %v1941_v51 = vld [vmem:[#allocation10 + $0x38] sm:$0xff] }
 0x81e   :  { %4357 = vmatpush1.bf16.msra.mxu0 %v4356_v62  ;;  %v1949_v62 = vld [vmem:[#allocation10 + $0x78] sm:$0xff]  ;;  %v1995_v4 = vld [vmem:[#allocation10 + $0x1e8] sm:$0xff] }
 0x81f   :  { %4359 = vmatprep.subr.bf16.mxu0 %v4358_v11 }
 0x820   :  { %4281 = vmatpush1.bf16.msra.mxu1 %v4280_v45 }
 0x821   :  { %4283 = vmatprep.subr.bf16.mxu1 %v4282_v24  ;;  %v2143_v24 = vld [vmem:[#allocation10 + $0x688] sm:$0xff] }
 0x822   :  { %v4298_v27 = vpack.c.bf16 %v2151_v25, %v2143_v24  ;;  %4361 = vmatpush1.bf16.msra.mxu0 %v4360_v26  ;;  %v1948_v24 = vld [vmem:[#allocation10 + $0x70] sm:$0xff]  ;;  %v4742_v26 = vld [vmem:[#allocation2 + $0x8] sm:$0xff] }
 0x823   :  { %v4741_v25 = vld [vmem:[#allocation2] sm:$0xff] }
 0x824   :  { %4285 = vmatpush1.bf16.msra.mxu1 %v4284_v48 }
 0x825   :  { %4287 = vmatprep.subr.bf16.mxu1 %v4286_v54 }
 0x828   :  { %4289 = vmatpush1.bf16.msra.mxu1 %v4288_v38 }
 0x829   :  { %4291 = vmatprep.subr.bf16.mxu1 %v4290_v42  ;;  %v2182_v42 = vld [vmem:[#allocation10 + $0x7c0] sm:$0xff] }
 0x82c   :  { %4293 = vmatpush1.bf16.msra.mxu1 %v4292_v3  ;;  %v4372_v3 = vpack.c.bf16 %v2184_v44, %v2176_v16  ;;  %v1986_v16 = vld [vmem:[#allocation10 + $0x1a0] sm:$0xff] }
 0x82d   :  { %4295 = vmatprep.subr.bf16.mxu1 %v4294_v12  ;;  %v4438_v12 = vpack.c.bf16 %v1949_v62, %v1941_v51  ;;  %v1994_v44 = vld [vmem:[#allocation10 + $0x1e0] sm:$0xff]  ;;  %v1996_v51 = vld [vmem:[#allocation10 + $0x1f0] sm:$0xff]  ;;  %v2011_v62 = vld [vmem:[#allocation10 + $0x268] sm:$0xff] }
 0x830   :  { %4297 = vmatpush1.bf16.msra.mxu1 %v4296_v47  ;;  %v1940_v47 = vld [vmem:[#allocation10 + $0x30] sm:$0xff] }
 0x831   :  { %4299 = vmatprep.subr.bf16.mxu1 %v4298_v27  ;;  %v4440_v14 = vpack.c.bf16 %v1948_v24, %v1940_v47  ;;  %v2012_v47 = vld [vmem:[#allocation10 + $0x270] sm:$0xff]  ;;  %v2019_v24 = vld [vmem:[#allocation10 + $0x2a8] sm:$0xff] }
 0x8ce   :  { %v1835_v18 = vpop.f32.mrb[32].mxu1 }
 0x8cf   :  { %v1839_v35 = vmul.f32 0.001953125, %v1835_v18  ;;  %v3850_v19 = vpop.f32.mrb[33].mxu1  ;;  %v2145_v18 = vld [vmem:[#allocation10 + $0x698] sm:$0xff] }
 0x8d0   :  { %v2150_v19 = vld [vmem:[#allocation10 + $0x6c0] sm:$0xff]  ;;  %v4362_v48 = vpack.c.bf16 %v2153_v34, %v2145_v18  ;;  %v1955_v34 = vld [vmem:[#allocation10 + $0xa8] sm:$0xff] }
 0x8d1   :  { %1916 = vperm.xlu0 %4647, %v1839_v35   ;;  %v1911_v57 = vmul.f32 %v1839_v35, %v1839_v35  ;;  %v2142_v35 = vld [vmem:[#allocation10 + $0x680] sm:$0xff] }
 0x8d2   :  { %v1906_v13 = vpop.f32.mrb[34].mxu1  ;;  %v4300_v54 = vpack.c.bf16 %v2150_v19, %v2142_v35  ;;  %4363 = vmatprep.subr.bf16.mxu0 %v4362_v48  ;;  %v1963_v35 = vld [vmem:[#allocation10 + $0xe8] sm:$0xff]  ;;  %v1957_v19 = vld [vmem:[#allocation10 + $0xb8] sm:$0xff] }
 0x8d3   :  { %v1910_v58 = vmul.f32 0.001953125, %v1906_v13  ;;  %v3855_v36 = vpop.f32.mrb[35].mxu1  ;;  %v2169_v13 = vld [vmem:[#allocation10 + $0x758] sm:$0xff]  ;;  %4365 = vmatpush1.bf16.msra.mxu0 %v4364_v55  ;;  %v4378_v55 = vpack.c.bf16 %v1963_v35, %v1955_v34  ;;  %v2018_v35 = vld [vmem:[#allocation10 + $0x2a0] sm:$0xff] }
 0x8d4   :  { %v2160_v36 = vld [vmem:[#allocation10 + $0x710] sm:$0xff]  ;;  %4301 = vmatpush1.bf16.msra.mxu1 %v4300_v54  ;;  %v1965_v48 = vld [vmem:[#allocation10 + $0xf8] sm:$0xff]  ;;  %v1971_v54 = vld [vmem:[#allocation10 + $0x128] sm:$0xff] }
 0x8d5   :  { %v1912_v5 = vsub.f32 %v1910_v58, %v1911_v57  ;;  %v2166_v57 = vld [vmem:[#allocation10 + $0x740] sm:$0xff]  ;;  %v4366_v58 = vpack.c.bf16 %v2169_v13, %v2161_v53  ;;  %4303 = vmatprep.subr.bf16.mxu1 %v4302_v23  ;;  %v4368_v63 = vpack.c.bf16 %v2168_v61, %v2160_v36  ;;  %v1956_v53 = vld [vmem:[#allocation10 + $0xb0] sm:$0xff]  ;;  %v4442_v23 = vpack.c.bf16 %v1965_v48, %v1957_v19 }
 0x8d6   :  { %v4304_v38 = vpack.c.bf16 %v2166_v57, %v2158_v56  ;;  %v1964_v13 = vld [vmem:[#allocation10 + $0xf0] sm:$0xff]  ;;  %v1979_v56 = vld [vmem:[#allocation10 + $0x168] sm:$0xff]  ;;  %v1973_v57 = vld [vmem:[#allocation10 + $0x138] sm:$0xff]  ;;  %v4380_v36 = vpack.c.bf16 %v1962_v22, %v1954_v52 }
 0x8d7   :  { %v1913_v30 = vmax.f32 %v1912_v5, 0.0  ;;  %4367 = vmatprep.subr.bf16.mxu0 %v4366_v58  ;;  %v2174_v5 = vld [vmem:[#allocation10 + $0x780] sm:$0xff]  ;;  %v1981_v58 = vld [vmem:[#allocation10 + $0x178] sm:$0xff]  ;;  %v4444_v61 = vpack.c.bf16 %v1964_v13, %v1956_v53  ;;  %v2028_v52 = vld [vmem:[#allocation10 + $0x2f0] sm:$0xff] }
 0x8d8   :  { %4305 = vmatpush1.bf16.msra.mxu1 %v4304_v38  ;;  %4369 = vmatpush1.bf16.msra.mxu0 %v4368_v63  ;;  %v4308_v7 = vpack.c.bf16 %v2182_v42, %v2174_v5  ;;  %v1970_v38 = vld [vmem:[#allocation10 + $0x120] sm:$0xff]  ;;  %v4446_v31 = vpack.c.bf16 %v1981_v58, %v1973_v57  ;;  %v1989_v5 = vld [vmem:[#allocation10 + $0x1b8] sm:$0xff]  ;;  %v2035_v22 = vld [vmem:[#allocation10 + $0x328] sm:$0xff] }
 0x8d9   :  { %v1921_v45 = vadd.f32 1e-05, %v1913_v30  ;;  %4307 = vmatprep.subr.bf16.mxu1 %v4306_v2  ;;  %4371 = vmatprep.subr.bf16.mxu0 %v4370_v6  ;;  %v4374_v30 = vpack.c.bf16 %v1947_v46, %v1939_v17  ;;  %v1978_v63 = vld [vmem:[#allocation10 + $0x160] sm:$0xff]  ;;  %v1987_v2 = vld [vmem:[#allocation10 + $0x1a8] sm:$0xff]  ;;  %v1997_v42 = vld [vmem:[#allocation10 + $0x1f8] sm:$0xff] }
 0x8da   :  { %v4384_v6 = vpack.c.bf16 %v1978_v63, %v1970_v38  ;;  %v4450_v17 = vpack.c.bf16 %v1997_v42, %v1989_v5  ;;  %v1988_v46 = vld [vmem:[#allocation10 + $0x1b0] sm:$0xff]  ;;  %v2026_v19 = vld [vmem:[#allocation10 + $0x2e0] sm:$0xff]  ;;  %v2043_v53 = vld [vmem:[#allocation10 + $0x368] sm:$0xff] }
 0x8db   :  { %4693 = vrsqrt.f32 %v1921_v45  ;;  %v1946_v45 = vld [vmem:[#allocation10 + $0x60] sm:$0xff]  ;;  %v2037_v13 = vld [vmem:[#allocation10 + $0x338] sm:$0xff]  ;;  %v4398_v58 = vpack.c.bf16 %v2043_v53, %v2035_v22  ;;  %v2044_v38 = vld [vmem:[#allocation10 + $0x370] sm:$0xff] }
 0x8dc   :  { %4309 = vmatpush1.bf16.msra.mxu1 %v4308_v7  ;;  %4373 = vmatpush1.bf16.msra.mxu0 %v4372_v3  ;;  %v4448_v7 = vpack.c.bf16 %v1980_v32, %v1972_v1  ;;  %v4386_v3 = vpack.c.bf16 %v1995_v4, %v1987_v2  ;;  %v2042_v57 = vld [vmem:[#allocation10 + $0x360] sm:$0xff]  ;;  %v2051_v63 = vld [vmem:[#allocation10 + $0x3a8] sm:$0xff]  ;;  %v2061_v1 = vld [vmem:[#allocation10 + $0x3f8] sm:$0xff] }
 0x8dd   :  { %4375 = vmatprep.subr.bf16.mxu1 %v4374_v30  ;;  %4439 = vmatprep.subr.bf16.mxu0 %v4438_v12  ;;  %v2003_v30 = vld [vmem:[#allocation10 + $0x228] sm:$0xff]  ;;  %v2005_v12 = vld [vmem:[#allocation10 + $0x238] sm:$0xff]  ;;  %v2050_v4 = vld [vmem:[#allocation10 + $0x3a0] sm:$0xff] }
 0x8de   :  { %v2058_v5 = vld [vmem:[#allocation10 + $0x3e0] sm:$0xff] }
 0x8df   :  { %v2098_v53 = vld [vmem:[#allocation10 + $0x520] sm:$0xff] }
 0x8e5   :  { %v4694_v0 = vpop.eup %4693 }
 0x8e6   :  { %1925 = vperm.xlu1 %4648, %v4694_v0   ;;  %v4382_v0 = vpack.c.bf16 %v1979_v56, %v1971_v54  ;;  %v2045_v54 = vld [vmem:[#allocation10 + $0x378] sm:$0xff]  ;;  %v2034_v56 = vld [vmem:[#allocation10 + $0x320] sm:$0xff] }
 0x8e7   :  { %v4400_v32 = vpack.c.bf16 %v2042_v57, %v2034_v56  ;;  %v2108_v56 = vld [vmem:[#allocation10 + $0x570] sm:$0xff]  ;;  %v2115_v57 = vld [vmem:[#allocation10 + $0x5a8] sm:$0xff] }
 0x950   :  { %v1917_v28 = vpop.permute.xlu0 %1916 }
 0x951   :  { %v1919_v29 = vsub.f32 %v5368_v20, %v1917_v28  ;;  %v1920_v39 = vsub.f32 %v5371_v21, %v1917_v28  ;;  %v4376_v21 = vpack.c.bf16 %v1946_v45, %v1938_v43  ;;  %v2013_v28 = vld [vmem:[#allocation10 + $0x278] sm:$0xff]  ;;  %v2004_v45 = vld [vmem:[#allocation10 + $0x230] sm:$0xff] }
 0x952   :  { %v4454_v43 = vpack.c.bf16 %v2013_v28, %v2005_v12  ;;  %v4456_v34 = vpack.c.bf16 %v2012_v47, %v2004_v45  ;;  %v2074_v12 = vld [vmem:[#allocation10 + $0x460] sm:$0xff]  ;;  %v2093_v45 = vld [vmem:[#allocation10 + $0x4f8] sm:$0xff] }
 0x965   :  { %v1926_v11 = vpop.permute.xlu1 %1925 }
 0x966   :  { %v1928_v40 = vmul.f32 %v1926_v11, %v1919_v29  ;;  %v1929_v41 = vmul.f32 %v1926_v11, %v1920_v39  ;;  %v4388_v29 = vpack.c.bf16 %v1994_v44, %v1986_v16  ;;  %v4452_v39 = vpack.c.bf16 %v1996_v51, %v1988_v46  ;;  %v2002_v11 = vld [vmem:[#allocation10 + $0x220] sm:$0xff]  ;;  %v2060_v16 = vld [vmem:[#allocation10 + $0x3f0] sm:$0xff]  ;;  %v2067_v44 = vld [vmem:[#allocation10 + $0x428] sm:$0xff] }
 0x967   :  { %v2077_v46 = vld [vmem:[#allocation10 + $0x478] sm:$0xff]  ;;  %v4404_v51 = vpack.c.bf16 %v2058_v5, %v2050_v4  ;;  %v2124_v4 = vld [vmem:[#allocation10 + $0x5f0] sm:$0xff]  ;;  %v2131_v5 = vld [vmem:[#allocation10 + $0x628] sm:$0xff] }
 0x968   :  { %v1930_v18 = vadd.f32 %v4741_v25, %v1928_v40  ;;  %v1931_v27 = vadd.f32 %v4742_v26, %v1929_v41  ;;  %v2010_v40 = vld [vmem:[#allocation10 + $0x260] sm:$0xff]  ;;  %v4390_v41 = vpack.c.bf16 %v2011_v62, %v2003_v30  ;;  %v2027_v25 = vld [vmem:[#allocation10 + $0x2e8] sm:$0xff]  ;;  %v2029_v26 = vld [vmem:[#allocation10 + $0x2f8] sm:$0xff] }
 0x969   :  { %v4394_v48 = vpack.c.bf16 %v2027_v25, %v2019_v24  ;;  %v2066_v62 = vld [vmem:[#allocation10 + $0x420] sm:$0xff] }
 0x96a   :  { %v5391_v50 = vmax.f32 %v1930_v18, 0.0  ;;  %v5393_v20 = vmax.f32 %v1931_v27, 0.0  ;;  %v2021_v18 = vld [vmem:[#allocation10 + $0x2b8] sm:$0xff]  ;;  %v4392_v27 = vpack.c.bf16 %v2010_v40, %v2002_v11  ;;  %v2076_v11 = vld [vmem:[#allocation10 + $0x470] sm:$0xff]  ;;  %v2083_v40 = vld [vmem:[#allocation10 + $0x4a8] sm:$0xff]  ;;  %v4408_v47 = vpack.c.bf16 %v2074_v12, %v2066_v62 }
 0x96b   :  { %v2082_v25 = vld [vmem:[#allocation10 + $0x4a0] sm:$0xff]  ;;  %v2140_v62 = vld [vmem:[#allocation10 + $0x670] sm:$0xff]  ;;  %v2147_v12 = vld [vmem:[#allocation10 + $0x6a8] sm:$0xff] }
 0x96c   :  { %2318 = vmatprep.mubr.f32.mxu1 %v5393_v20  ;;  %2389 = vmatprep.mubr.f32.mxu0 %v5393_v20 }
 0x96d   :  { %2319 = vmatmul.mubr.f32.vlgmr.msra.gmra.mrb[36].mxu1 %v5391_v50  ;;  %2390 = vmatmul.mubr.f32.vlgmr.msra.gmra.mrb[12].mxu0 %v5391_v50 }
 0x96e   :  { %4377 = vmatpush1.bf16.msra.mxu1 %v4376_v21  ;;  %4441 = vmatpush1.bf16.msra.mxu0 %v4440_v14  ;;  %v4458_v21 = vpack.c.bf16 %v2029_v26, %v2021_v18  ;;  %v2020_v14 = vld [vmem:[#allocation10 + $0x2b0] sm:$0xff]  ;;  %v2090_v18 = vld [vmem:[#allocation10 + $0x4e0] sm:$0xff] }
 0x96f   :  { %2460 = vmatprep.mubr.f32.mxu1 %v5393_v20  ;;  %2531 = vmatprep.mubr.f32.mxu0 %v5393_v20 }
 0x970   :  { %4379 = vmatprep.subr.bf16.mxu1 %v4378_v55  ;;  %4443 = vmatprep.subr.bf16.mxu0 %v4442_v23  ;;  %v4396_v55 = vpack.c.bf16 %v2026_v19, %v2018_v35  ;;  %v4460_v23 = vpack.c.bf16 %v2028_v52, %v2020_v14  ;;  %v2092_v35 = vld [vmem:[#allocation10 + $0x4f0] sm:$0xff]  ;;  %v2099_v19 = vld [vmem:[#allocation10 + $0x528] sm:$0xff]  ;;  %v2109_v14 = vld [vmem:[#allocation10 + $0x578] sm:$0xff]  ;;  %v4412_v52 = vpack.c.bf16 %v2090_v18, %v2082_v25 }
 0x971   :  { %v2156_v25 = vld [vmem:[#allocation10 + $0x6f0] sm:$0xff]  ;;  %v2163_v18 = vld [vmem:[#allocation10 + $0x728] sm:$0xff] }
 0x972   :  { %4381 = vmatpush1.bf16.msra.mxu1 %v4380_v36  ;;  %4445 = vmatpush1.bf16.msra.mxu0 %v4444_v61  ;;  %v4462_v36 = vpack.c.bf16 %v2045_v54, %v2037_v13  ;;  %v2036_v61 = vld [vmem:[#allocation10 + $0x330] sm:$0xff]  ;;  %v2106_v13 = vld [vmem:[#allocation10 + $0x560] sm:$0xff] }
 0x973   :  { %4383 = vmatprep.subr.bf16.mxu1 %v4382_v0  ;;  %4447 = vmatprep.subr.bf16.mxu0 %v4446_v31  ;;  %v2059_v0 = vld [vmem:[#allocation10 + $0x3e8] sm:$0xff]  ;;  %v2053_v31 = vld [vmem:[#allocation10 + $0x3b8] sm:$0xff]  ;;  %v4464_v2 = vpack.c.bf16 %v2044_v38, %v2036_v61  ;;  %v4416_v38 = vpack.c.bf16 %v2106_v13, %v2098_v53  ;;  %v2172_v53 = vld [vmem:[#allocation10 + $0x770] sm:$0xff] }
 0x974   :  { %v4402_v42 = vpack.c.bf16 %v2059_v0, %v2051_v63  ;;  %v2125_v61 = vld [vmem:[#allocation10 + $0x5f8] sm:$0xff]  ;;  %v2114_v0 = vld [vmem:[#allocation10 + $0x5a0] sm:$0xff]  ;;  %v2179_v13 = vld [vmem:[#allocation10 + $0x7a8] sm:$0xff] }
 0x976   :  { %4385 = vmatpush1.bf16.msra.mxu1 %v4384_v6  ;;  %4449 = vmatpush1.bf16.msra.mxu0 %v4448_v7  ;;  %v4466_v6 = vpack.c.bf16 %v2061_v1, %v2053_v31  ;;  %v2052_v7 = vld [vmem:[#allocation10 + $0x3b0] sm:$0xff]  ;;  %v2122_v31 = vld [vmem:[#allocation10 + $0x5e0] sm:$0xff] }
 0x977   :  { %4387 = vmatprep.subr.bf16.mxu1 %v4386_v3  ;;  %4451 = vmatprep.subr.bf16.mxu0 %v4450_v17  ;;  %v2075_v3 = vld [vmem:[#allocation10 + $0x468] sm:$0xff]  ;;  %v2069_v17 = vld [vmem:[#allocation10 + $0x438] sm:$0xff]  ;;  %v4468_v30 = vpack.c.bf16 %v2060_v16, %v2052_v7  ;;  %v4420_v16 = vpack.c.bf16 %v2122_v31, %v2114_v0  ;;  %v2188_v0 = vld [vmem:[#allocation10 + $0x7f0] sm:$0xff] }
 0x978   :  { %v4406_v28 = vpack.c.bf16 %v2075_v3, %v2067_v44  ;;  %v2141_v7 = vld [vmem:[#allocation10 + $0x678] sm:$0xff]  ;;  %v2130_v3 = vld [vmem:[#allocation10 + $0x620] sm:$0xff]  ;;  %v2191_v31 = vld [vmem:[#allocation11 + $0x8] sm:$0xff] }
 0x97a   :  { %4389 = vmatpush1.bf16.msra.mxu1 %v4388_v29  ;;  %4453 = vmatpush1.bf16.msra.mxu0 %v4452_v39  ;;  %v4470_v29 = vpack.c.bf16 %v2077_v46, %v2069_v17  ;;  %v2068_v39 = vld [vmem:[#allocation10 + $0x430] sm:$0xff]  ;;  %v2138_v17 = vld [vmem:[#allocation10 + $0x660] sm:$0xff] }
 0x97b   :  { %4391 = vmatprep.subr.bf16.mxu1 %v4390_v41  ;;  %4455 = vmatprep.subr.bf16.mxu0 %v4454_v43  ;;  %v2091_v41 = vld [vmem:[#allocation10 + $0x4e8] sm:$0xff]  ;;  %v2085_v43 = vld [vmem:[#allocation10 + $0x4b8] sm:$0xff]  ;;  %v4472_v24 = vpack.c.bf16 %v2076_v11, %v2068_v39  ;;  %v4424_v11 = vpack.c.bf16 %v2138_v17, %v2130_v3  ;;  %v2194_v3 = vld [vmem:[#allocation11 + $0x20] sm:$0xff] }
 0x97c   :  { %v4410_v26 = vpack.c.bf16 %v2091_v41, %v2083_v40  ;;  %v2157_v39 = vld [vmem:[#allocation10 + $0x6f8] sm:$0xff]  ;;  %v2146_v41 = vld [vmem:[#allocation10 + $0x6a0] sm:$0xff]  ;;  %v2196_v17 = vld [vmem:[#allocation11 + $0x30] sm:$0xff] }
 0x97e   :  { %4393 = vmatpush1.bf16.msra.mxu1 %v4392_v27  ;;  %4457 = vmatpush1.bf16.msra.mxu0 %v4456_v34  ;;  %v4474_v27 = vpack.c.bf16 %v2093_v45, %v2085_v43  ;;  %v2084_v34 = vld [vmem:[#allocation10 + $0x4b0] sm:$0xff]  ;;  %v2154_v43 = vld [vmem:[#allocation10 + $0x6e0] sm:$0xff] }
 0x97f   :  { %4395 = vmatprep.subr.bf16.mxu1 %v4394_v48  ;;  %4459 = vmatprep.subr.bf16.mxu0 %v4458_v21  ;;  %v2107_v48 = vld [vmem:[#allocation10 + $0x568] sm:$0xff]  ;;  %v2101_v21 = vld [vmem:[#allocation10 + $0x538] sm:$0xff]  ;;  %v4476_v22 = vpack.c.bf16 %v2092_v35, %v2084_v34  ;;  %v4428_v35 = vpack.c.bf16 %v2154_v43, %v2146_v41  ;;  %v2202_v41 = vld [vmem:[#allocation11 + $0x60] sm:$0xff] }
 0x980   :  { %v4414_v54 = vpack.c.bf16 %v2107_v48, %v2099_v19  ;;  %v2173_v34 = vld [vmem:[#allocation10 + $0x778] sm:$0xff]  ;;  %v2162_v48 = vld [vmem:[#allocation10 + $0x720] sm:$0xff]  ;;  %v2204_v43 = vld [vmem:[#allocation11 + $0x70] sm:$0xff] }
 0x982   :  { %4397 = vmatpush1.bf16.msra.mxu1 %v4396_v55  ;;  %4461 = vmatpush1.bf16.msra.mxu0 %v4460_v23  ;;  %v4478_v55 = vpack.c.bf16 %v2109_v14, %v2101_v21  ;;  %v2100_v23 = vld [vmem:[#allocation10 + $0x530] sm:$0xff]  ;;  %v2170_v21 = vld [vmem:[#allocation10 + $0x760] sm:$0xff] }
 0x983   :  { %4399 = vmatprep.subr.bf16.mxu1 %v4398_v58  ;;  %4463 = vmatprep.subr.bf16.mxu0 %v4462_v36  ;;  %v2123_v58 = vld [vmem:[#allocation10 + $0x5e8] sm:$0xff]  ;;  %v2117_v36 = vld [vmem:[#allocation10 + $0x5b8] sm:$0xff]  ;;  %v4480_v63 = vpack.c.bf16 %v2108_v56, %v2100_v23  ;;  %v4432_v56 = vpack.c.bf16 %v2170_v21, %v2162_v48  ;;  %v2210_v48 = vld [vmem:[#allocation11 + $0xa0] sm:$0xff] }
 0x984   :  { %v4418_v1 = vpack.c.bf16 %v2123_v58, %v2115_v57  ;;  %v2189_v23 = vld [vmem:[#allocation10 + $0x7f8] sm:$0xff]  ;;  %v2178_v58 = vld [vmem:[#allocation10 + $0x7a0] sm:$0xff]  ;;  %v2212_v21 = vld [vmem:[#allocation11 + $0xb0] sm:$0xff] }
 0x986   :  { %4401 = vmatpush1.bf16.msra.mxu1 %v4400_v32  ;;  %4465 = vmatpush1.bf16.msra.mxu0 %v4464_v2  ;;  %v4482_v32 = vpack.c.bf16 %v2125_v61, %v2117_v36  ;;  %v2116_v2 = vld [vmem:[#allocation10 + $0x5b0] sm:$0xff] }
 0x987   :  { %4403 = vmatprep.subr.bf16.mxu1 %v4402_v42  ;;  %4467 = vmatprep.subr.bf16.mxu0 %v4466_v6  ;;  %v2139_v42 = vld [vmem:[#allocation10 + $0x668] sm:$0xff]  ;;  %v2133_v6 = vld [vmem:[#allocation10 + $0x638] sm:$0xff]  ;;  %v4484_v44 = vpack.c.bf16 %v2124_v4, %v2116_v2 }
 0x988   :  { %v4422_v46 = vpack.c.bf16 %v2139_v42, %v2131_v5  ;;  %v2190_v5 = vld [vmem:[#allocation11] sm:$0xff]  ;;  %v2192_v42 = vld [vmem:[#allocation11 + $0x10] sm:$0xff] }
 0x98a   :  { %4405 = vmatpush1.bf16.msra.mxu1 %v4404_v51  ;;  %4469 = vmatpush1.bf16.msra.mxu0 %v4468_v30  ;;  %v4486_v51 = vpack.c.bf16 %v2141_v7, %v2133_v6  ;;  %v2132_v30 = vld [vmem:[#allocation10 + $0x630] sm:$0xff]  ;;  %v2195_v6 = vld [vmem:[#allocation11 + $0x28] sm:$0xff]  ;;  %v2197_v7 = vld [vmem:[#allocation11 + $0x38] sm:$0xff] }
 0x98b   :  { %4407 = vmatprep.subr.bf16.mxu1 %v4406_v28  ;;  %4471 = vmatprep.subr.bf16.mxu0 %v4470_v29  ;;  %v2155_v28 = vld [vmem:[#allocation10 + $0x6e8] sm:$0xff]  ;;  %v2149_v29 = vld [vmem:[#allocation10 + $0x6b8] sm:$0xff]  ;;  %v4488_v40 = vpack.c.bf16 %v2140_v62, %v2132_v30  ;;  %v4508_v30 = vpack.c.bf16 %v2196_v17, %v2194_v3  ;;  %v2230_v17 = vld [vmem:[#allocation11 + $0x140] sm:$0xff] }
 0x98c   :  { %v4426_v45 = vpack.c.bf16 %v2155_v28, %v2147_v12  ;;  %v2198_v12 = vld [vmem:[#allocation11 + $0x40] sm:$0xff]  ;;  %v2200_v28 = vld [vmem:[#allocation11 + $0x50] sm:$0xff] }
 0x98e   :  { %4409 = vmatpush1.bf16.msra.mxu1 %v4408_v47  ;;  %4473 = vmatpush1.bf16.msra.mxu0 %v4472_v24  ;;  %v4490_v47 = vpack.c.bf16 %v2157_v39, %v2149_v29  ;;  %v2148_v24 = vld [vmem:[#allocation10 + $0x6b0] sm:$0xff]  ;;  %v2203_v29 = vld [vmem:[#allocation11 + $0x68] sm:$0xff]  ;;  %v2205_v39 = vld [vmem:[#allocation11 + $0x78] sm:$0xff] }
 0x98f   :  { %4411 = vmatprep.subr.bf16.mxu1 %v4410_v26  ;;  %4475 = vmatprep.subr.bf16.mxu0 %v4474_v27  ;;  %v2171_v26 = vld [vmem:[#allocation10 + $0x768] sm:$0xff]  ;;  %v2165_v27 = vld [vmem:[#allocation10 + $0x738] sm:$0xff]  ;;  %v4492_v19 = vpack.c.bf16 %v2156_v25, %v2148_v24  ;;  %v4516_v24 = vpack.c.bf16 %v2204_v43, %v2202_v41  ;;  %v2238_v43 = vld [vmem:[#allocation11 + $0x180] sm:$0xff] }
 0x990   :  { %v4430_v14 = vpack.c.bf16 %v2171_v26, %v2163_v18  ;;  %v2206_v18 = vld [vmem:[#allocation11 + $0x80] sm:$0xff]  ;;  %v2208_v26 = vld [vmem:[#allocation11 + $0x90] sm:$0xff] }
 0x992   :  { %4413 = vmatpush1.bf16.msra.mxu1 %v4412_v52  ;;  %4477 = vmatpush1.bf16.msra.mxu0 %v4476_v22  ;;  %v4494_v52 = vpack.c.bf16 %v2173_v34, %v2165_v27  ;;  %v2164_v22 = vld [vmem:[#allocation10 + $0x730] sm:$0xff]  ;;  %v2211_v27 = vld [vmem:[#allocation11 + $0xa8] sm:$0xff]  ;;  %v2213_v34 = vld [vmem:[#allocation11 + $0xb8] sm:$0xff] }
 0x993   :  { %4415 = vmatprep.subr.bf16.mxu1 %v4414_v54  ;;  %4479 = vmatprep.subr.bf16.mxu0 %v4478_v55  ;;  %v2187_v54 = vld [vmem:[#allocation10 + $0x7e8] sm:$0xff]  ;;  %v2181_v55 = vld [vmem:[#allocation10 + $0x7b8] sm:$0xff]  ;;  %v4496_v57 = vpack.c.bf16 %v2172_v53, %v2164_v22  ;;  %v4524_v22 = vpack.c.bf16 %v2212_v21, %v2210_v48  ;;  %v2246_v21 = vld [vmem:[#allocation11 + $0x1c0] sm:$0xff] }
 0x994   :  { %v4434_v36 = vpack.c.bf16 %v2187_v54, %v2179_v13  ;;  %v4498_v61 = vpack.c.bf16 %v2189_v23, %v2181_v55  ;;  %v2214_v13 = vld [vmem:[#allocation11 + $0xc0] sm:$0xff]  ;;  %v2216_v54 = vld [vmem:[#allocation11 + $0xd0] sm:$0xff]  ;;  %v2219_v55 = vld [vmem:[#allocation11 + $0xe8] sm:$0xff] }
 0x995   :  { %v2221_v23 = vld [vmem:[#allocation11 + $0xf8] sm:$0xff] }
 0x996   :  { %4417 = vmatpush1.bf16.msra.mxu1 %v4416_v38  ;;  %4481 = vmatpush1.bf16.msra.mxu0 %v4480_v63  ;;  %v2186_v38 = vld [vmem:[#allocation10 + $0x7e0] sm:$0xff]  ;;  %v2180_v63 = vld [vmem:[#allocation10 + $0x7b0] sm:$0xff] }
 0x997   :  { %4419 = vmatprep.subr.bf16.mxu1 %v4418_v1  ;;  %4483 = vmatprep.subr.bf16.mxu0 %v4482_v32  ;;  %v2193_v1 = vld [vmem:[#allocation11 + $0x18] sm:$0xff]  ;;  %v4436_v32 = vpack.c.bf16 %v2186_v38, %v2178_v58  ;;  %v4500_v2 = vpack.c.bf16 %v2188_v0, %v2180_v63  ;;  %v2218_v58 = vld [vmem:[#allocation11 + $0xe0] sm:$0xff] }
 0x998   :  { %v4502_v4 = vpack.c.bf16 %v2193_v1, %v2191_v31  ;;  %v2225_v38 = vld [vmem:[#allocation11 + $0x118] sm:$0xff]  ;;  %v2222_v31 = vld [vmem:[#allocation11 + $0x100] sm:$0xff]  ;;  %v2224_v1 = vld [vmem:[#allocation11 + $0x110] sm:$0xff] }
 0x99a   :  { %4421 = vmatpush1.bf16.msra.mxu1 %v4420_v16  ;;  %4485 = vmatpush1.bf16.msra.mxu0 %v4484_v44  ;;  %v4504_v16 = vpack.c.bf16 %v2192_v42, %v2190_v5  ;;  %v4506_v44 = vpack.c.bf16 %v2197_v7, %v2195_v6  ;;  %v2226_v42 = vld [vmem:[#allocation11 + $0x120] sm:$0xff]  ;;  %v2228_v6 = vld [vmem:[#allocation11 + $0x130] sm:$0xff]  ;;  %v2231_v7 = vld [vmem:[#allocation11 + $0x148] sm:$0xff] }
 0x99b   :  { %4423 = vmatprep.subr.bf16.mxu1 %v4422_v46  ;;  %4487 = vmatprep.subr.bf16.mxu0 %v4486_v51  ;;  %v2199_v46 = vld [vmem:[#allocation11 + $0x48] sm:$0xff]  ;;  %v2201_v51 = vld [vmem:[#allocation11 + $0x58] sm:$0xff] }
 0x99c   :  { %v4510_v62 = vpack.c.bf16 %v2201_v51, %v2199_v46  ;;  %v2232_v46 = vld [vmem:[#allocation11 + $0x150] sm:$0xff]  ;;  %v2235_v51 = vld [vmem:[#allocation11 + $0x168] sm:$0xff] }
 0x99e   :  { %4425 = vmatpush1.bf16.msra.mxu1 %v4424_v11  ;;  %4489 = vmatpush1.bf16.msra.mxu0 %v4488_v40  ;;  %v4512_v11 = vpack.c.bf16 %v2200_v28, %v2198_v12  ;;  %v4514_v40 = vpack.c.bf16 %v2205_v39, %v2203_v29  ;;  %v2234_v28 = vld [vmem:[#allocation11 + $0x160] sm:$0xff]  ;;  %v2236_v29 = vld [vmem:[#allocation11 + $0x170] sm:$0xff]  ;;  %v2239_v39 = vld [vmem:[#allocation11 + $0x188] sm:$0xff] }
 0x99f   :  { %4427 = vmatprep.subr.bf16.mxu1 %v4426_v45  ;;  %4491 = vmatprep.subr.bf16.mxu0 %v4490_v47  ;;  %v2207_v45 = vld [vmem:[#allocation11 + $0x88] sm:$0xff]  ;;  %v2209_v47 = vld [vmem:[#allocation11 + $0x98] sm:$0xff] }
 0x9a0   :  { %v4518_v25 = vpack.c.bf16 %v2209_v47, %v2207_v45  ;;  %v2240_v45 = vld [vmem:[#allocation11 + $0x190] sm:$0xff]  ;;  %v2243_v47 = vld [vmem:[#allocation11 + $0x1a8] sm:$0xff] }
 0x9a2   :  { %4429 = vmatpush1.bf16.msra.mxu1 %v4428_v35  ;;  %4493 = vmatpush1.bf16.msra.mxu0 %v4492_v19  ;;  %v4520_v35 = vpack.c.bf16 %v2208_v26, %v2206_v18  ;;  %v4522_v19 = vpack.c.bf16 %v2213_v34, %v2211_v27  ;;  %v2242_v26 = vld [vmem:[#allocation11 + $0x1a0] sm:$0xff]  ;;  %v2244_v27 = vld [vmem:[#allocation11 + $0x1b0] sm:$0xff]  ;;  %v2247_v34 = vld [vmem:[#allocation11 + $0x1c8] sm:$0xff] }
 0x9a3   :  { %4431 = vmatprep.subr.bf16.mxu1 %v4430_v14  ;;  %4495 = vmatprep.subr.bf16.mxu0 %v4494_v52  ;;  %v2215_v14 = vld [vmem:[#allocation11 + $0xc8] sm:$0xff]  ;;  %v2217_v52 = vld [vmem:[#allocation11 + $0xd8] sm:$0xff] }
 0x9a4   :  { %v4526_v53 = vpack.c.bf16 %v2217_v52, %v2215_v14  ;;  %v2248_v14 = vld [vmem:[#allocation11 + $0x1d0] sm:$0xff]  ;;  %v2251_v52 = vld [vmem:[#allocation11 + $0x1e8] sm:$0xff] }
 0x9a6   :  { %4433 = vmatpush1.bf16.msra.mxu1 %v4432_v56  ;;  %4497 = vmatpush1.bf16.msra.mxu0 %v4496_v57  ;;  %v4528_v56 = vpack.c.bf16 %v2216_v54, %v2214_v13  ;;  %v4530_v57 = vpack.c.bf16 %v2221_v23, %v2219_v55  ;;  %v2250_v54 = vld [vmem:[#allocation11 + $0x1e0] sm:$0xff]  ;;  %v2252_v55 = vld [vmem:[#allocation11 + $0x1f0] sm:$0xff] }
 0x9a7   :  { %4435 = vmatprep.subr.bf16.mxu1 %v4434_v36  ;;  %4499 = vmatprep.subr.bf16.mxu0 %v4498_v61  ;;  %v2220_v36 = vld [vmem:[#allocation11 + $0xf0] sm:$0xff]  ;;  %v2223_v61 = vld [vmem:[#allocation11 + $0x108] sm:$0xff]  ;;  %v4564_v23 = vpack.c.bf16 %v2252_v55, %v2250_v54 }
 0x9a8   :  { %v4532_v63 = vpack.c.bf16 %v2220_v36, %v2218_v58  ;;  %v4534_v0 = vpack.c.bf16 %v2225_v38, %v2223_v61  ;;  %v5416_v61 = vld [vmem:[%s5653_s3] sm:$0xff]  ;;  %v5423_v38 = vld [vmem:[%s5653_s3 + $0x10] sm:$0xff] }
 0x9aa   :  { %4437 = vmatpush1.bf16.msra.mxu1 %v4436_v32  ;;  %4501 = vmatpush1.bf16.msra.mxu0 %v4500_v2  ;;  %v2227_v32 = vld [vmem:[#allocation11 + $0x128] sm:$0xff]  ;;  %v2229_v2 = vld [vmem:[#allocation11 + $0x138] sm:$0xff] }
 0x9ab   :  { %4503 = vmatprep.subr.bf16.mxu1 %v4502_v4  ;;  %v4536_v4 = vpack.c.bf16 %v2224_v1, %v2222_v31  ;;  %v4538_v5 = vpack.c.bf16 %v2229_v2, %v2227_v32  ;;  %v5447_v31 = vld [vmem:[%s5655_s5] sm:$0xff]  ;;  %v5462_v32 = vld [vmem:[%s5652_s2 + $0x8] sm:$0xff]  ;;  %v5470_v2 = vld [vmem:[%s5652_s2 + $0x10] sm:$0xff] }
 0x9ac   :  { %v5454_v1 = vld [vmem:[%s5652_s2] sm:$0xff] }
 0x9ad   :  { %2461 = vmatmul.mubr.f32.vlgmr.msra.gmra.mrb[38].mxu1 %v5391_v50  ;;  %2532 = vmatmul.mubr.f32.vlgmr.msra.gmra.mrb[14].mxu0 %v5391_v50 }
 0x9ae   :  { %4505 = vmatpush1.bf16.msra.mxu1 %v4504_v16  ;;  %2602 = vmatprep.mubr.f32.mxu1 %v5300_v9  ;;  %v2233_v16 = vld [vmem:[#allocation11 + $0x158] sm:$0xff] }
 0x9af   :  { %4507 = vmatprep.subr.bf16.mxu1 %v4506_v44  ;;  %2691 = vmatprep.mubr.f32.mxu0 %v4955_v15  ;;  %v4540_v44 = vpack.c.bf16 %v2228_v6, %v2226_v42  ;;  %v4542_v3 = vpack.c.bf16 %v2233_v16, %v2231_v7 }
 0x9b2   :  { %4509 = vmatpush1.bf16.msra.mxu1 %v4508_v30  ;;  %v2237_v30 = vld [vmem:[#allocation11 + $0x178] sm:$0xff] }
 0x9b3   :  { %4511 = vmatprep.subr.bf16.mxu1 %v4510_v62  ;;  %v4544_v62 = vpack.c.bf16 %v2232_v46, %v2230_v17  ;;  %v4546_v12 = vpack.c.bf16 %v2237_v30, %v2235_v51 }
 0x9b6   :  { %4513 = vmatpush1.bf16.msra.mxu1 %v4512_v11  ;;  %v2241_v11 = vld [vmem:[#allocation11 + $0x198] sm:$0xff] }
 0x9b7   :  { %4515 = vmatprep.subr.bf16.mxu1 %v4514_v40  ;;  %v4548_v40 = vpack.c.bf16 %v2236_v29, %v2234_v28  ;;  %v4550_v41 = vpack.c.bf16 %v2241_v11, %v2239_v39 }
 0x9ba   :  { %4517 = vmatpush1.bf16.msra.mxu1 %v4516_v24  ;;  %v2245_v24 = vld [vmem:[#allocation11 + $0x1b8] sm:$0xff] }
 0x9bb   :  { %4519 = vmatprep.subr.bf16.mxu1 %v4518_v25  ;;  %v4552_v25 = vpack.c.bf16 %v2240_v45, %v2238_v43  ;;  %v4554_v18 = vpack.c.bf16 %v2245_v24, %v2243_v47 }
 0x9be   :  { %4521 = vmatpush1.bf16.msra.mxu1 %v4520_v35  ;;  %v2249_v35 = vld [vmem:[#allocation11 + $0x1d8] sm:$0xff] }
 0x9bf   :  { %4523 = vmatprep.subr.bf16.mxu1 %v4522_v19  ;;  %v4556_v19 = vpack.c.bf16 %v2244_v27, %v2242_v26  ;;  %v4558_v48 = vpack.c.bf16 %v2249_v35, %v2247_v34 }
 0x9c2   :  { %4525 = vmatpush1.bf16.msra.mxu1 %v4524_v22  ;;  %v2253_v22 = vld [vmem:[#allocation11 + $0x1f8] sm:$0xff] }
 0x9c3   :  { %4527 = vmatprep.subr.bf16.mxu1 %v4526_v53  ;;  %v4560_v53 = vpack.c.bf16 %v2248_v14, %v2246_v21  ;;  %v4562_v13 = vpack.c.bf16 %v2253_v22, %v2251_v52 }
 0x9c6   :  { %4529 = vmatpush1.bf16.msra.mxu1 %v4528_v56 }
 0x9c7   :  { %4531 = vmatprep.subr.bf16.mxu1 %v4530_v57 }
 0x9ca   :  { %4533 = vmatpush1.bf16.msra.mxu1 %v4532_v63  ;;  %v5432_v63 = vld [vmem:[%s5653_s3 + $0x8] sm:$0xff] }
 0x9cb   :  { %4535 = vmatprep.subr.bf16.mxu1 %v4534_v0  ;;  %v5439_v0 = vld [vmem:[%s5653_s3 + $0x18] sm:$0xff] }
 0x9ce   :  { %4537 = vmatpush1.bf16.msra.mxu1 %v4536_v4  ;;  %v5478_v4 = vld [vmem:[%s5652_s2 + $0x18] sm:$0xff] }
 0x9cf   :  { %4539 = vmatprep.subr.bf16.mxu1 %v4538_v5 }
 0x9d2   :  { %4541 = vmatpush1.bf16.msra.mxu1 %v4540_v44 }
 0x9d3   :  { %4543 = vmatprep.subr.bf16.mxu1 %v4542_v3 }
 0x9d6   :  { %4545 = vmatpush1.bf16.msra.mxu1 %v4544_v62 }
 0x9d7   :  { %4547 = vmatprep.subr.bf16.mxu1 %v4546_v12 }
 0x9da   :  { %4549 = vmatpush1.bf16.msra.mxu1 %v4548_v40 }
 0x9db   :  { %4551 = vmatprep.subr.bf16.mxu1 %v4550_v41 }
 0x9de   :  { %4553 = vmatpush1.bf16.msra.mxu1 %v4552_v25 }
 0x9df   :  { %4555 = vmatprep.subr.bf16.mxu1 %v4554_v18 }
 0x9e2   :  { %4557 = vmatpush1.bf16.msra.mxu1 %v4556_v19 }
 0x9e3   :  { %4559 = vmatprep.subr.bf16.mxu1 %v4558_v48 }
 0x9e6   :  { %4561 = vmatpush1.bf16.msra.mxu1 %v4560_v53 }
 0x9e7   :  { %4563 = vmatprep.subr.bf16.mxu1 %v4562_v13 }
 0x9ea   :  { %4565 = vmatpush1.bf16.msra.mxu1 %v4564_v23 }
 0x9ed   :  { %2603 = vmatmul.mubr.f32.vlgmr.msra.gmra.mrb[40].mxu1 %v5297_v10 }
 0x9ee   :  { %2608 = vmatprep.mubr.f32.mxu1 %v5290_v60 }
 0x9f1   :  { %2609 = vmatmul.mubr.f32.gmra.mrb[42].mxu1 %v5287_v59 }
 0x9f2   :  { %2614 = vmatprep.mubr.f32.mxu1 %v5310_v49 }
 0x9f5   :  { %2615 = vmatmul.mubr.f32.gmra.mrb[44].mxu1 %v5307_v8 }
 0x9f6   :  { %2620 = vmatprep.mubr.f32.mxu1 %v5318_v37 }
 0x9f9   :  { %2621 = vmatmul.mubr.f32.gmra.mrb[46].mxu1 %v5315_v33 }
 0x9fa   :  { %2703 = vmatprep.mubr.f32.mxu1 %v4955_v15 }
 0xa40   :  { %v2320_v56 = vpop.f32.mrb[36].mxu1  ;;  %v2391_v57 = vpop.f32.mrb[12].mxu0 }
 0xa41   :  { %v2322_v58 = vpop.f32.mrb[37].mxu1  ;;  %v2393_v36 = vpop.f32.mrb[13].mxu0 }
 0xa42   :  { %2627 = vmatprep.subr.mxu0 %v2393_v36  ;;  %4598 = vmatprep.subr.mxu1 %v2393_v36 }
 0xa43   :  { %2628 = vmatpush1.msra.mxu0 %v2391_v57  ;;  %4599 = vmatpush1.msra.mxu1 %v2391_v57 }
 0xa44   :  { %3750 = vmatmul.mubr.msk.f32.vlgmr.msra.gmra.mrb[16].mxu0 %vm839_vm0, %v5416_v61  ;;  %3752 = vmatmul.mubr.msk.f32.vlgmr.msra.gmra.mrb[44].mxu1 %vm839_vm0, %v5423_v38 }
 0xa45   :  { %2716 = vmatprep.subr.mxu1 %v2322_v58  ;;  %2697 = vmatprep.mubr.f32.mxu0 %v4955_v15 }
 0xa46   :  { %2717 = vmatpush1.msra.mxu1 %v2320_v56  ;;  %2709 = vmatprep.mubr.f32.mxu1 %v4955_v15 }
 0xa48   :  { %3751 = vmatmul.mubr.msk.f32.gmra.mrb[18].mxu0 %vm839_vm0, %v5432_v63  ;;  %3753 = vmatmul.mubr.msk.f32.gmra.mrb[46].mxu1 %vm839_vm0, %v5439_v0 }
 0xa49   :  { %2780 = vmatprep.mubr.f32.mxu1 %v4955_v15  ;;  %3864 = vmatprep.mubr.msk.f32.mxu0 %vm1082_vm1, %v5447_v31 }
 0xa4c   :  { %3754 = vmatmul.mubr.msk.f32.vlgmr.msra.gmra.mrb[48].mxu1 %vm839_vm0, %v5454_v1 }
 0xa4d   :  { %2786 = vmatprep.mubr.f32.mxu1 %v4955_v15 }
 0xa50   :  { %3755 = vmatmul.mubr.msk.f32.gmra.mrb[50].mxu1 %vm839_vm0, %v5462_v32 }
 0xa51   :  { %2792 = vmatprep.mubr.f32.mxu1 %v4955_v15 }
 0xa54   :  { %3756 = vmatmul.mubr.msk.f32.gmra.mrb[44].mxu1 %vm839_vm0, %v5470_v2 }
 0xa55   :  { %2798 = vmatprep.mubr.f32.mxu1 %v4955_v15 }
 0xa58   :  { %3757 = vmatmul.mubr.msk.f32.gmra.mrb[46].mxu1 %vm839_vm0, %v5478_v4 }
 0xa80   :  { %v5482_v5 = vpop.f32.mrb[38].mxu1  ;;  %v5484_v42 = vpop.f32.mrb[14].mxu0 }
 0xa81   :  { %v5486_v6 = vpop.f32.mrb[39].mxu1  ;;  %v5488_v7 = vpop.f32.mrb[15].mxu0 }
 0xac0   :  { %v2604_v16 = vpop.f32.mrb[40].mxu1 }
 0xac1   :  { %v2606_v44 = vpop.f32.mrb[41].mxu1 }
 0xac4   :  { %v2610_v3 = vpop.f32.mrb[42].mxu1 }
 0xac5   :  { %v2612_v17 = vpop.f32.mrb[43].mxu1 }
 0xb17   :  { %v2693_v46 = vpop.f32.mrb[16].mxu0 }
 0xb18   :  { %v4600_v51 = vadd.f32 %v2693_v46, %v2604_v16  ;;  %v2695_v30 = vpop.f32.mrb[17].mxu0 }
 0xb19   :  { %v4602_v62 = vadd.f32 %v2695_v30, %v2606_v44 }
 0xb1b   :  { %v2699_v12 = vpop.f32.mrb[18].mxu0 }
 0xb1c   :  { %v4604_v28 = vadd.f32 %v2699_v12, %v2610_v3  ;;  %v2701_v29 = vpop.f32.mrb[19].mxu0 }
 0xb1d   :  { %v4606_v39 = vadd.f32 %v2701_v29, %v2612_v17 }
 0xb1f   :  { %v2782_v11 = vpop.f32.mrb[48].mxu1 }
 0xb20   :  { %v5490_v40 = vadd.f32 %v4600_v51, %v2782_v11  ;;  %v2784_v41 = vpop.f32.mrb[49].mxu1  ;;  %v4753_v11 = vld [vmem:[%s5655_s5 + $0x10] sm:$0xff] }
 0xb21   :  { %v5492_v43 = vadd.f32 %v4602_v62, %v2784_v41 }
 0xb22   :  { %v2825_v14 = vmul.f32 %v5490_v40, %v5490_v40 }
 0xb23   :  { %v2788_v45 = vpop.f32.mrb[50].mxu1  ;;  %v2813_v47 = vadd.f32 %v5492_v43, %v5490_v40  ;;  %v2826_v52 = vmul.f32 %v5492_v43, %v5492_v43 }
 0xb24   :  { %v5496_v24 = vadd.f32 %v4604_v28, %v2788_v45  ;;  %v2790_v25 = vpop.f32.mrb[51].mxu1  ;;  %v4752_v28 = vld [vmem:[%s5655_s5 + $0x8] sm:$0xff]  ;;  %v4754_v45 = vld [vmem:[%s5655_s5 + $0x18] sm:$0xff] }
 0xb25   :  { %v5498_v18 = vadd.f32 %v4606_v39, %v2790_v25  ;;  %2814 = vadd.xlane.f32.xlu1 %v2813_v47  ;;  %v2833_v57 = vadd.f32 %v2826_v52, %v2825_v14 }
 0xb26   :  { %v2827_v23 = vmul.f32 %v5496_v24, %v5496_v24 }
 0xb27   :  { %v5500_v26 = vpop.f32.mrb[44].mxu1  ;;  %v2816_v27 = vadd.f32 %v5498_v18, %v5496_v24  ;;  %v2828_v56 = vmul.f32 %v5498_v18, %v5498_v18 }
 0xb28   :  { %v5504_v34 = vpop.f32.mrb[45].mxu1  ;;  %v2829_v35 = vmul.f32 %v5500_v26, %v5500_v26 }
 0xb29   :  { %2817 = vadd.xlane.f32.xlu0 %v2816_v27  ;;  %v2819_v19 = vadd.f32 %v5504_v34, %v5500_v26  ;;  %v2830_v48 = vmul.f32 %v5504_v34, %v5504_v34  ;;  %v2836_v36 = vadd.f32 %v2828_v56, %v2827_v23 }
 0xb2b   :  { %v5512_v21 = vpop.f32.mrb[46].mxu1  ;;  %v2839_v22 = vadd.f32 %v2830_v48, %v2829_v35 }
 0xb2c   :  { %v5518_v53 = vpop.f32.mrb[47].mxu1  ;;  %v2831_v13 = vmul.f32 %v5512_v21, %v5512_v21 }
 0xb2d   :  { %v2832_v54 = vmul.f32 %v5518_v53, %v5518_v53  ;;  %2820 = vadd.xlane.f32.xlu0 %v2819_v19  ;;  %v2822_v55 = vadd.f32 %v5518_v53, %v5512_v21 }
 0xb2f   :  { %2823 = vadd.xlane.f32.xlu1 %v2822_v55  ;;  %v2842_v58 = vadd.f32 %v2832_v54, %v2831_v13 }
 0xb31   :  { %2834 = vadd.xlane.f32.xlu0 %v2833_v57 }
 0xb33   :  { %2837 = vadd.xlane.f32.xlu1 %v2836_v36 }
 0xb35   :  { %2840 = vadd.xlane.f32.xlu0 %v2839_v22 }
 0xb37   :  { %2843 = vadd.xlane.f32.xlu1 %v2842_v58 }
 0xbb2   :  { %v2815_v16 = vpop.xlane.xlu1 %2814 }
 0xbb6   :  { %v2818_v44 = vpop.xlane.xlu0 %2817 }
 0xbb7   :  { %v4566_v3 = vpack.c.bf16 %v2818_v44, %v2815_v16 }
 0xbb9   :  { %4567 = vmatprep.subr.bf16.mxu0 %v4566_v3 }
 0xbba   :  { %4569 = vmatpush3.bf16.msra.mxu0 %v4566_v3  ;;  %v2821_v17 = vpop.xlane.xlu0 %2820 }
 0xbbc   :  { %v2824_v46 = vpop.xlane.xlu1 %2823 }
 0xbbd   :  { %v4570_v51 = vpack.c.bf16 %v2824_v46, %v2821_v17 }
 0xbbe   :  { %v2835_v30 = vpop.xlane.xlu0 %2834 }
 0xbbf   :  { %4571 = vmatprep.subr.bf16.mxu0 %v4570_v51 }
 0xbc0   :  { %4573 = vmatpush3.bf16.msra.mxu0 %v4570_v51  ;;  %v2838_v62 = vpop.xlane.xlu1 %2837 }
 0xbc1   :  { %v4574_v12 = vpack.c.bf16 %v2838_v62, %v2835_v30 }
 0xbc2   :  { %v2841_v29 = vpop.xlane.xlu0 %2840 }
 0xbc3   :  { %3865 = vmatmul.mubr.msk.f32.vlgmr.msra.gmra.mrb[20].mxu0 %vm1082_vm1, %v4752_v28  ;;  %4575 = vmatprep.subr.bf16.mxu0 %v4574_v12 }
 0xbc4   :  { %4577 = vmatpush3.bf16.msra.mxu0 %v4574_v12  ;;  %v2844_v39 = vpop.xlane.xlu1 %2843  ;;  %3867 = vmatprep.mubr.msk.f32.mxu0 %vm1082_vm1, %v4753_v11 }
 0xbc5   :  { %v4578_v41 = vpack.c.bf16 %v2844_v39, %v2841_v29 }
 0xbc7   :  { %3868 = vmatmul.mubr.msk.f32.gmra.mrb[22].mxu0 %vm1082_vm1, %v4754_v45  ;;  %4579 = vmatprep.subr.bf16.mxu0 %v4578_v41 }
 0xbc8   :  { %4581 = vmatpush3.bf16.msra.mxu0 %v4578_v41  ;;  %3878 = vmatprep.mubr.msk.f32.mxu0 %vm1082_vm1, %v5447_v31 }
 0xbcb   :  { %3879 = vmatmul.mubr.msk.f32.vlgmr.msra.gmra.mrb[24].mxu0 %vm1082_vm1, %v4752_v28 }
 0xbcc   :  { %3881 = vmatprep.mubr.msk.f32.mxu0 %vm1082_vm1, %v4753_v11 }
 0xbcf   :  { %3882 = vmatmul.mubr.msk.f32.gmra.mrb[26].mxu0 %vm1082_vm1, %v4754_v45 }
 0xbd0   :  { %3227 = vmatprep.mubr.f32.mxu0 %v4955_v15 }
 0xc96   :  { %v3866_v47 = vpop.f32.mrb[20].mxu0 }
 0xc97   :  { %v2931_v25 = vmul.f32 0.001953125, %v3866_v47  ;;  %v2911_v27 = vpop.f32.mrb[21].mxu0 }
 0xc98   :  { %v2930_v35 = vmul.f32 0.001953125, %v2911_v27 }
 0xc99   :  { %3042 = vperm.xlu1 %4648, %v2931_v25   ;;  %v3024_v22 = vmul.f32 %v2931_v25, %v2931_v25 }
 0xc9a   :  { %3037 = vperm.xlu0 %4647, %v2930_v35   ;;  %v3869_v19 = vpop.f32.mrb[22].mxu0  ;;  %v3023_v55 = vmul.f32 %v2930_v35, %v2930_v35 }
 0xc9b   :  { %v2933_v48 = vmul.f32 0.001953125, %v3869_v19  ;;  %v2921_v14 = vpop.f32.mrb[23].mxu0 }
 0xc9c   :  { %v2932_v52 = vmul.f32 0.001953125, %v2921_v14 }
 0xc9d   :  { %v3026_v36 = vmul.f32 %v2933_v48, %v2933_v48 }
 0xc9e   :  { %3052 = vperm.xlu0 %4647, %v2933_v48   ;;  %3047 = vperm.xlu1 %4648, %v2932_v52   ;;  %v3880_v31 = vpop.f32.mrb[24].mxu0  ;;  %v3025_v17 = vmul.f32 %v2932_v52, %v2932_v52 }
 0xc9f   :  { %v3020_v13 = vmul.f32 0.001953125, %v3880_v31  ;;  %v3000_v54 = vpop.f32.mrb[25].mxu0 }
 0xca0   :  { %v3019_v23 = vmul.f32 0.001953125, %v3000_v54 }
 0xca1   :  { %v3028_v56 = vsub.f32 %v3020_v13, %v3024_v22 }
 0xca2   :  { %v3027_v57 = vsub.f32 %v3019_v23, %v3023_v55  ;;  %v3883_v58 = vpop.f32.mrb[26].mxu0 }
 0xca3   :  { %v3032_v16 = vmax.f32 %v3028_v56, 0.0  ;;  %v3022_v44 = vmul.f32 0.001953125, %v3883_v58  ;;  %v3010_v3 = vpop.f32.mrb[27].mxu0 }
 0xca4   :  { %v3031_v46 = vmax.f32 %v3027_v57, 0.0  ;;  %v3021_v51 = vmul.f32 0.001953125, %v3010_v3 }
 0xca5   :  { %v3064_v30 = vadd.f32 1e-05, %v3032_v16  ;;  %v3030_v62 = vsub.f32 %v3022_v44, %v3026_v36 }
 0xca6   :  { %v3063_v12 = vadd.f32 1e-05, %v3031_v46  ;;  %v3029_v28 = vsub.f32 %v3021_v51, %v3025_v17 }
 0xca7   :  { %4695 = vrsqrt.f32 %v3064_v30  ;;  %v3034_v29 = vmax.f32 %v3030_v62, 0.0 }
 0xca8   :  { %4697 = vrsqrt.f32 %v3063_v12  ;;  %v3033_v39 = vmax.f32 %v3029_v28, 0.0 }
 0xca9   :  { %v3066_v11 = vadd.f32 1e-05, %v3034_v29 }
 0xcaa   :  { %v3065_v41 = vadd.f32 1e-05, %v3033_v39 }
 0xcab   :  { %4699 = vrsqrt.f32 %v3066_v11 }
 0xcac   :  { %4701 = vrsqrt.f32 %v3065_v41 }
 0xcb1   :  { %v4696_v45 = vpop.eup %4695 }
 0xcb2   :  { %v4698_v47 = vpop.eup %4697  ;;  %3078 = vperm.xlu0 %4647, %v4696_v45  }
 0xcb3   :  { %3073 = vperm.xlu1 %4648, %v4698_v47  }
 0xcb5   :  { %v4700_v25 = vpop.eup %4699 }
 0xcb6   :  { %v4702_v27 = vpop.eup %4701  ;;  %3088 = vperm.xlu0 %4647, %v4700_v25  }
 0xcb7   :  { %3083 = vperm.xlu1 %4648, %v4702_v27  }
 0xd18   :  { %v3043_v19 = vpop.permute.xlu1 %3042 }
 0xd19   :  { %v3038_v35 = vpop.permute.xlu0 %3037  ;;  %v3057_v52 = vsub.f32 %v5496_v24, %v3043_v19  ;;  %v3058_v31 = vsub.f32 %v5498_v18, %v3043_v19 }
 0xd1a   :  { %v3055_v22 = vsub.f32 %v5490_v40, %v3038_v35  ;;  %v3056_v13 = vsub.f32 %v5492_v43, %v3038_v35 }
 0xd1d   :  { %v3053_v48 = vpop.permute.xlu0 %3052  ;;  %v3048_v14 = vpop.permute.xlu1 %3047 }
 0xd1e   :  { %v3061_v36 = vsub.f32 %v5512_v21, %v3053_v48  ;;  %v3062_v16 = vsub.f32 %v5518_v53, %v3053_v48  ;;  %v3059_v24 = vsub.f32 %v5500_v26, %v3048_v14  ;;  %v3060_v18 = vsub.f32 %v5504_v34, %v3048_v14 }
 0xd31   :  { %v3079_v54 = vpop.permute.xlu0 %3078 }
 0xd32   :  { %v3093_v55 = vmul.f32 %v3079_v54, %v3057_v52  ;;  %v3094_v23 = vmul.f32 %v3079_v54, %v3058_v31  ;;  %v3074_v56 = vpop.permute.xlu1 %3073 }
 0xd33   :  { %v3091_v57 = vmul.f32 %v3074_v56, %v3055_v22  ;;  %v3092_v58 = vmul.f32 %v3074_v56, %v3056_v13 }
 0xd34   :  { %v3101_v44 = vmax.f32 %v3093_v55, 0.0  ;;  %v3102_v3 = vmax.f32 %v3094_v23, 0.0 }
 0xd35   :  { %v3099_v17 = vmax.f32 %v3091_v57, 0.0  ;;  %v3100_v40 = vmax.f32 %v3092_v58, 0.0  ;;  %v3089_v46 = vpop.permute.xlu0 %3088 }
 0xd36   :  { %v3109_v43 = vadd.f32 %v3101_v44, %v5287_v59  ;;  %v3110_v51 = vadd.f32 %v3102_v3, %v5290_v60  ;;  %v3097_v30 = vmul.f32 %v3089_v46, %v3061_v36  ;;  %v3098_v62 = vmul.f32 %v3089_v46, %v3062_v16  ;;  %v3084_v12 = vpop.permute.xlu1 %3083 }
 0xd37   :  { %v3107_v21 = vadd.f32 %v3099_v17, %v5297_v10  ;;  %v3108_v53 = vadd.f32 %v3100_v40, %v5300_v9  ;;  %v3095_v28 = vmul.f32 %v3084_v12, %v3059_v24  ;;  %v3096_v29 = vmul.f32 %v3084_v12, %v3060_v18 }
 0xd38   :  { %v3117_v39 = vmul.f32 0.5, %v3109_v43  ;;  %v3118_v26 = vmul.f32 0.5, %v3110_v51  ;;  %3682 = vst [vmem:[#allocation14 + $0x10] sm:$0xff] %v3109_v43  ;;  %3683 = vst [vmem:[#allocation14 + $0x18] sm:$0xff] %v3110_v51  ;;  %v3105_v34 = vmax.f32 %v3097_v30, 0.0  ;;  %v3106_v11 = vmax.f32 %v3098_v62, 0.0 }
 0xd39   :  { %v3115_v41 = vmul.f32 0.5, %v3107_v21  ;;  %v3116_v45 = vmul.f32 0.5, %v3108_v53  ;;  %3680 = vst [vmem:[#allocation14] sm:$0xff] %v3107_v21  ;;  %3681 = vst [vmem:[#allocation14 + $0x8] sm:$0xff] %v3108_v53  ;;  %v3103_v59 = vmax.f32 %v3095_v28, 0.0  ;;  %v3104_v60 = vmax.f32 %v3096_v29, 0.0 }
 0xd3a   :  { %4703 = vtanh.f32 %v3117_v39  ;;  %v3113_v47 = vadd.f32 %v3105_v34, %v5315_v33  ;;  %v3114_v10 = vadd.f32 %v3106_v11, %v5318_v37 }
 0xd3b   :  { %4705 = vtanh.f32 %v3118_v26  ;;  %v3111_v9 = vadd.f32 %v3103_v59, %v5307_v8  ;;  %v3112_v25 = vadd.f32 %v3104_v60, %v5310_v49 }
 0xd3c   :  { %4707 = vtanh.f32 %v3115_v41  ;;  %v3121_v27 = vmul.f32 0.5, %v3113_v47  ;;  %v3122_v35 = vmul.f32 0.5, %v3114_v10  ;;  %3686 = vst [vmem:[#allocation14 + $0x30] sm:$0xff] %v3113_v47  ;;  %3687 = vst [vmem:[#allocation14 + $0x38] sm:$0xff] %v3114_v10 }
 0xd3d   :  { %4709 = vtanh.f32 %v3116_v45  ;;  %v3119_v19 = vmul.f32 0.5, %v3111_v9  ;;  %v3120_v48 = vmul.f32 0.5, %v3112_v25  ;;  %3684 = vst [vmem:[#allocation14 + $0x20] sm:$0xff] %v3111_v9  ;;  %3685 = vst [vmem:[#allocation14 + $0x28] sm:$0xff] %v3112_v25  ;;  %v5573_v25 = vld [vmem:[%s5654_s4] sm:$0xff] }
 0xd3e   :  { %4711 = vtanh.f32 %v3121_v27 }
 0xd3f   :  { %4713 = vtanh.f32 %v3122_v35 }
 0xd40   :  { %4715 = vtanh.f32 %v3119_v19 }
 0xd41   :  { %4717 = vtanh.f32 %v3120_v48 }
 0xd44   :  { %v4704_v33 = vpop.eup %4703 }
 0xd45   :  { %v4706_v37 = vpop.eup %4705  ;;  %v3133_v14 = vmul.f32 0.5, %v4704_v33 }
 0xd46   :  { %v4708_v8 = vpop.eup %4707  ;;  %v3134_v52 = vmul.f32 0.5, %v4706_v37 }
 0xd47   :  { %v4710_v49 = vpop.eup %4709  ;;  %v3141_v31 = vadd.f32 0.5, %v3133_v14  ;;  %v3131_v22 = vmul.f32 0.5, %v4708_v8 }
 0xd48   :  { %v4712_v13 = vpop.eup %4711  ;;  %v3142_v54 = vadd.f32 0.5, %v3134_v52  ;;  %v3132_v55 = vmul.f32 0.5, %v4710_v49 }
 0xd49   :  { %v4714_v23 = vpop.eup %4713  ;;  %v3151_v56 = vmul.f32 1.442695, %v3141_v31  ;;  %v3139_v57 = vadd.f32 0.5, %v3131_v22  ;;  %v3137_v58 = vmul.f32 0.5, %v4712_v13 }
 0xd4a   :  { %v4716_v36 = vpop.eup %4715  ;;  %v3153_v16 = vmul.f32 1.442695, %v3142_v54  ;;  %v3140_v44 = vadd.f32 0.5, %v3132_v55  ;;  %v3138_v3 = vmul.f32 0.5, %v4714_v23 }
 0xd4b   :  { %v4718_v24 = vpop.eup %4717  ;;  %4719 = vpow2.f32 %v3151_v56  ;;  %v3147_v18 = vmul.f32 1.442695, %v3139_v57  ;;  %v3145_v17 = vadd.f32 0.5, %v3137_v58  ;;  %v3135_v40 = vmul.f32 0.5, %v4716_v36 }
 0xd4c   :  { %4721 = vpow2.f32 %v3153_v16  ;;  %v3149_v46 = vmul.f32 1.442695, %v3140_v44  ;;  %v3146_v43 = vadd.f32 0.5, %v3138_v3  ;;  %v3136_v51 = vmul.f32 0.5, %v4718_v24 }
 0xd4d   :  { %4723 = vpow2.f32 %v3147_v18  ;;  %v3159_v30 = vmul.f32 1.442695, %v3145_v17  ;;  %v3143_v62 = vadd.f32 0.5, %v3135_v40 }
 0xd4e   :  { %4725 = vpow2.f32 %v3149_v46  ;;  %v3161_v12 = vmul.f32 1.442695, %v3146_v43  ;;  %v3144_v21 = vadd.f32 0.5, %v3136_v51 }
 0xd4f   :  { %4727 = vpow2.f32 %v3159_v30  ;;  %v3155_v53 = vmul.f32 1.442695, %v3143_v62 }
 0xd50   :  { %4729 = vpow2.f32 %v3161_v12  ;;  %v3157_v28 = vmul.f32 1.442695, %v3144_v21 }
 0xd51   :  { %4731 = vpow2.f32 %v3155_v53 }
 0xd52   :  { %4733 = vpow2.f32 %v3157_v28 }
 0xd55   :  { %v4720_v29 = vpop.eup %4719 }
 0xd56   :  { %v4722_v39 = vpop.eup %4721 }
 0xd57   :  { %v4724_v26 = vpop.eup %4723 }
 0xd58   :  { %v4726_v34 = vpop.eup %4725  ;;  %v4584_v11 = vpack.c.bf16 %v4720_v29, %v4724_v26 }
 0xd59   :  { %v5564_v41 = vpop.eup %4727  ;;  %v4582_v45 = vpack.c.bf16 %v4722_v39, %v4726_v34 }
 0xd5a   :  { %v5566_v59 = vpop.eup %4729 }
 0xd5b   :  { %v4732_v60 = vpop.eup %4731  ;;  %4583 = vmatprep.subr.bf16.mxu0 %v4582_v45  ;;  %v4756_v45 = vld [vmem:[%s5656_s6] sm:$0xff]  ;;  %s4958_s6 = smov [#allocation14]  }
 0xd5c   :  { %v4734_v47 = vpop.eup %4733  ;;  %4585 = vmatpush1.bf16.msra.mxu0 %v4584_v11  ;;  %v4588_v10 = vpack.c.bf16 %v5564_v41, %v4732_v60  ;;  %s3703_s29 = sshll.u32 %s4958_s6, 4  ;;  %s3704_s29 = int_to_ptr.vmem [resolvable:$true] %s3703_s29 }
 0xd5d   :  { %v4586_v9 = vpack.c.bf16 %v5566_v59, %v4734_v47  ;;  %s4889_s7 = scalar_lea.vmem %s3704_s29, 1024  ;;  %p4894_p7 = scmp.lt.s32.totalorder %s3704_s29, %s3704_s29 }
 0xd5e   :  { %p4890_p6 = scmp.ne.s32.totalorder %s3704_s29, %s4889_s7  ;;  %p4895_p8 = scmp.lt.s32.totalorder %s4889_s7, %s4889_s7 }
 0xd5f   :  { %4587 = vmatprep.subr.bf16.mxu0 %v4586_v9 }
 0xd60   :  { %4589 = vmatpush1.bf16.msra.mxu0 %v4588_v10  ;;  %p4896_p9 = por %p4895_p8, %p4894_p7 }
 0xd62   :  { %p4897_p10 = pnand %p4896_p9, %p4890_p6 }
 0xd63   :  { %3766 = vmatmul.mubr.msk.f32.vlgmr.msra.gmra.mrb[28].mxu0 %vm1082_vm1, %v5573_v25 }
 0xd64   :  { %3300 = vmatprep.mubr.f32.mxu0 %v4955_v15 }
 0xe36   :  { %v3229_v27 = vpop.f32.mrb[28].mxu0 }
 0xe37   :  { %v3231_v35 = vpop.f32.mrb[29].mxu0 }
 0xe38   :  { %4735 = vrcp.f32 %v3231_v35 }
 0xe39   :  { %4737 = vrcp.f32 %v3229_v27 }
 0xe42   :  { %v4736_v19 = vpop.eup %4735 }
 0xe43   :  { %v4738_v48 = vpop.eup %4737  ;;  %3236 = vmatprep.subr.mxu0 %v4736_v19 }
 0xe44   :  { %3237 = vmatpush1.msra.mxu0 %v4738_v48 }
 0xe45   :  { %3767 = vmatmul.mubr.msk.f32.vlgmr.msra.gmra.mrb[30].mxu0 %vm839_vm0, %v5454_v1  ;;  %3333 = vmatprep.subr.mxu0 %v5488_v7 }
 0xe46   :  { %3334 = vmatpush1.msra.mxu0 %v5484_v42  ;;  %3306 = vmatprep.mubr.f32.mxu0 %v4955_v15 }
 0xe49   :  { %3768 = vmatmul.mubr.msk.f32.gmra.mrb[32].mxu0 %vm839_vm0, %v5462_v32 }
 0xe4a   :  { %3312 = vmatprep.mubr.f32.mxu0 %v4955_v15 }
 0xe4d   :  { %3769 = vmatmul.mubr.msk.f32.gmra.mrb[34].mxu0 %vm839_vm0, %v5470_v2 }
 0xe4e   :  { %3318 = vmatprep.mubr.f32.mxu0 %v4955_v15 }
 0xe51   :  { %3770 = vmatmul.mubr.msk.f32.gmra.mrb[36].mxu0 %vm839_vm0, %v5478_v4 }
 0xe52   :  { %3397 = vmatprep.mubr.f32.mxu0 %v4955_v15 }
 0xe55   :  { %3771 = vmatmul.mubr.msk.f32.vlgmr.msra.gmra.mrb[38].mxu0 %vm839_vm0, %v5416_v61 }
 0xe56   :  { %3403 = vmatprep.mubr.f32.mxu0 %v4955_v15 }
 0xe59   :  { %3772 = vmatmul.mubr.msk.f32.gmra.mrb[40].mxu0 %vm839_vm0, %v5432_v63 }
 0xe5a   :  { %3409 = vmatprep.mubr.f32.mxu0 %v4955_v15 }
 0xe5d   :  { %3773 = vmatmul.mubr.msk.f32.gmra.mrb[42].mxu0 %vm839_vm0, %v5423_v38 }
 0xe5e   :  { %3415 = vmatprep.mubr.f32.mxu0 %v4955_v15 }
 0xe61   :  { %3774 = vmatmul.mubr.msk.f32.gmra.mrb[44].mxu0 %vm839_vm0, %v5439_v0 }
 0xe62   :  { %3494 = vmatprep.mubr.f32.mxu0 %v4955_v15 }
 0xf18   :  { %v3302_v1 = vpop.f32.mrb[30].mxu0 }
 0xf19   :  { %v3304_v32 = vpop.f32.mrb[31].mxu0  ;;  %v3325_v33 = vmul.f32 %v4724_v26, %v3302_v1 }
 0xf1a   :  { %v3326_v37 = vmul.f32 %v4726_v34, %v3304_v32 }
 0xf1c   :  { %v3308_v61 = vpop.f32.mrb[32].mxu0 }
 0xf1d   :  { %v3310_v2 = vpop.f32.mrb[33].mxu0  ;;  %v3327_v49 = vmul.f32 %v4720_v29, %v3308_v61 }
 0xf1e   :  { %v3328_v31 = vmul.f32 %v4722_v39, %v3310_v2 }
 0xf20   :  { %v3314_v4 = vpop.f32.mrb[34].mxu0 }
 0xf21   :  { %v3316_v42 = vpop.f32.mrb[35].mxu0  ;;  %v3329_v55 = vmul.f32 %v4732_v60, %v3314_v4 }
 0xf22   :  { %v3330_v56 = vmul.f32 %v4734_v47, %v3316_v42 }
 0xf24   :  { %v3320_v7 = vpop.f32.mrb[36].mxu0 }
 0xf25   :  { %v3322_v63 = vpop.f32.mrb[37].mxu0  ;;  %v3331_v3 = vmul.f32 %v5564_v41, %v3320_v7 }
 0xf26   :  { %v3332_v24 = vmul.f32 %v5566_v59, %v3322_v63 }
 0xf28   :  { %v3399_v14 = vpop.f32.mrb[38].mxu0 }
 0xf29   :  { %v3422_v8 = vmul.f32 %v3399_v14, %v3325_v33  ;;  %v3401_v38 = vpop.f32.mrb[39].mxu0 }
 0xf2a   :  { %v3423_v52 = vmul.f32 %v3401_v38, %v3326_v37 }
 0xf2c   :  { %v3405_v22 = vpop.f32.mrb[40].mxu0 }
 0xf2d   :  { %v3424_v0 = vmul.f32 %v3405_v22, %v3327_v49  ;;  %v3407_v13 = vpop.f32.mrb[41].mxu0 }
 0xf2e   :  { %v3425_v54 = vmul.f32 %v3407_v13, %v3328_v31 }
 0xf2f   :  { %v4592_v23 = vpack.c.bf16 %v3424_v0, %v3422_v8 }
 0xf30   :  { %v4590_v57 = vpack.c.bf16 %v3425_v54, %v3423_v52  ;;  %v3411_v58 = vpop.f32.mrb[42].mxu0 }
 0xf31   :  { %v3426_v36 = vmul.f32 %v3411_v58, %v3329_v55  ;;  %v3413_v16 = vpop.f32.mrb[43].mxu0 }
 0xf32   :  { %v3427_v44 = vmul.f32 %v3413_v16, %v3330_v56  ;;  %4591 = vmatprep.subr.bf16.mxu0 %v4590_v57 }
 0xf33   :  { %4593 = vmatpush1.bf16.msra.mxu0 %v4592_v23 }
 0xf34   :  { %v3417_v18 = vpop.f32.mrb[44].mxu0 }
 0xf35   :  { %v3428_v17 = vmul.f32 %v3417_v18, %v3331_v3  ;;  %v3419_v40 = vpop.f32.mrb[45].mxu0 }
 0xf36   :  { %v3429_v46 = vmul.f32 %v3419_v40, %v3332_v24 }
 0xf37   :  { %v4596_v43 = vpack.c.bf16 %v3428_v17, %v3426_v36 }
 0xf38   :  { %v4594_v51 = vpack.c.bf16 %v3429_v46, %v3427_v44 }
 0xf3a   :  { %4595 = vmatprep.subr.bf16.mxu0 %v4594_v51 }
 0xf3b   :  { %4597 = vmatpush1.bf16.msra.mxu0 %v4596_v43 }
 0xf3c   :  { %3884 = vmatprep.subr.mxu0 %v4955_v15 }
 0xf3e   :  { %3775 = vmatmul.mubr.msk.f32.vlgmr.msra.gmra.mrb[46].mxu0 %vm1082_vm1, %v5573_v25 }
 0xf3f   :  { %3886 = vmatprep.mubr.msk.f32.mxu0 %vm4957_vm2, %v4955_v15 }
0x1011   :  { %v3496_v30 = vpop.f32.mrb[46].mxu0 }
0x1012   :  { %v3501_v62 = vmul.f32 0.25, %v3496_v30  ;;  %v3498_v12 = vpop.f32.mrb[47].mxu0 }
0x1013   :  { %v3502_v21 = vmul.f32 0.25, %v3498_v12 }
0x1014   :  { %v3503_v53 = vadd.f32 %v3501_v62, %v5482_v5 }
0x1015   :  { %v3504_v28 = vadd.f32 %v3502_v21, %v5486_v6 }
0x1016   :  { %v3508_v29 = vmul.f32 %v3503_v53, %v3503_v53 }
0x1017   :  { %v3505_v39 = vadd.f32 %v3504_v28, %v3503_v53  ;;  %v3509_v26 = vmul.f32 %v3504_v28, %v3504_v28 }
0x1019   :  { %3506 = vadd.xlane.f32.xlu1 %v3505_v39  ;;  %v3510_v34 = vadd.f32 %v3509_v26, %v3508_v29 }
0x101b   :  { %3511 = vadd.xlane.f32.xlu0 %v3510_v34 }
0x10a6   :  { %v3507_v11 = vpop.xlane.xlu1 %3506 }
0x10a7   :  { %3885 = vmatpush3.msra.mxu0 %v3507_v11 }
0x10a8   :  { %v3512_v41 = vpop.xlane.xlu0 %3511  ;;  %3887 = vmatmul.mubr.msk.f32.vlgmr.msra.gmra.mrb[48].mxu0 %vm839_vm0, %v4756_v45  ;;  %3889 = vmatprep.subr.mxu0 %v4955_v15 }
0x10a9   :  { %3890 = vmatpush3.msra.mxu0 %v3512_v41  ;;  %3891 = vmatprep.mubr.msk.f32.mxu0 %vm4957_vm2, %v4955_v15 }
0x10ac   :  { %3892 = vmatmul.mubr.msk.f32.vlgmr.msra.gmra.mrb[50].mxu0 %vm839_vm0, %v4756_v45 }
0x117b   :  { %v3579_v5 = vpop.f32.mrb[48].mxu0 }
0x117c   :  { %v3583_v6 = vmul.f32 0.001953125, %v3579_v5  ;;  %v3888_v59 = vpop.f32.mrb[49].mxu0 }
0x117e   :  { %3660 = vperm.xlu0 %4647, %v3583_v6   ;;  %v3655_v47 = vmul.f32 %v3583_v6, %v3583_v6 }
0x117f   :  { %v3650_v60 = vpop.f32.mrb[50].mxu0 }
0x1180   :  { %v3654_v10 = vmul.f32 0.001953125, %v3650_v60  ;;  %v3893_v9 = vpop.f32.mrb[51].mxu0 }
0x1182   :  { %v3656_v25 = vsub.f32 %v3654_v10, %v3655_v47 }
0x1184   :  { %v3657_v27 = vmax.f32 %v3656_v25, 0.0 }
0x1186   :  { %v3665_v35 = vadd.f32 1e-05, %v3657_v27 }
0x1188   :  { %4739 = vrsqrt.f32 %v3665_v35 }
0x1192   :  { %v4740_v19 = vpop.eup %4739 }
0x1193   :  { %3669 = vperm.xlu1 %4648, %v4740_v19  }
0x1194   :  { %4900 = shalt.err (!%p4897_p10)
}
0x1195   :  { %s4901_s15 = scalar_lea.hbm %s5662_s12, 1024 }
0x1196   :  { %p4902_p11 = scmp.ne.s32.totalorder %s5662_s12, %s4901_s15  ;;  %p4905_p12 = scmp.lt.u32.totalorder %s4901_s15, %s5662_s12 }
0x1198   :  { %p4907_p13 = pnand %p4905_p12, %p4902_p11 }
0x119a   :  { %4910 = shalt.err (!%p4907_p13)
}
0x119b   :  { %3709 = dma.vmem_to_hbm [thread:$0]  %s3704_s29, 1024, %s5662_s12, [#allocation15], %s4946_s13, %s4946_s13, %s4947_s14  }
0x119c   :  { %s4959_s18 = smov [#allocation13]  }
0x119d   :  { %s3694_s25 = sshll.u32 %s4959_s18, 4  ;;  %s3695_s25 = int_to_ptr.vmem [resolvable:$true] %s3694_s25 }
0x119e   :  { %s4911_s9 = scalar_lea.vmem %s3695_s25, 256  ;;  %p4916_p1 = scmp.lt.s32.totalorder %s3695_s25, %s3695_s25 }
0x119f   :  { %p4912_p0 = scmp.ne.s32.totalorder %s3695_s25, %s4911_s9  ;;  %p4917_p2 = scmp.lt.s32.totalorder %s4911_s9, %s4911_s9 }
0x11a1   :  { %p4918_p3 = por %p4917_p2, %p4916_p1 }
0x11a3   :  { %p4919_p4 = pnand %p4918_p3, %p4912_p0 }
0x11fd   :  { %v3661_v15 = vpop.permute.xlu0 %3660 }
0x11fe   :  { %v3663_v48 = vsub.f32 %v3503_v53, %v3661_v15  ;;  %v3664_v1 = vsub.f32 %v3504_v28, %v3661_v15 }
0x1212   :  { %v3670_v32 = vpop.permute.xlu1 %3669 }
0x1213   :  { %v3672_v61 = vmul.f32 %v3670_v32, %v3663_v48  ;;  %v3673_v2 = vmul.f32 %v3670_v32, %v3664_v1 }
0x1215   :  { %v3674_v4 = vadd.f32 %v3672_v61, %v5391_v50  ;;  %v3675_v42 = vadd.f32 %v3673_v2, %v5393_v20 }
0x1217   :  { %v3676_v7 = vmax.f32 %v3674_v4, 0.0  ;;  %v3677_v63 = vmax.f32 %v3675_v42, 0.0 }
0x1219   :  { %3678 = vst [vmem:[#allocation13] sm:$0xff] %v3676_v7  ;;  %3679 = vst [vmem:[#allocation13 + $0x8] sm:$0xff] %v3677_v63 }
0x121a   :  { %4922 = shalt.err (!%p4919_p4)
}
0x121b   :  { %s4923_s14 = scalar_lea.hbm %s5661_s11, 256 }
0x121c   :  { %p4924_p5 = scmp.ne.s32.totalorder %s5661_s11, %s4923_s14  ;;  %p4927_p6 = scmp.lt.u32.totalorder %s4923_s14, %s5661_s11 }
0x121e   :  { %p4929_p7 = pnand %p4927_p6, %p4924_p5 }
0x1220   :  { %4932 = shalt.err (!%p4929_p7)
}
0x1221   :  { %3697 = dma.vmem_to_hbm [thread:$0]  %s3695_s25, 256, %s5661_s11, [#allocation4]  }
0x1222   :  { %4941 = dma.done.wait [#allocation4], 256  }
0x1223   :  { %4942 = vsyncadd [#allocation4], 4294967040 }
0x1224   :  { %4943 = dma.done.wait [#allocation15], 1024  }
0x1225   :  { %4944 = vsyncadd [#allocation15], 4294966272 }
0x1226   :  { %3716 = vsyncpa [#allocation3], 1 }
0x1227   :  { %3717 = vsyncpa [#allocation6], 1 }
0x1228   :  { %3718 = vsyncpa [#allocation9], 1 }
0x1229   :  { %3719 = vsyncpa [#allocation12], 1 }
0x122a   :  { %3720 = vsyncpa [#allocation4], 1 }
0x122b   :  { %3721 = vsyncpa [#allocation15], 1 }

</bundles_post_ra>
